<compile_context>
chip_gen: v6e
topology: v6e:2x2x1
jax: 0.10.0
libtpu: 0.0.40
codegen_flags: <defaults>
</compile_context>

<pallas_src>
import functools

import jax
import jax.numpy as jnp
from jax.experimental import pallas as pl
from jax.experimental.pallas import tpu as pltpu

LEAKY_SLOPE = 0.2
BN_EPS = 1e-5
NDF = 128
MXU_DTYPE = jnp.bfloat16   # MXU-native input dtype; accumulation stays f32.
MAX_TM = 512               # target M-tile (rows of the im2col matrix)


def _cdiv(a, b):
    return -(-a // b)


def _round_up(x, m):
    return _cdiv(x, m) * m


def _pick_tk(k_dim):
    """K tile: a multiple of 128 dividing K, else a single full-K step."""
    for cand in (1024, 768, 512, 384, 256, 128):
        if k_dim % cand == 0:
            return cand
    return k_dim


def _pick_tm(m_dim):
    """M tile: multiple of 8, <= MAX_TM, minimal padding of M."""
    m8 = _round_up(m_dim, 8)
    n_m = _cdiv(m8, MAX_TM)
    tm = _round_up(_cdiv(m8, n_m), 8)
    return tm, tm * n_m, n_m


# ----------------------------------------------------------------------------
# Kernels
# ----------------------------------------------------------------------------
def _matmul_act_kernel(x_ref, w_ref, y_ref, acc_ref, *, act):
    """Tiled matmul with fused activation (no BatchNorm)."""
    k = pl.program_id(1)

    @pl.when(k == 0)
    def _():
        acc_ref[...] = jnp.zeros_like(acc_ref)

    acc_ref[...] += jnp.dot(x_ref[...], w_ref[...],
                            preferred_element_type=jnp.float32)

    @pl.when(k == pl.num_programs(1) - 1)
    def _():
        y = acc_ref[...]
        if act == "leaky":
            y = jnp.where(y > 0, y, LEAKY_SLOPE * y)
        elif act == "sigmoid":
            y = 1.0 / (1.0 + jnp.exp(-y))
        y_ref[...] = y.astype(y_ref.dtype)


def _matmul_stats_kernel(x_ref, w_ref, y_ref, sum_ref, sq_ref, acc_ref):
    """Tiled matmul that also accumulates per-channel sum / sum-of-squares
    (for training-mode BatchNorm) into grid-resident (8, N) outputs."""
    m = pl.program_id(0)
    k = pl.program_id(1)

    @pl.when((m == 0) & (k == 0))
    def _():
        sum_ref[...] = jnp.zeros_like(sum_ref)
        sq_ref[...] = jnp.zeros_like(sq_ref)

    @pl.when(k == 0)
    def _():
        acc_ref[...] = jnp.zeros_like(acc_ref)

    acc_ref[...] += jnp.dot(x_ref[...], w_ref[...],
                            preferred_element_type=jnp.float32)

    @pl.when(k == pl.num_programs(1) - 1)
    def _():
        y = acc_ref[...]
        y_ref[...] = y.astype(y_ref.dtype)
        s = jnp.sum(y, axis=0, keepdims=True)        # (1, N)
        sq = jnp.sum(y * y, axis=0, keepdims=True)   # (1, N)
        # Full-block (unmasked) accumulation; every sublane carries the sum.
        sum_ref[...] += jnp.broadcast_to(s, sum_ref.shape)
        sq_ref[...] += jnp.broadcast_to(sq, sq_ref.shape)


def _bn_act_kernel(y_ref, scale_ref, shift_ref, o_ref):
    """Per-channel affine (folded BatchNorm) + LeakyReLU(0.2)."""
    y = y_ref[...] * scale_ref[...] + shift_ref[...]
    o_ref[...] = jnp.where(y > 0, y, LEAKY_SLOPE * y).astype(o_ref.dtype)


# ----------------------------------------------------------------------------
# Pallas-call wrappers
# ----------------------------------------------------------------------------
def _tiled_matmul(cols, w2d, *, act=None, out_dtype=jnp.float32,
                  with_stats=False):
    m_dim, k_dim = cols.shape
    n_dim = w2d.shape[1]
    tm, m_pad, n_m = _pick_tm(m_dim)
    tk = _pick_tk(k_dim)
    n_k = k_dim // tk

    if m_pad != m_dim:
        cols = jnp.pad(cols, ((0, m_pad - m_dim), (0, 0)))
    cols = cols.astype(MXU_DTYPE)
    w2d = w2d.astype(MXU_DTYPE)

    x_spec = pl.BlockSpec((tm, tk), lambda i, k: (i, k))
    w_spec = pl.BlockSpec((tk, n_dim), lambda i, k: (k, 0))
    y_spec = pl.BlockSpec((tm, n_dim), lambda i, k: (i, 0))
    stat_spec = pl.BlockSpec((8, n_dim), lambda i, k: (0, 0))

    flops = 2 * m_pad * k_dim * n_dim
    bytes_accessed = (cols.size * cols.dtype.itemsize
                      + w2d.size * w2d.dtype.itemsize
                      + m_pad * n_dim * 4)

    if with_stats:
        kernel = _matmul_stats_kernel
        out_shape = (jax.ShapeDtypeStruct((m_pad, n_dim), jnp.float32),
                     jax.ShapeDtypeStruct((8, n_dim), jnp.float32),
                     jax.ShapeDtypeStruct((8, n_dim), jnp.float32))
        out_specs = (y_spec, stat_spec, stat_spec)
        # Stats output is one block shared by every M tile -> M axis cannot be
        # megacore-parallel for this pass.
        semantics = ("arbitrary", "arbitrary")
    else:
        kernel = functools.partial(_matmul_act_kernel, act=act)
        out_shape = jax.ShapeDtypeStruct((m_pad, n_dim), out_dtype)
        out_specs = y_spec
        semantics = ("parallel", "arbitrary")

    result = pl.pallas_call(
        kernel,
        out_shape=out_shape,
        grid_spec=pltpu.PrefetchScalarGridSpec(
            num_scalar_prefetch=0,
            grid=(n_m, n_k),
            in_specs=[x_spec, w_spec],
            out_specs=out_specs,
            scratch_shapes=[pltpu.VMEM((tm, n_dim), jnp.float32)]),
        compiler_params=pltpu.CompilerParams(dimension_semantics=semantics),
        cost_estimate=pl.CostEstimate(flops=flops, transcendentals=0,
                                      bytes_accessed=bytes_accessed),
    )(cols, w2d)
    return result, tm, n_m


def _bn_leaky_apply(y_pad, scale, shift, *, tm, n_m, out_dtype):
    m_pad, n_dim = y_pad.shape
    scale = scale.astype(jnp.float32)
    shift = shift.astype(jnp.float32)
    out_bytes = m_pad * n_dim * jnp.dtype(out_dtype).itemsize
    return pl.pallas_call(
        _bn_act_kernel,
        out_shape=jax.ShapeDtypeStruct((m_pad, n_dim), out_dtype),
        grid_spec=pltpu.PrefetchScalarGridSpec(
            num_scalar_prefetch=0,
            grid=(n_m,),
            in_specs=[pl.BlockSpec((tm, n_dim), lambda i: (i, 0)),
                      pl.BlockSpec((1, n_dim), lambda i: (0, 0)),
                      pl.BlockSpec((1, n_dim), lambda i: (0, 0))],
            out_specs=pl.BlockSpec((tm, n_dim), lambda i: (i, 0))),
        compiler_params=pltpu.CompilerParams(
            dimension_semantics=("parallel",)),
        cost_estimate=pl.CostEstimate(
            flops=3 * m_pad * n_dim, transcendentals=0,
            bytes_accessed=m_pad * n_dim * 4 + out_bytes + 2 * n_dim * 4),
    )(y_pad, scale, shift)


# ----------------------------------------------------------------------------
# Conv layers (im2col glue + Pallas kernels)
# ----------------------------------------------------------------------------
def _im2col(x_nhwc, kh, kw, stride, pad):
    if pad > 0:
        x_nhwc = jnp.pad(x_nhwc, ((0, 0), (pad, pad), (pad, pad), (0, 0)))
    b, h, w, c = x_nhwc.shape
    ho = (h - kh) // stride + 1
    wo = (w - kw) // stride + 1
    patches = [
        x_nhwc[:, i:i + stride * ho:stride, j:j + stride * wo:stride, :]
        for i in range(kh) for j in range(kw)
    ]
    cols = jnp.concatenate(patches, axis=-1).reshape(b * ho * wo, kh * kw * c)
    return cols, b, ho, wo


def _conv_act(x_nhwc, w, *, stride, pad, act, out_dtype):
    """Conv2d (bias=False) + activation, fused in one tiled Pallas matmul."""
    kh, kw, cin, cout = w.shape
    cols, b, ho, wo = _im2col(x_nhwc, kh, kw, stride, pad)
    w2d = w.reshape(kh * kw * cin, cout)
    m = cols.shape[0]
    y_pad, _, _ = _tiled_matmul(cols, w2d, act=act, out_dtype=out_dtype,
                                with_stats=False)
    return y_pad[:m].reshape(b, ho, wo, cout)


def _conv_bn_leaky(x_nhwc, w, gamma, beta, *, stride, pad, out_dtype):
    """Conv2d (bias=False) + BatchNorm2d (training stats) + LeakyReLU(0.2)."""
    kh, kw, cin, cout = w.shape
    cols, b, ho, wo = _im2col(x_nhwc, kh, kw, stride, pad)
    w2d = w.reshape(kh * kw * cin, cout)
    m = cols.shape[0]
    (y_pad, sum8, sq8), tm, n_m = _tiled_matmul(cols, w2d, with_stats=True)

    # Per-channel batch statistics (biased variance, eps=1e-5), matching
    # PyTorch BatchNorm2d in training mode. Zero-padded rows of cols produce
    # exactly-zero rows of y, so they contribute nothing to the sums; divide by
    # the real row count m = B*Ho*Wo.
    total = sum8[0:1, :]
    total_sq = sq8[0:1, :]
    mean = total / m
    var = jnp.maximum(total_sq / m - mean * mean, 0.0)
    inv_std = jax.lax.rsqrt(var + BN_EPS)
    scale = gamma * inv_std
    shift = beta - mean * scale

    out_pad = _bn_leaky_apply(y_pad, scale, shift, tm=tm, n_m=n_m,
                              out_dtype=out_dtype)
    return out_pad[:m].reshape(b, ho, wo, cout)


# ----------------------------------------------------------------------------
# Model
# ----------------------------------------------------------------------------
def init_params(key):
    """Deterministic synthetic init matching initialize_weights():
    Conv2d weights ~ N(0, 0.02), BN gamma ~ N(1, 0.02), BN beta = 0."""
    ks = jax.random.split(key, 6)
    p = {}
    p["w1"] = 0.02 * jax.random.normal(ks[0], (4, 4, 1, NDF), jnp.float32)
    p["w2"] = 0.02 * jax.random.normal(ks[1], (4, 4, NDF, NDF * 2), jnp.float32)
    p["g2"] = 1.0 + 0.02 * jax.random.normal(ks[2], (1, NDF * 2), jnp.float32)
    p["b2"] = jnp.zeros((1, NDF * 2), jnp.float32)
    p["w3"] = 0.02 * jax.random.normal(ks[3], (3, 3, NDF * 2, NDF * 4), jnp.float32)
    p["g3"] = 1.0 + 0.02 * jax.random.normal(ks[4], (1, NDF * 4), jnp.float32)
    p["b3"] = jnp.zeros((1, NDF * 4), jnp.float32)
    p["w4"] = 0.02 * jax.random.normal(ks[5], (4, 4, NDF * 4, 1), jnp.float32)
    return p


def discriminator_cnn(img_nchw, p):
    """Forward pass. img_nchw: (B, 1, 28, 28) like PyTorch. Returns (B,)."""
    x = jnp.transpose(img_nchw, (0, 2, 3, 1)).astype(jnp.float32)  # NCHW->NHWC

    # Conv2d(1, 128, 4, 2, 1) + LeakyReLU(0.2)          : 28 -> 14
    x = _conv_act(x, p["w1"], stride=2, pad=1, act="leaky",
                  out_dtype=MXU_DTYPE)
    # Conv2d(128, 256, 4, 2, 1) + BN + LeakyReLU(0.2)   : 14 -> 7
    x = _conv_bn_leaky(x, p["w2"], p["g2"], p["b2"], stride=2, pad=1,
                       out_dtype=MXU_DTYPE)
    # Conv2d(256, 512, 3, 2, 1) + BN + LeakyReLU(0.2)   : 7 -> 4
    x = _conv_bn_leaky(x, p["w3"], p["g3"], p["b3"], stride=2, pad=1,
                       out_dtype=MXU_DTYPE)
    # Conv2d(512, 1, 4, 1, 0) + Sigmoid                 : 4 -> 1
    # Cout=1 would be a lane-width-1 (masked-store, near-empty MXU) output, so
    # zero-pad Cout to 128 and slice channel 0 afterwards.
    w4p = jnp.pad(p["w4"], ((0, 0), (0, 0), (0, 0), (0, 127)))
    x = _conv_act(x, w4p, stride=1, pad=0, act="sigmoid",
                  out_dtype=jnp.float32)          # (B, 1, 1, 128)

    # validity.view(-1, 1).squeeze(1): (B, 1, 1, 1) -> (B,)
    return x[:, 0, 0, 0]


if __name__ == "__main__":
    key = jax.random.PRNGKey(0)
    pkey, xkey = jax.random.split(key)
    params = init_params(pkey)
    # Fashion-MNIST-shaped input, small batch, NCHW like PyTorch.
    img = jax.random.normal(xkey, (2, 1, 28, 28), jnp.float32)

    fwd = jax.jit(discriminator_cnn)
    out = fwd(img, params)
    jax.block_until_ready(out)
    assert out.shape == (2,), out.shape
    assert bool(jnp.all(jnp.isfinite(out)))
    assert bool(jnp.all((out >= 0.0) & (out <= 1.0)))  # sigmoid output range
    print("KERNEL_OK")
</pallas_src>

<mosaic_0001>
module attributes {stable_mosaic.version = 11 : i64} {
  func.func @_matmul_act_kernel(%arg0: i32, %arg1: i32, %arg2: memref<392x16xbf16, #tpu.memory_space<vmem>>, %arg3: memref<16x128xbf16, #tpu.memory_space<vmem>>, %arg4: memref<392x128xbf16, #tpu.memory_space<vmem>>, %arg5: memref<392x128xf32, #tpu.memory_space<vmem>>) attributes {dimension_semantics = [#tpu.dimension_semantics<parallel>, #tpu.dimension_semantics<arbitrary>], iteration_bounds = array<i64: 1, 1>, scalar_prefetch = 0 : i64, scratch_operands = 1 : i64, tpu.core_type = #tpu.core_type<tc>, window_params = [{transform_indices = @transform_0, window_bounds = array<i64: 392, 16>}, {transform_indices = @transform_1, window_bounds = array<i64: 16, 128>}, {transform_indices = @transform_2, window_bounds = array<i64: 392, 128>}]} {
    %c0_i32 = arith.constant 0 : i32
    %0 = arith.cmpi eq, %arg1, %c0_i32 : i32
    %1 = arith.extui %0 : i1 to i32
    %c0_i32_0 = arith.constant 0 : i32
    %2 = arith.cmpi ne, %1, %c0_i32_0 : i32
    scf.if %2 {
      %cst_10 = arith.constant 0.000000e+00 : f32
      %12 = vector.broadcast %cst_10 : f32 to vector<392x128xf32>
      %c0_11 = arith.constant 0 : index
      %c0_12 = arith.constant 0 : index
      %13 = vector.load %arg5[%c0_11, %c0_12] : memref<392x128xf32, #tpu.memory_space<vmem>>, vector<392x128xf32>
      tpu.vector_store %arg5[%c0_11, %c0_12], %12 {strides = array<i32>} : memref<392x128xf32, #tpu.memory_space<vmem>>, vector<392x128xf32>,
    } else {
    }
    %c0 = arith.constant 0 : index
    %c0_1 = arith.constant 0 : index
    %3 = vector.load %arg5[%c0, %c0_1] : memref<392x128xf32, #tpu.memory_space<vmem>>, vector<392x128xf32>
    %c0_2 = arith.constant 0 : index
    %c0_3 = arith.constant 0 : index
    %4 = vector.load %arg2[%c0_2, %c0_3] : memref<392x16xbf16, #tpu.memory_space<vmem>>, vector<392x16xbf16>
    %c0_4 = arith.constant 0 : index
    %c0_5 = arith.constant 0 : index
    %5 = vector.load %arg3[%c0_4, %c0_5] : memref<16x128xbf16, #tpu.memory_space<vmem>>, vector<16x128xbf16>
    %cst = arith.constant dense<0.000000e+00> : vector<392x128xf32>
    %6 = tpu.matmul %4, %5, %cst {dimension_numbers = #tpu.dot_dimension_numbers<[1], [0], [0], [1], [0, 0, 1, 1], [], []>} : vector<392x16xbf16>, vector<16x128xbf16>, vector<392x128xf32> -> vector<392x128xf32>
    %7 = arith.addf %3, %6 : vector<392x128xf32>
    %c0_6 = arith.constant 0 : index
    %c0_7 = arith.constant 0 : index
    %8 = vector.load %arg5[%c0_6, %c0_7] : memref<392x128xf32, #tpu.memory_space<vmem>>, vector<392x128xf32>
    tpu.vector_store %arg5[%c0_6, %c0_7], %7 {strides = array<i32>} : memref<392x128xf32, #tpu.memory_space<vmem>>, vector<392x128xf32>,
    %c0_i32_8 = arith.constant 0 : i32
    %9 = arith.cmpi eq, %arg1, %c0_i32_8 : i32
    %10 = arith.extui %9 : i1 to i32
    %c0_i32_9 = arith.constant 0 : i32
    %11 = arith.cmpi ne, %10, %c0_i32_9 : i32
    scf.if %11 {
      %c0_10 = arith.constant 0 : index
      %c0_11 = arith.constant 0 : index
      %12 = vector.load %arg5[%c0_10, %c0_11] : memref<392x128xf32, #tpu.memory_space<vmem>>, vector<392x128xf32>
      %cst_12 = arith.constant 0.000000e+00 : f32
      %13 = vector.broadcast %cst_12 : f32 to vector<392x128xf32>
      %14 = arith.cmpf ogt, %12, %13 : vector<392x128xf32>
      %cst_13 = arith.constant 2.000000e-01 : f32
      %15 = vector.broadcast %cst_13 : f32 to vector<392x128xf32>
      %16 = arith.mulf %15, %12 : vector<392x128xf32>
      %17 = arith.select %14, %12, %16 : vector<392x128xi1>, vector<392x128xf32>
      %18 = arith.truncf %17 : vector<392x128xf32> to vector<392x128xbf16>
      %c0_14 = arith.constant 0 : index
      %c0_15 = arith.constant 0 : index
      %19 = vector.load %arg4[%c0_14, %c0_15] : memref<392x128xbf16, #tpu.memory_space<vmem>>, vector<392x128xbf16>
      tpu.vector_store %arg4[%c0_14, %c0_15], %18 {strides = array<i32>} : memref<392x128xbf16, #tpu.memory_space<vmem>>, vector<392x128xbf16>,
    } else {
    }
    return
  }
  func.func @transform_0(%arg0: i32, %arg1: i32) -> (i32, i32) {
    %c0_i32 = arith.constant 0 : i32
    return %arg0, %arg1 : i32, i32
  }
  func.func @transform_1(%arg0: i32, %arg1: i32) -> (i32, i32) {
    %c0_i32 = arith.constant 0 : i32
    %c0_i32_0 = arith.constant 0 : i32
    return %arg1, %c0_i32 : i32, i32
  }
  func.func @transform_2(%arg0: i32, %arg1: i32) -> (i32, i32) {
    %c0_i32 = arith.constant 0 : i32
    %c0_i32_0 = arith.constant 0 : i32
    return %arg0, %c0_i32 : i32, i32
  }
}

module attributes {stable_mosaic.version = 11 : i64} {
  func.func @_matmul_stats_kernel(%arg0: i32, %arg1: i32, %arg2: memref<104x1024xbf16, #tpu.memory_space<vmem>>, %arg3: memref<1024x256xbf16, #tpu.memory_space<vmem>>, %arg4: memref<104x256xf32, #tpu.memory_space<vmem>>, %arg5: memref<8x256xf32, #tpu.memory_space<vmem>>, %arg6: memref<8x256xf32, #tpu.memory_space<vmem>>, %arg7: memref<104x256xf32, #tpu.memory_space<vmem>>) attributes {dimension_semantics = [#tpu.dimension_semantics<arbitrary>, #tpu.dimension_semantics<arbitrary>], iteration_bounds = array<i64: 1, 2>, scalar_prefetch = 0 : i64, scratch_operands = 1 : i64, tpu.core_type = #tpu.core_type<tc>, window_params = [{transform_indices = @transform_0, window_bounds = array<i64: 104, 1024>}, {transform_indices = @transform_1, window_bounds = array<i64: 1024, 256>}, {transform_indices = @transform_2, window_bounds = array<i64: 104, 256>}, {pipeline_mode = #tpu.pipeline_mode<synchronous>, transform_indices = @transform_3, window_bounds = array<i64: 8, 256>}, {pipeline_mode = #tpu.pipeline_mode<synchronous>, transform_indices = @transform_4, window_bounds = array<i64: 8, 256>}]} {
    %c0_i32 = arith.constant 0 : i32
    %0 = arith.cmpi eq, %arg0, %c0_i32 : i32
    %c0_i32_0 = arith.constant 0 : i32
    %1 = arith.cmpi eq, %arg1, %c0_i32_0 : i32
    %2 = arith.andi %0, %1 : i1
    %3 = arith.extui %2 : i1 to i32
    %c0_i32_1 = arith.constant 0 : i32
    %4 = arith.cmpi ne, %3, %c0_i32_1 : i32
    scf.if %4 {
      %cst_12 = arith.constant 0.000000e+00 : f32
      %17 = vector.broadcast %cst_12 : f32 to vector<8x256xf32>
      %c0_13 = arith.constant 0 : index
      %c0_14 = arith.constant 0 : index
      %18 = vector.load %arg5[%c0_13, %c0_14] : memref<8x256xf32, #tpu.memory_space<vmem>>, vector<8x256xf32>
      tpu.vector_store %arg5[%c0_13, %c0_14], %17 {strides = array<i32>} : memref<8x256xf32, #tpu.memory_space<vmem>>, vector<8x256xf32>,
      %cst_15 = arith.constant 0.000000e+00 : f32
      %19 = vector.broadcast %cst_15 : f32 to vector<8x256xf32>
      %c0_16 = arith.constant 0 : index
      %c0_17 = arith.constant 0 : index
      %20 = vector.load %arg6[%c0_16, %c0_17] : memref<8x256xf32, #tpu.memory_space<vmem>>, vector<8x256xf32>
      tpu.vector_store %arg6[%c0_16, %c0_17], %19 {strides = array<i32>} : memref<8x256xf32, #tpu.memory_space<vmem>>, vector<8x256xf32>,
    } else {
    }
    %c0_i32_2 = arith.constant 0 : i32
    %5 = arith.cmpi eq, %arg1, %c0_i32_2 : i32
    %6 = arith.extui %5 : i1 to i32
    %c0_i32_3 = arith.constant 0 : i32
    %7 = arith.cmpi ne, %6, %c0_i32_3 : i32
    scf.if %7 {
      %cst_12 = arith.constant 0.000000e+00 : f32
      %17 = vector.broadcast %cst_12 : f32 to vector<104x256xf32>
      %c0_13 = arith.constant 0 : index
      %c0_14 = arith.constant 0 : index
      %18 = vector.load %arg7[%c0_13, %c0_14] : memref<104x256xf32, #tpu.memory_space<vmem>>, vector<104x256xf32>
      tpu.vector_store %arg7[%c0_13, %c0_14], %17 {strides = array<i32>} : memref<104x256xf32, #tpu.memory_space<vmem>>, vector<104x256xf32>,
    } else {
    }
    %c0 = arith.constant 0 : index
    %c0_4 = arith.constant 0 : index
    %8 = vector.load %arg7[%c0, %c0_4] : memref<104x256xf32, #tpu.memory_space<vmem>>, vector<104x256xf32>
    %c0_5 = arith.constant 0 : index
    %c0_6 = arith.constant 0 : index
    %9 = vector.load %arg2[%c0_5, %c0_6] : memref<104x1024xbf16, #tpu.memory_space<vmem>>, vector<104x1024xbf16>
    %c0_7 = arith.constant 0 : index
    %c0_8 = arith.constant 0 : index
    %10 = vector.load %arg3[%c0_7, %c0_8] : memref<1024x256xbf16, #tpu.memory_space<vmem>>, vector<1024x256xbf16>
    %cst = arith.constant dense<0.000000e+00> : vector<104x256xf32>
    %11 = tpu.matmul %9, %10, %cst {dimension_numbers = #tpu.dot_dimension_numbers<[1], [0], [0], [1], [0, 0, 1, 1], [], []>} : vector<104x1024xbf16>, vector<1024x256xbf16>, vector<104x256xf32> -> vector<104x256xf32>
    %12 = arith.addf %8, %11 : vector<104x256xf32>
    %c0_9 = arith.constant 0 : index
    %c0_10 = arith.constant 0 : index
    %13 = vector.load %arg7[%c0_9, %c0_10] : memref<104x256xf32, #tpu.memory_space<vmem>>, vector<104x256xf32>
    tpu.vector_store %arg7[%c0_9, %c0_10], %12 {strides = array<i32>} : memref<104x256xf32, #tpu.memory_space<vmem>>, vector<104x256xf32>,
    %c1_i32 = arith.constant 1 : i32
    %14 = arith.cmpi eq, %arg1, %c1_i32 : i32
    %15 = arith.extui %14 : i1 to i32
    %c0_i32_11 = arith.constant 0 : i32
    %16 = arith.cmpi ne, %15, %c0_i32_11 : i32
    scf.if %16 {
      %c0_12 = arith.constant 0 : index
      %c0_13 = arith.constant 0 : index
      %17 = vector.load %arg7[%c0_12, %c0_13] : memref<104x256xf32, #tpu.memory_space<vmem>>, vector<104x256xf32>
      %c0_14 = arith.constant 0 : index
      %c0_15 = arith.constant 0 : index
      %18 = vector.load %arg4[%c0_14, %c0_15] : memref<104x256xf32, #tpu.memory_space<vmem>>, vector<104x256xf32>
      tpu.vector_store %arg4[%c0_14, %c0_15], %17 {strides = array<i32>} : memref<104x256xf32, #tpu.memory_space<vmem>>, vector<104x256xf32>,
      %cst_16 = arith.constant dense<0.000000e+00> : vector<256xf32>
      %19 = vector.multi_reduction <add>, %17, %cst_16 [0] : vector<104x256xf32> to vector<256xf32>
      %20 = vector.shape_cast %19 : vector<256xf32> to vector<1x256xf32>
      %21 = arith.mulf %17, %17 : vector<104x256xf32>
      %cst_17 = arith.constant dense<0.000000e+00> : vector<256xf32>
      %22 = vector.multi_reduction <add>, %21, %cst_17 [0] : vector<104x256xf32> to vector<256xf32>
      %23 = vector.shape_cast %22 : vector<256xf32> to vector<1x256xf32>
      %c0_18 = arith.constant 0 : index
      %c0_19 = arith.constant 0 : index
      %24 = vector.load %arg5[%c0_18, %c0_19] : memref<8x256xf32, #tpu.memory_space<vmem>>, vector<8x256xf32>
      %25 = vector.shape_cast %20 : vector<1x256xf32> to vector<1x256xf32>
      %26 = vector.broadcast %25 : vector<1x256xf32> to vector<8x256xf32>
      %27 = arith.addf %24, %26 : vector<8x256xf32>
      %c0_20 = arith.constant 0 : index
      %c0_21 = arith.constant 0 : index
      %28 = vector.load %arg5[%c0_20, %c0_21] : memref<8x256xf32, #tpu.memory_space<vmem>>, vector<8x256xf32>
      tpu.vector_store %arg5[%c0_20, %c0_21], %27 {strides = array<i32>} : memref<8x256xf32, #tpu.memory_space<vmem>>, vector<8x256xf32>,
      %c0_22 = arith.constant 0 : index
      %c0_23 = arith.constant 0 : index
      %29 = vector.load %arg6[%c0_22, %c0_23] : memref<8x256xf32, #tpu.memory_space<vmem>>, vector<8x256xf32>
      %30 = vector.shape_cast %23 : vector<1x256xf32> to vector<1x256xf32>
      %31 = vector.broadcast %30 : vector<1x256xf32> to vector<8x256xf32>
      %32 = arith.addf %29, %31 : vector<8x256xf32>
      %c0_24 = arith.constant 0 : index
      %c0_25 = arith.constant 0 : index
      %33 = vector.load %arg6[%c0_24, %c0_25] : memref<8x256xf32, #tpu.memory_space<vmem>>, vector<8x256xf32>
      tpu.vector_store %arg6[%c0_24, %c0_25], %32 {strides = array<i32>} : memref<8x256xf32, #tpu.memory_space<vmem>>, vector<8x256xf32>,
    } else {
    }
    return
  }
  func.func @transform_0(%arg0: i32, %arg1: i32) -> (i32, i32) {
    %c0_i32 = arith.constant 0 : i32
    return %arg0, %arg1 : i32, i32
  }
  func.func @transform_1(%arg0: i32, %arg1: i32) -> (i32, i32) {
    %c0_i32 = arith.constant 0 : i32
    %c0_i32_0 = arith.constant 0 : i32
    return %arg1, %c0_i32 : i32, i32
  }
  func.func @transform_2(%arg0: i32, %arg1: i32) -> (i32, i32) {
    %c0_i32 = arith.constant 0 : i32
    %c0_i32_0 = arith.constant 0 : i32
    return %arg0, %c0_i32 : i32, i32
  }
  func.func @transform_3(%arg0: i32, %arg1: i32) -> (i32, i32) {
    %c0_i32 = arith.constant 0 : i32
    %c0_i32_0 = arith.constant 0 : i32
    %c0_i32_1 = arith.constant 0 : i32
    return %c0_i32, %c0_i32_0 : i32, i32
  }
  func.func @transform_4(%arg0: i32, %arg1: i32) -> (i32, i32) {
    %c0_i32 = arith.constant 0 : i32
    %c0_i32_0 = arith.constant 0 : i32
    %c0_i32_1 = arith.constant 0 : i32
    return %c0_i32, %c0_i32_0 : i32, i32
  }
}

module attributes {stable_mosaic.version = 11 : i64} {
  func.func @_bn_act_kernel(%arg0: i32, %arg1: memref<104x256xf32, #tpu.memory_space<vmem>>, %arg2: memref<1x256xf32, #tpu.memory_space<vmem>>, %arg3: memref<1x256xf32, #tpu.memory_space<vmem>>, %arg4: memref<104x256xbf16, #tpu.memory_space<vmem>>) attributes {dimension_semantics = [#tpu.dimension_semantics<parallel>], iteration_bounds = array<i64: 1>, scalar_prefetch = 0 : i64, scratch_operands = 0 : i64, tpu.core_type = #tpu.core_type<tc>, window_params = [{transform_indices = @transform_0, window_bounds = array<i64: 104, 256>}, {pipeline_mode = #tpu.pipeline_mode<synchronous>, transform_indices = @transform_1, window_bounds = array<i64: 1, 256>}, {pipeline_mode = #tpu.pipeline_mode<synchronous>, transform_indices = @transform_2, window_bounds = array<i64: 1, 256>}, {transform_indices = @transform_3, window_bounds = array<i64: 104, 256>}]} {
    %c0 = arith.constant 0 : index
    %c0_0 = arith.constant 0 : index
    %0 = vector.load %arg1[%c0, %c0_0] : memref<104x256xf32, #tpu.memory_space<vmem>>, vector<104x256xf32>
    %c0_1 = arith.constant 0 : index
    %c0_2 = arith.constant 0 : index
    %1 = vector.load %arg2[%c0_1, %c0_2] : memref<1x256xf32, #tpu.memory_space<vmem>>, vector<1x256xf32>
    %2 = vector.broadcast %1 : vector<1x256xf32> to vector<104x256xf32>
    %3 = arith.mulf %0, %2 : vector<104x256xf32>
    %c0_3 = arith.constant 0 : index
    %c0_4 = arith.constant 0 : index
    %4 = vector.load %arg3[%c0_3, %c0_4] : memref<1x256xf32, #tpu.memory_space<vmem>>, vector<1x256xf32>
    %5 = vector.broadcast %4 : vector<1x256xf32> to vector<104x256xf32>
    %6 = arith.addf %3, %5 : vector<104x256xf32>
    %cst = arith.constant 0.000000e+00 : f32
    %7 = vector.broadcast %cst : f32 to vector<104x256xf32>
    %8 = arith.cmpf ogt, %6, %7 : vector<104x256xf32>
    %cst_5 = arith.constant 2.000000e-01 : f32
    %9 = vector.broadcast %cst_5 : f32 to vector<104x256xf32>
    %10 = arith.mulf %9, %6 : vector<104x256xf32>
    %11 = arith.select %8, %6, %10 : vector<104x256xi1>, vector<104x256xf32>
    %12 = arith.truncf %11 : vector<104x256xf32> to vector<104x256xbf16>
    %c0_6 = arith.constant 0 : index
    %c0_7 = arith.constant 0 : index
    %13 = vector.load %arg4[%c0_6, %c0_7] : memref<104x256xbf16, #tpu.memory_space<vmem>>, vector<104x256xbf16>
    tpu.vector_store %arg4[%c0_6, %c0_7], %12 {strides = array<i32>} : memref<104x256xbf16, #tpu.memory_space<vmem>>, vector<104x256xbf16>,
    return
  }
  func.func @transform_0(%arg0: i32) -> (i32, i32) {
    %c0_i32 = arith.constant 0 : i32
    %c0_i32_0 = arith.constant 0 : i32
    return %arg0, %c0_i32 : i32, i32
  }
  func.func @transform_1(%arg0: i32) -> (i32, i32) {
    %c0_i32 = arith.constant 0 : i32
    %c0_i32_0 = arith.constant 0 : i32
    %c0_i32_1 = arith.constant 0 : i32
    return %c0_i32, %c0_i32_0 : i32, i32
  }
  func.func @transform_2(%arg0: i32) -> (i32, i32) {
    %c0_i32 = arith.constant 0 : i32
    %c0_i32_0 = arith.constant 0 : i32
    %c0_i32_1 = arith.constant 0 : i32
    return %c0_i32, %c0_i32_0 : i32, i32
  }
  func.func @transform_3(%arg0: i32) -> (i32, i32) {
    %c0_i32 = arith.constant 0 : i32
    %c0_i32_0 = arith.constant 0 : i32
    return %arg0, %c0_i32 : i32, i32
  }
}

module attributes {stable_mosaic.version = 11 : i64} {
  func.func @_matmul_stats_kernel(%arg0: i32, %arg1: i32, %arg2: memref<32x768xbf16, #tpu.memory_space<vmem>>, %arg3: memref<768x512xbf16, #tpu.memory_space<vmem>>, %arg4: memref<32x512xf32, #tpu.memory_space<vmem>>, %arg5: memref<8x512xf32, #tpu.memory_space<vmem>>, %arg6: memref<8x512xf32, #tpu.memory_space<vmem>>, %arg7: memref<32x512xf32, #tpu.memory_space<vmem>>) attributes {dimension_semantics = [#tpu.dimension_semantics<arbitrary>, #tpu.dimension_semantics<arbitrary>], iteration_bounds = array<i64: 1, 3>, scalar_prefetch = 0 : i64, scratch_operands = 1 : i64, tpu.core_type = #tpu.core_type<tc>, window_params = [{transform_indices = @transform_0, window_bounds = array<i64: 32, 768>}, {transform_indices = @transform_1, window_bounds = array<i64: 768, 512>}, {transform_indices = @transform_2, window_bounds = array<i64: 32, 512>}, {pipeline_mode = #tpu.pipeline_mode<synchronous>, transform_indices = @transform_3, window_bounds = array<i64: 8, 512>}, {pipeline_mode = #tpu.pipeline_mode<synchronous>, transform_indices = @transform_4, window_bounds = array<i64: 8, 512>}]} {
    %c0_i32 = arith.constant 0 : i32
    %0 = arith.cmpi eq, %arg0, %c0_i32 : i32
    %c0_i32_0 = arith.constant 0 : i32
    %1 = arith.cmpi eq, %arg1, %c0_i32_0 : i32
    %2 = arith.andi %0, %1 : i1
    %3 = arith.extui %2 : i1 to i32
    %c0_i32_1 = arith.constant 0 : i32
    %4 = arith.cmpi ne, %3, %c0_i32_1 : i32
    scf.if %4 {
      %cst_12 = arith.constant 0.000000e+00 : f32
      %17 = vector.broadcast %cst_12 : f32 to vector<8x512xf32>
      %c0_13 = arith.constant 0 : index
      %c0_14 = arith.constant 0 : index
      %18 = vector.load %arg5[%c0_13, %c0_14] : memref<8x512xf32, #tpu.memory_space<vmem>>, vector<8x512xf32>
      tpu.vector_store %arg5[%c0_13, %c0_14], %17 {strides = array<i32>} : memref<8x512xf32, #tpu.memory_space<vmem>>, vector<8x512xf32>,
      %cst_15 = arith.constant 0.000000e+00 : f32
      %19 = vector.broadcast %cst_15 : f32 to vector<8x512xf32>
      %c0_16 = arith.constant 0 : index
      %c0_17 = arith.constant 0 : index
      %20 = vector.load %arg6[%c0_16, %c0_17] : memref<8x512xf32, #tpu.memory_space<vmem>>, vector<8x512xf32>
      tpu.vector_store %arg6[%c0_16, %c0_17], %19 {strides = array<i32>} : memref<8x512xf32, #tpu.memory_space<vmem>>, vector<8x512xf32>,
    } else {
    }
    %c0_i32_2 = arith.constant 0 : i32
    %5 = arith.cmpi eq, %arg1, %c0_i32_2 : i32
    %6 = arith.extui %5 : i1 to i32
    %c0_i32_3 = arith.constant 0 : i32
    %7 = arith.cmpi ne, %6, %c0_i32_3 : i32
    scf.if %7 {
      %cst_12 = arith.constant 0.000000e+00 : f32
      %17 = vector.broadcast %cst_12 : f32 to vector<32x512xf32>
      %c0_13 = arith.constant 0 : index
      %c0_14 = arith.constant 0 : index
      %18 = vector.load %arg7[%c0_13, %c0_14] : memref<32x512xf32, #tpu.memory_space<vmem>>, vector<32x512xf32>
      tpu.vector_store %arg7[%c0_13, %c0_14], %17 {strides = array<i32>} : memref<32x512xf32, #tpu.memory_space<vmem>>, vector<32x512xf32>,
    } else {
    }
    %c0 = arith.constant 0 : index
    %c0_4 = arith.constant 0 : index
    %8 = vector.load %arg7[%c0, %c0_4] : memref<32x512xf32, #tpu.memory_space<vmem>>, vector<32x512xf32>
    %c0_5 = arith.constant 0 : index
    %c0_6 = arith.constant 0 : index
    %9 = vector.load %arg2[%c0_5, %c0_6] : memref<32x768xbf16, #tpu.memory_space<vmem>>, vector<32x768xbf16>
    %c0_7 = arith.constant 0 : index
    %c0_8 = arith.constant 0 : index
    %10 = vector.load %arg3[%c0_7, %c0_8] : memref<768x512xbf16, #tpu.memory_space<vmem>>, vector<768x512xbf16>
    %cst = arith.constant dense<0.000000e+00> : vector<32x512xf32>
    %11 = tpu.matmul %9, %10, %cst {dimension_numbers = #tpu.dot_dimension_numbers<[1], [0], [0], [1], [0, 0, 1, 1], [], []>} : vector<32x768xbf16>, vector<768x512xbf16>, vector<32x512xf32> -> vector<32x512xf32>
    %12 = arith.addf %8, %11 : vector<32x512xf32>
    %c0_9 = arith.constant 0 : index
    %c0_10 = arith.constant 0 : index
    %13 = vector.load %arg7[%c0_9, %c0_10] : memref<32x512xf32, #tpu.memory_space<vmem>>, vector<32x512xf32>
    tpu.vector_store %arg7[%c0_9, %c0_10], %12 {strides = array<i32>} : memref<32x512xf32, #tpu.memory_space<vmem>>, vector<32x512xf32>,
    %c2_i32 = arith.constant 2 : i32
    %14 = arith.cmpi eq, %arg1, %c2_i32 : i32
    %15 = arith.extui %14 : i1 to i32
    %c0_i32_11 = arith.constant 0 : i32
    %16 = arith.cmpi ne, %15, %c0_i32_11 : i32
    scf.if %16 {
      %c0_12 = arith.constant 0 : index
      %c0_13 = arith.constant 0 : index
      %17 = vector.load %arg7[%c0_12, %c0_13] : memref<32x512xf32, #tpu.memory_space<vmem>>, vector<32x512xf32>
      %c0_14 = arith.constant 0 : index
      %c0_15 = arith.constant 0 : index
      %18 = vector.load %arg4[%c0_14, %c0_15] : memref<32x512xf32, #tpu.memory_space<vmem>>, vector<32x512xf32>
      tpu.vector_store %arg4[%c0_14, %c0_15], %17 {strides = array<i32>} : memref<32x512xf32, #tpu.memory_space<vmem>>, vector<32x512xf32>,
      %cst_16 = arith.constant dense<0.000000e+00> : vector<512xf32>
      %19 = vector.multi_reduction <add>, %17, %cst_16 [0] : vector<32x512xf32> to vector<512xf32>
      %20 = vector.shape_cast %19 : vector<512xf32> to vector<1x512xf32>
      %21 = arith.mulf %17, %17 : vector<32x512xf32>
      %cst_17 = arith.constant dense<0.000000e+00> : vector<512xf32>
      %22 = vector.multi_reduction <add>, %21, %cst_17 [0] : vector<32x512xf32> to vector<512xf32>
      %23 = vector.shape_cast %22 : vector<512xf32> to vector<1x512xf32>
      %c0_18 = arith.constant 0 : index
      %c0_19 = arith.constant 0 : index
      %24 = vector.load %arg5[%c0_18, %c0_19] : memref<8x512xf32, #tpu.memory_space<vmem>>, vector<8x512xf32>
      %25 = vector.shape_cast %20 : vector<1x512xf32> to vector<1x512xf32>
      %26 = vector.broadcast %25 : vector<1x512xf32> to vector<8x512xf32>
      %27 = arith.addf %24, %26 : vector<8x512xf32>
      %c0_20 = arith.constant 0 : index
      %c0_21 = arith.constant 0 : index
      %28 = vector.load %arg5[%c0_20, %c0_21] : memref<8x512xf32, #tpu.memory_space<vmem>>, vector<8x512xf32>
      tpu.vector_store %arg5[%c0_20, %c0_21], %27 {strides = array<i32>} : memref<8x512xf32, #tpu.memory_space<vmem>>, vector<8x512xf32>,
      %c0_22 = arith.constant 0 : index
      %c0_23 = arith.constant 0 : index
      %29 = vector.load %arg6[%c0_22, %c0_23] : memref<8x512xf32, #tpu.memory_space<vmem>>, vector<8x512xf32>
      %30 = vector.shape_cast %23 : vector<1x512xf32> to vector<1x512xf32>
      %31 = vector.broadcast %30 : vector<1x512xf32> to vector<8x512xf32>
      %32 = arith.addf %29, %31 : vector<8x512xf32>
      %c0_24 = arith.constant 0 : index
      %c0_25 = arith.constant 0 : index
      %33 = vector.load %arg6[%c0_24, %c0_25] : memref<8x512xf32, #tpu.memory_space<vmem>>, vector<8x512xf32>
      tpu.vector_store %arg6[%c0_24, %c0_25], %32 {strides = array<i32>} : memref<8x512xf32, #tpu.memory_space<vmem>>, vector<8x512xf32>,
    } else {
    }
    return
  }
  func.func @transform_0(%arg0: i32, %arg1: i32) -> (i32, i32) {
    %c0_i32 = arith.constant 0 : i32
    return %arg0, %arg1 : i32, i32
  }
  func.func @transform_1(%arg0: i32, %arg1: i32) -> (i32, i32) {
    %c0_i32 = arith.constant 0 : i32
    %c0_i32_0 = arith.constant 0 : i32
    return %arg1, %c0_i32 : i32, i32
  }
  func.func @transform_2(%arg0: i32, %arg1: i32) -> (i32, i32) {
    %c0_i32 = arith.constant 0 : i32
    %c0_i32_0 = arith.constant 0 : i32
    return %arg0, %c0_i32 : i32, i32
  }
  func.func @transform_3(%arg0: i32, %arg1: i32) -> (i32, i32) {
    %c0_i32 = arith.constant 0 : i32
    %c0_i32_0 = arith.constant 0 : i32
    %c0_i32_1 = arith.constant 0 : i32
    return %c0_i32, %c0_i32_0 : i32, i32
  }
  func.func @transform_4(%arg0: i32, %arg1: i32) -> (i32, i32) {
    %c0_i32 = arith.constant 0 : i32
    %c0_i32_0 = arith.constant 0 : i32
    %c0_i32_1 = arith.constant 0 : i32
    return %c0_i32, %c0_i32_0 : i32, i32
  }
}

module attributes {stable_mosaic.version = 11 : i64} {
  func.func @_bn_act_kernel(%arg0: i32, %arg1: memref<32x512xf32, #tpu.memory_space<vmem>>, %arg2: memref<1x512xf32, #tpu.memory_space<vmem>>, %arg3: memref<1x512xf32, #tpu.memory_space<vmem>>, %arg4: memref<32x512xbf16, #tpu.memory_space<vmem>>) attributes {dimension_semantics = [#tpu.dimension_semantics<parallel>], iteration_bounds = array<i64: 1>, scalar_prefetch = 0 : i64, scratch_operands = 0 : i64, tpu.core_type = #tpu.core_type<tc>, window_params = [{transform_indices = @transform_0, window_bounds = array<i64: 32, 512>}, {pipeline_mode = #tpu.pipeline_mode<synchronous>, transform_indices = @transform_1, window_bounds = array<i64: 1, 512>}, {pipeline_mode = #tpu.pipeline_mode<synchronous>, transform_indices = @transform_2, window_bounds = array<i64: 1, 512>}, {transform_indices = @transform_3, window_bounds = array<i64: 32, 512>}]} {
    %c0 = arith.constant 0 : index
    %c0_0 = arith.constant 0 : index
    %0 = vector.load %arg1[%c0, %c0_0] : memref<32x512xf32, #tpu.memory_space<vmem>>, vector<32x512xf32>
    %c0_1 = arith.constant 0 : index
    %c0_2 = arith.constant 0 : index
    %1 = vector.load %arg2[%c0_1, %c0_2] : memref<1x512xf32, #tpu.memory_space<vmem>>, vector<1x512xf32>
    %2 = vector.broadcast %1 : vector<1x512xf32> to vector<32x512xf32>
    %3 = arith.mulf %0, %2 : vector<32x512xf32>
    %c0_3 = arith.constant 0 : index
    %c0_4 = arith.constant 0 : index
    %4 = vector.load %arg3[%c0_3, %c0_4] : memref<1x512xf32, #tpu.memory_space<vmem>>, vector<1x512xf32>
    %5 = vector.broadcast %4 : vector<1x512xf32> to vector<32x512xf32>
    %6 = arith.addf %3, %5 : vector<32x512xf32>
    %cst = arith.constant 0.000000e+00 : f32
    %7 = vector.broadcast %cst : f32 to vector<32x512xf32>
    %8 = arith.cmpf ogt, %6, %7 : vector<32x512xf32>
    %cst_5 = arith.constant 2.000000e-01 : f32
    %9 = vector.broadcast %cst_5 : f32 to vector<32x512xf32>
    %10 = arith.mulf %9, %6 : vector<32x512xf32>
    %11 = arith.select %8, %6, %10 : vector<32x512xi1>, vector<32x512xf32>
    %12 = arith.truncf %11 : vector<32x512xf32> to vector<32x512xbf16>
    %c0_6 = arith.constant 0 : index
    %c0_7 = arith.constant 0 : index
    %13 = vector.load %arg4[%c0_6, %c0_7] : memref<32x512xbf16, #tpu.memory_space<vmem>>, vector<32x512xbf16>
    tpu.vector_store %arg4[%c0_6, %c0_7], %12 {strides = array<i32>} : memref<32x512xbf16, #tpu.memory_space<vmem>>, vector<32x512xbf16>,
    return
  }
  func.func @transform_0(%arg0: i32) -> (i32, i32) {
    %c0_i32 = arith.constant 0 : i32
    %c0_i32_0 = arith.constant 0 : i32
    return %arg0, %c0_i32 : i32, i32
  }
  func.func @transform_1(%arg0: i32) -> (i32, i32) {
    %c0_i32 = arith.constant 0 : i32
    %c0_i32_0 = arith.constant 0 : i32
    %c0_i32_1 = arith.constant 0 : i32
    return %c0_i32, %c0_i32_0 : i32, i32
  }
  func.func @transform_2(%arg0: i32) -> (i32, i32) {
    %c0_i32 = arith.constant 0 : i32
    %c0_i32_0 = arith.constant 0 : i32
    %c0_i32_1 = arith.constant 0 : i32
    return %c0_i32, %c0_i32_0 : i32, i32
  }
  func.func @transform_3(%arg0: i32) -> (i32, i32) {
    %c0_i32 = arith.constant 0 : i32
    %c0_i32_0 = arith.constant 0 : i32
    return %arg0, %c0_i32 : i32, i32
  }
}

module attributes {stable_mosaic.version = 11 : i64} {
  func.func @_matmul_act_kernel(%arg0: i32, %arg1: i32, %arg2: memref<8x1024xbf16, #tpu.memory_space<vmem>>, %arg3: memref<1024x128xbf16, #tpu.memory_space<vmem>>, %arg4: memref<8x128xf32, #tpu.memory_space<vmem>>, %arg5: memref<8x128xf32, #tpu.memory_space<vmem>>) attributes {dimension_semantics = [#tpu.dimension_semantics<parallel>, #tpu.dimension_semantics<arbitrary>], iteration_bounds = array<i64: 1, 8>, scalar_prefetch = 0 : i64, scratch_operands = 1 : i64, tpu.core_type = #tpu.core_type<tc>, window_params = [{transform_indices = @transform_0, window_bounds = array<i64: 8, 1024>}, {transform_indices = @transform_1, window_bounds = array<i64: 1024, 128>}, {transform_indices = @transform_2, window_bounds = array<i64: 8, 128>}]} {
    %c0_i32 = arith.constant 0 : i32
    %0 = arith.cmpi eq, %arg1, %c0_i32 : i32
    %1 = arith.extui %0 : i1 to i32
    %c0_i32_0 = arith.constant 0 : i32
    %2 = arith.cmpi ne, %1, %c0_i32_0 : i32
    scf.if %2 {
      %cst_9 = arith.constant 0.000000e+00 : f32
      %12 = vector.broadcast %cst_9 : f32 to vector<8x128xf32>
      %c0_10 = arith.constant 0 : index
      %c0_11 = arith.constant 0 : index
      %13 = vector.load %arg5[%c0_10, %c0_11] : memref<8x128xf32, #tpu.memory_space<vmem>>, vector<8x128xf32>
      tpu.vector_store %arg5[%c0_10, %c0_11], %12 {strides = array<i32>} : memref<8x128xf32, #tpu.memory_space<vmem>>, vector<8x128xf32>,
    } else {
    }
    %c0 = arith.constant 0 : index
    %c0_1 = arith.constant 0 : index
    %3 = vector.load %arg5[%c0, %c0_1] : memref<8x128xf32, #tpu.memory_space<vmem>>, vector<8x128xf32>
    %c0_2 = arith.constant 0 : index
    %c0_3 = arith.constant 0 : index
    %4 = vector.load %arg2[%c0_2, %c0_3] : memref<8x1024xbf16, #tpu.memory_space<vmem>>, vector<8x1024xbf16>
    %c0_4 = arith.constant 0 : index
    %c0_5 = arith.constant 0 : index
    %5 = vector.load %arg3[%c0_4, %c0_5] : memref<1024x128xbf16, #tpu.memory_space<vmem>>, vector<1024x128xbf16>
    %cst = arith.constant dense<0.000000e+00> : vector<8x128xf32>
    %6 = tpu.matmul %4, %5, %cst {dimension_numbers = #tpu.dot_dimension_numbers<[1], [0], [0], [1], [0, 0, 1, 1], [], []>} : vector<8x1024xbf16>, vector<1024x128xbf16>, vector<8x128xf32> -> vector<8x128xf32>
    %7 = arith.addf %3, %6 : vector<8x128xf32>
    %c0_6 = arith.constant 0 : index
    %c0_7 = arith.constant 0 : index
    %8 = vector.load %arg5[%c0_6, %c0_7] : memref<8x128xf32, #tpu.memory_space<vmem>>, vector<8x128xf32>
    tpu.vector_store %arg5[%c0_6, %c0_7], %7 {strides = array<i32>} : memref<8x128xf32, #tpu.memory_space<vmem>>, vector<8x128xf32>,
    %c7_i32 = arith.constant 7 : i32
    %9 = arith.cmpi eq, %arg1, %c7_i32 : i32
    %10 = arith.extui %9 : i1 to i32
    %c0_i32_8 = arith.constant 0 : i32
    %11 = arith.cmpi ne, %10, %c0_i32_8 : i32
    scf.if %11 {
      %c0_9 = arith.constant 0 : index
      %c0_10 = arith.constant 0 : index
      %12 = vector.load %arg5[%c0_9, %c0_10] : memref<8x128xf32, #tpu.memory_space<vmem>>, vector<8x128xf32>
      %cst_11 = arith.constant 0.000000e+00 : f32
      %13 = vector.broadcast %cst_11 : f32 to vector<8x128xf32>
      %14 = arith.subf %13, %12 : vector<8x128xf32>
      %15 = math.exp %14 : vector<8x128xf32>
      %cst_12 = arith.constant 1.000000e+00 : f32
      %16 = vector.broadcast %cst_12 : f32 to vector<8x128xf32>
      %17 = arith.addf %16, %15 : vector<8x128xf32>
      %cst_13 = arith.constant 1.000000e+00 : f32
      %18 = vector.broadcast %cst_13 : f32 to vector<8x128xf32>
      %19 = arith.divf %18, %17 : vector<8x128xf32>
      %c0_14 = arith.constant 0 : index
      %c0_15 = arith.constant 0 : index
      %20 = vector.load %arg4[%c0_14, %c0_15] : memref<8x128xf32, #tpu.memory_space<vmem>>, vector<8x128xf32>
      tpu.vector_store %arg4[%c0_14, %c0_15], %19 {strides = array<i32>} : memref<8x128xf32, #tpu.memory_space<vmem>>, vector<8x128xf32>,
    } else {
    }
    return
  }
  func.func @transform_0(%arg0: i32, %arg1: i32) -> (i32, i32) {
    %c0_i32 = arith.constant 0 : i32
    return %arg0, %arg1 : i32, i32
  }
  func.func @transform_1(%arg0: i32, %arg1: i32) -> (i32, i32) {
    %c0_i32 = arith.constant 0 : i32
    %c0_i32_0 = arith.constant 0 : i32
    return %arg1, %c0_i32 : i32, i32
  }
  func.func @transform_2(%arg0: i32, %arg1: i32) -> (i32, i32) {
    %c0_i32 = arith.constant 0 : i32
    %c0_i32_0 = arith.constant 0 : i32
    return %arg0, %c0_i32 : i32, i32
  }
}

</mosaic_0001>

<bundles_post_ra>
// kernel: discriminator_cnn.6
= control target key start
LH: loop header
LB: loop body
LE: loop exit
PB: predicated region body
PF: predicated region fallthrough
CT: control target
= control target key end

     0   :  { %v1599_v0 = vmov 0.0   ;;  %vm1600_vm0 = vmmov 0   ;;  %vm294_vm1 = vcmask 130048   ;;  %s1846_s1 = inlined_call_operand.vmem [shape: bf16[16,128], index: 1, kind: input, shape index: {}]   ;;  %s1847_s0 = inlined_call_operand.vmem [shape: bf16[392,16], index: 0, kind: input, shape index: {}]   ;;  %s1848_s2 = inlined_call_operand.vmem [shape: bf16[392,128], index: 2, kind: output, shape index: {}]  }
   0x1   :  { %1467 = vmatprep.subr.bf16.mxu0 %v1599_v0  ;;  %v1573_v1 = vld [vmem:[%s1846_s1] sm:$0xff]   ;;  %1469 = vmatprep.mubr.msk.bf16.mxu0 %vm1600_vm0, %v1599_v0  ;;  %v1575_v3 = vld [vmem:[%s1847_s0 + $0x68] sm:$0xff]   ;;  %v1577_v5 = vld [vmem:[%s1847_s0 + $0x70] sm:$0xff]  }
   0x2   :  { %v1574_v2 = vld [vmem:[%s1847_s0] sm:$0xff]   ;;  %1569 = vmatprep.subr.bf16.mxu1 %v1599_v0  ;;  %1521 = vmatprep.mubr.msk.bf16.mxu1 %vm1600_vm0, %v1599_v0  ;;  %v1576_v4 = vld [vmem:[%s1847_s0 + $0x8] sm:$0xff]   ;;  %v1578_v6 = vld [vmem:[%s1847_s0 + $0x10] sm:$0xff]  }
   0x3   :  { %1468 = vmatpush3.bf16.msra.mxu0 %v1573_v1  ;;  %1570 = vmatpush3.bf16.msra.mxu1 %v1573_v1  ;;  %v1579_v7 = vld [vmem:[%s1847_s0 + $0x78] sm:$0xff]   ;;  %v1581_v9 = vld [vmem:[%s1847_s0 + $0x80] sm:$0xff]   ;;  %v1583_v11 = vld [vmem:[%s1847_s0 + $0x88] sm:$0xff]  }
   0x4   :  { %v1580_v8 = vld [vmem:[%s1847_s0 + $0x18] sm:$0xff]   ;;  %v1582_v10 = vld [vmem:[%s1847_s0 + $0x20] sm:$0xff]   ;;  %v1584_v12 = vld [vmem:[%s1847_s0 + $0x28] sm:$0xff]  }
   0x5   :  { %v1585_v13 = vld [vmem:[%s1847_s0 + $0x90] sm:$0xff]   ;;  %v1587_v15 = vld [vmem:[%s1847_s0 + $0x98] sm:$0xff]   ;;  %v1589_v17 = vld [vmem:[%s1847_s0 + $0xa0] sm:$0xff]  }
   0x6   :  { %1470 = vmatmul.mubr.msk.bf16.vlgmr.msra.gmra.mxu0 %vm294_vm1, %v1574_v2  ;;  %1522 = vmatmul.mubr.msk.bf16.vlgmr.msra.gmra.mxu1 %vm294_vm1, %v1575_v3  ;;  %v1586_v14 = vld [vmem:[%s1847_s0 + $0x30] sm:$0xff]   ;;  %v1588_v16 = vld [vmem:[%s1847_s0 + $0x38] sm:$0xff]   ;;  %v1590_v18 = vld [vmem:[%s1847_s0 + $0x40] sm:$0xff]  }
   0x7   :  { %1473 = vmatprep.mubr.msk.bf16.mxu0 %vm1600_vm0, %v1599_v0  ;;  %1525 = vmatprep.mubr.msk.bf16.mxu1 %vm1600_vm0, %v1599_v0  ;;  %v1591_v19 = vld [vmem:[%s1847_s0 + $0xa8] sm:$0xff]   ;;  %v1593_v21 = vld [vmem:[%s1847_s0 + $0xb0] sm:$0xff]   ;;  %v1595_v23 = vld [vmem:[%s1847_s0 + $0xb8] sm:$0xff]  }
   0x8   :  { %v1592_v20 = vld [vmem:[%s1847_s0 + $0x48] sm:$0xff]   ;;  %v1594_v22 = vld [vmem:[%s1847_s0 + $0x50] sm:$0xff]   ;;  %v1596_v24 = vld [vmem:[%s1847_s0 + $0x58] sm:$0xff]  }
   0x9   :  { %v1597_v25 = vld [vmem:[%s1847_s0 + $0xc0] ss:$0 sps:$4 sm:$0xff]  }
   0xa   :  { %v1598_v26 = vld [vmem:[%s1847_s0 + $0x60] sm:$0xff]  }
   0xe   :  { %1474 = vmatmul.mubr.msk.bf16.gmra.mxu0 %vm294_vm1, %v1576_v4  ;;  %1526 = vmatmul.mubr.msk.bf16.gmra.mxu1 %vm294_vm1, %v1577_v5 }
   0xf   :  { %1477 = vmatprep.mubr.msk.bf16.mxu0 %vm1600_vm0, %v1599_v0  ;;  %1529 = vmatprep.mubr.msk.bf16.mxu1 %vm1600_vm0, %v1599_v0 }
  0x16   :  { %1478 = vmatmul.mubr.msk.bf16.gmra.mxu0 %vm294_vm1, %v1578_v6  ;;  %1530 = vmatmul.mubr.msk.bf16.gmra.mxu1 %vm294_vm1, %v1579_v7 }
  0x17   :  { %1481 = vmatprep.mubr.msk.bf16.mxu0 %vm1600_vm0, %v1599_v0  ;;  %1533 = vmatprep.mubr.msk.bf16.mxu1 %vm1600_vm0, %v1599_v0 }
  0x1e   :  { %1482 = vmatmul.mubr.msk.bf16.gmra.mxu0 %vm294_vm1, %v1580_v8  ;;  %1534 = vmatmul.mubr.msk.bf16.gmra.mxu1 %vm294_vm1, %v1581_v9 }
  0x1f   :  { %1485 = vmatprep.mubr.msk.bf16.mxu0 %vm1600_vm0, %v1599_v0  ;;  %1537 = vmatprep.mubr.msk.bf16.mxu1 %vm1600_vm0, %v1599_v0 }
  0x26   :  { %1486 = vmatmul.mubr.msk.bf16.gmra.mxu0 %vm294_vm1, %v1582_v10  ;;  %1538 = vmatmul.mubr.msk.bf16.gmra.mxu1 %vm294_vm1, %v1583_v11 }
  0x27   :  { %1489 = vmatprep.mubr.msk.bf16.mxu0 %vm1600_vm0, %v1599_v0  ;;  %1541 = vmatprep.mubr.msk.bf16.mxu1 %vm1600_vm0, %v1599_v0 }
  0x2e   :  { %1490 = vmatmul.mubr.msk.bf16.gmra.mxu0 %vm294_vm1, %v1584_v12  ;;  %1542 = vmatmul.mubr.msk.bf16.gmra.mxu1 %vm294_vm1, %v1585_v13 }
  0x2f   :  { %1493 = vmatprep.mubr.msk.bf16.mxu0 %vm1600_vm0, %v1599_v0  ;;  %1545 = vmatprep.mubr.msk.bf16.mxu1 %vm1600_vm0, %v1599_v0 }
  0x36   :  { %1494 = vmatmul.mubr.msk.bf16.gmra.mxu0 %vm294_vm1, %v1586_v14  ;;  %1546 = vmatmul.mubr.msk.bf16.gmra.mxu1 %vm294_vm1, %v1587_v15 }
  0x37   :  { %1497 = vmatprep.mubr.msk.bf16.mxu0 %vm1600_vm0, %v1599_v0  ;;  %1549 = vmatprep.mubr.msk.bf16.mxu1 %vm1600_vm0, %v1599_v0 }
  0x3e   :  { %1498 = vmatmul.mubr.msk.bf16.gmra.mxu0 %vm294_vm1, %v1588_v16  ;;  %1550 = vmatmul.mubr.msk.bf16.gmra.mxu1 %vm294_vm1, %v1589_v17 }
  0x3f   :  { %1501 = vmatprep.mubr.msk.bf16.mxu0 %vm1600_vm0, %v1599_v0  ;;  %1553 = vmatprep.mubr.msk.bf16.mxu1 %vm1600_vm0, %v1599_v0 }
  0x46   :  { %1502 = vmatmul.mubr.msk.bf16.gmra.mxu0 %vm294_vm1, %v1590_v18  ;;  %1554 = vmatmul.mubr.msk.bf16.gmra.mxu1 %vm294_vm1, %v1591_v19 }
  0x47   :  { %1505 = vmatprep.mubr.msk.bf16.mxu0 %vm1600_vm0, %v1599_v0  ;;  %1557 = vmatprep.mubr.msk.bf16.mxu1 %vm1600_vm0, %v1599_v0 }
  0x4e   :  { %1506 = vmatmul.mubr.msk.bf16.gmra.mxu0 %vm294_vm1, %v1592_v20  ;;  %1558 = vmatmul.mubr.msk.bf16.gmra.mxu1 %vm294_vm1, %v1593_v21 }
  0x4f   :  { %1509 = vmatprep.mubr.msk.bf16.mxu0 %vm1600_vm0, %v1599_v0  ;;  %1561 = vmatprep.mubr.msk.bf16.mxu1 %vm1600_vm0, %v1599_v0 }
  0x56   :  { %1510 = vmatmul.mubr.msk.bf16.gmra.mxu0 %vm294_vm1, %v1594_v22  ;;  %1562 = vmatmul.mubr.msk.bf16.gmra.mxu1 %vm294_vm1, %v1595_v23 }
  0x57   :  { %1513 = vmatprep.mubr.msk.bf16.mxu0 %vm1600_vm0, %v1599_v0  ;;  %1565 = vmatprep.mubr.msk.bf16.mxu1 %vm1600_vm0, %v1599_v0 }
  0x5e   :  { %1514 = vmatmul.mubr.msk.bf16.gmra.mxu0 %vm294_vm1, %v1596_v24  ;;  %1566 = vmatmul.mubr.msk.bf16.gmra.mxu1 %vm294_vm1, %v1597_v25 }
  0x5f   :  { %1517 = vmatprep.mubr.msk.bf16.mxu0 %vm1600_vm0, %v1599_v0 }
  0x66   :  { %1518 = vmatmul.mubr.msk.bf16.gmra.mxu0 %vm294_vm1, %v1598_v26 }
  0xc6   :  { %v404_v27 = vpop.f32.mrf.mxu0  ;;  %v508_v28 = vpop.f32.mrf.mxu1 }
  0xc7   :  { %vm778_vm2 = vcmp.gt.f32.partialorder %v508_v28, 0.0  ;;  %v827_v29 = vmul.f32 0.2, %v508_v28  ;;  %v801_v32 = vmul.f32 0.2, %v404_v27  ;;  %vm752_vm3 = vcmp.gt.f32.partialorder %v404_v27, 0.0 }
  0xc8   :  { %v1471_v30 = vpop.f32.mrf.mxu0  ;;  %v1523_v31 = vpop.f32.mrf.mxu1 }
  0xc9   :  { %v876_v34 = vsel %vm778_vm2, %v508_v28, %v827_v29  ;;  %v850_v40 = vsel %vm752_vm3, %v404_v27, %v801_v32 }
  0xca   :  { %v407_v33 = vpop.f32.mrf.mxu0  ;;  %v511_v35 = vpop.f32.mrf.mxu1 }
  0xcb   :  { %vm753_vm4 = vcmp.gt.f32.partialorder %v407_v33, 0.0  ;;  %v802_v36 = vmul.f32 0.2, %v407_v33  ;;  %vm779_vm5 = vcmp.gt.f32.partialorder %v511_v35, 0.0  ;;  %v828_v37 = vmul.f32 0.2, %v511_v35 }
  0xcc   :  { %v1472_v38 = vpop.f32.mrf.mxu0  ;;  %v1524_v39 = vpop.f32.mrf.mxu1 }
  0xcd   :  { %v851_v41 = vsel %vm753_vm4, %v407_v33, %v802_v36  ;;  %v877_v42 = vsel %vm779_vm5, %v511_v35, %v828_v37 }
  0xce   :  { %v1301_v43 = vpack.c.bf16 %v851_v41, %v850_v40  ;;  %v412_v44 = vpop.f32.mrf.mxu0  ;;  %v1366_v45 = vpack.c.bf16 %v877_v42, %v876_v34  ;;  %v516_v46 = vpop.f32.mrf.mxu1 }
  0xcf   :  { %vm780_vm6 = vcmp.gt.f32.partialorder %v516_v46, 0.0  ;;  %v829_v47 = vmul.f32 0.2, %v516_v46  ;;  %v803_v50 = vmul.f32 0.2, %v412_v44  ;;  %vm754_vm7 = vcmp.gt.f32.partialorder %v412_v44, 0.0 }
  0xd0   :  { %1302 = vst [vmem:[%s1848_s2] sm:$0xff] %v1301_v43   ;;  %v1475_v48 = vpop.f32.mrf.mxu0  ;;  %1430 = vst [vmem:[%s1848_s2 + $0x68] sm:$0xff] %v1366_v45   ;;  %v1527_v49 = vpop.f32.mrf.mxu1 }
  0xd1   :  { %v878_v52 = vsel %vm780_vm6, %v516_v46, %v829_v47  ;;  %v852_v58 = vsel %vm754_vm7, %v412_v44, %v803_v50 }
  0xd2   :  { %v415_v51 = vpop.f32.mrf.mxu0  ;;  %v519_v53 = vpop.f32.mrf.mxu1 }
  0xd3   :  { %vm755_vm8 = vcmp.gt.f32.partialorder %v415_v51, 0.0  ;;  %v804_v54 = vmul.f32 0.2, %v415_v51  ;;  %vm781_vm9 = vcmp.gt.f32.partialorder %v519_v53, 0.0  ;;  %v830_v55 = vmul.f32 0.2, %v519_v53 }
  0xd4   :  { %v1476_v56 = vpop.f32.mrf.mxu0  ;;  %v1528_v57 = vpop.f32.mrf.mxu1 }
  0xd5   :  { %v853_v59 = vsel %vm755_vm8, %v415_v51, %v804_v54  ;;  %v879_v60 = vsel %vm781_vm9, %v519_v53, %v830_v55 }
  0xd6   :  { %v1306_v61 = vpack.c.bf16 %v853_v59, %v852_v58  ;;  %v420_v62 = vpop.f32.mrf.mxu0  ;;  %v1371_v63 = vpack.c.bf16 %v879_v60, %v878_v52  ;;  %v524_v0 = vpop.f32.mrf.mxu1 }
  0xd7   :  { %vm782_vm10 = vcmp.gt.f32.partialorder %v524_v0, 0.0  ;;  %v831_v1 = vmul.f32 0.2, %v524_v0  ;;  %v805_v4 = vmul.f32 0.2, %v420_v62  ;;  %vm756_vm11 = vcmp.gt.f32.partialorder %v420_v62, 0.0 }
  0xd8   :  { %1418 = vst [vmem:[%s1848_s2 + $0x8] sm:$0xff] %v1306_v61   ;;  %v1479_v2 = vpop.f32.mrf.mxu0  ;;  %1431 = vst [vmem:[%s1848_s2 + $0x70] sm:$0xff] %v1371_v63   ;;  %v1531_v3 = vpop.f32.mrf.mxu1 }
  0xd9   :  { %v880_v6 = vsel %vm782_vm10, %v524_v0, %v831_v1  ;;  %v854_v12 = vsel %vm756_vm11, %v420_v62, %v805_v4 }
  0xda   :  { %v423_v5 = vpop.f32.mrf.mxu0  ;;  %v527_v7 = vpop.f32.mrf.mxu1 }
  0xdb   :  { %vm757_vm12 = vcmp.gt.f32.partialorder %v423_v5, 0.0  ;;  %v806_v8 = vmul.f32 0.2, %v423_v5  ;;  %vm783_vm13 = vcmp.gt.f32.partialorder %v527_v7, 0.0  ;;  %v832_v9 = vmul.f32 0.2, %v527_v7 }
  0xdc   :  { %v1480_v10 = vpop.f32.mrf.mxu0  ;;  %v1532_v11 = vpop.f32.mrf.mxu1 }
  0xdd   :  { %v855_v13 = vsel %vm757_vm12, %v423_v5, %v806_v8  ;;  %v881_v14 = vsel %vm783_vm13, %v527_v7, %v832_v9 }
  0xde   :  { %v1311_v15 = vpack.c.bf16 %v855_v13, %v854_v12  ;;  %v428_v16 = vpop.f32.mrf.mxu0  ;;  %v1376_v17 = vpack.c.bf16 %v881_v14, %v880_v6  ;;  %v532_v18 = vpop.f32.mrf.mxu1 }
  0xdf   :  { %vm784_vm14 = vcmp.gt.f32.partialorder %v532_v18, 0.0  ;;  %v833_v19 = vmul.f32 0.2, %v532_v18  ;;  %v807_v22 = vmul.f32 0.2, %v428_v16  ;;  %vm758_vm15 = vcmp.gt.f32.partialorder %v428_v16, 0.0 }
  0xe0   :  { %1419 = vst [vmem:[%s1848_s2 + $0x10] sm:$0xff] %v1311_v15   ;;  %v1483_v20 = vpop.f32.mrf.mxu0  ;;  %1432 = vst [vmem:[%s1848_s2 + $0x78] sm:$0xff] %v1376_v17   ;;  %v1535_v21 = vpop.f32.mrf.mxu1 }
  0xe1   :  { %v882_v24 = vsel %vm784_vm14, %v532_v18, %v833_v19  ;;  %v856_v30 = vsel %vm758_vm15, %v428_v16, %v807_v22 }
  0xe2   :  { %v431_v23 = vpop.f32.mrf.mxu0  ;;  %v535_v25 = vpop.f32.mrf.mxu1 }
  0xe3   :  { %vm759_vm0 = vcmp.gt.f32.partialorder %v431_v23, 0.0  ;;  %v808_v26 = vmul.f32 0.2, %v431_v23  ;;  %vm785_vm1 = vcmp.gt.f32.partialorder %v535_v25, 0.0  ;;  %v834_v27 = vmul.f32 0.2, %v535_v25 }
  0xe4   :  { %v1484_v28 = vpop.f32.mrf.mxu0  ;;  %v1536_v29 = vpop.f32.mrf.mxu1 }
  0xe5   :  { %v857_v31 = vsel %vm759_vm0, %v431_v23, %v808_v26  ;;  %v883_v32 = vsel %vm785_vm1, %v535_v25, %v834_v27 }
  0xe6   :  { %v1316_v33 = vpack.c.bf16 %v857_v31, %v856_v30  ;;  %v436_v34 = vpop.f32.mrf.mxu0  ;;  %v1381_v35 = vpack.c.bf16 %v883_v32, %v882_v24  ;;  %v540_v36 = vpop.f32.mrf.mxu1 }
  0xe7   :  { %vm786_vm2 = vcmp.gt.f32.partialorder %v540_v36, 0.0  ;;  %v835_v37 = vmul.f32 0.2, %v540_v36  ;;  %v809_v40 = vmul.f32 0.2, %v436_v34  ;;  %vm760_vm3 = vcmp.gt.f32.partialorder %v436_v34, 0.0 }
  0xe8   :  { %1420 = vst [vmem:[%s1848_s2 + $0x18] sm:$0xff] %v1316_v33   ;;  %v1487_v38 = vpop.f32.mrf.mxu0  ;;  %1433 = vst [vmem:[%s1848_s2 + $0x80] sm:$0xff] %v1381_v35   ;;  %v1539_v39 = vpop.f32.mrf.mxu1 }
  0xe9   :  { %v884_v42 = vsel %vm786_vm2, %v540_v36, %v835_v37  ;;  %v858_v48 = vsel %vm760_vm3, %v436_v34, %v809_v40 }
  0xea   :  { %v439_v41 = vpop.f32.mrf.mxu0  ;;  %v543_v43 = vpop.f32.mrf.mxu1 }
  0xeb   :  { %vm761_vm4 = vcmp.gt.f32.partialorder %v439_v41, 0.0  ;;  %v810_v44 = vmul.f32 0.2, %v439_v41  ;;  %vm787_vm5 = vcmp.gt.f32.partialorder %v543_v43, 0.0  ;;  %v836_v45 = vmul.f32 0.2, %v543_v43 }
  0xec   :  { %v1488_v46 = vpop.f32.mrf.mxu0  ;;  %v1540_v47 = vpop.f32.mrf.mxu1 }
  0xed   :  { %v859_v49 = vsel %vm761_vm4, %v439_v41, %v810_v44  ;;  %v885_v50 = vsel %vm787_vm5, %v543_v43, %v836_v45 }
  0xee   :  { %v1321_v51 = vpack.c.bf16 %v859_v49, %v858_v48  ;;  %v444_v52 = vpop.f32.mrf.mxu0  ;;  %v1386_v53 = vpack.c.bf16 %v885_v50, %v884_v42  ;;  %v548_v54 = vpop.f32.mrf.mxu1 }
  0xef   :  { %vm788_vm6 = vcmp.gt.f32.partialorder %v548_v54, 0.0  ;;  %v837_v55 = vmul.f32 0.2, %v548_v54  ;;  %v811_v58 = vmul.f32 0.2, %v444_v52  ;;  %vm762_vm7 = vcmp.gt.f32.partialorder %v444_v52, 0.0 }
  0xf0   :  { %1421 = vst [vmem:[%s1848_s2 + $0x20] sm:$0xff] %v1321_v51   ;;  %v1491_v56 = vpop.f32.mrf.mxu0  ;;  %1434 = vst [vmem:[%s1848_s2 + $0x88] sm:$0xff] %v1386_v53   ;;  %v1543_v57 = vpop.f32.mrf.mxu1 }
  0xf1   :  { %v886_v60 = vsel %vm788_vm6, %v548_v54, %v837_v55  ;;  %v860_v2 = vsel %vm762_vm7, %v444_v52, %v811_v58 }
  0xf2   :  { %v447_v59 = vpop.f32.mrf.mxu0  ;;  %v551_v61 = vpop.f32.mrf.mxu1 }
  0xf3   :  { %vm763_vm8 = vcmp.gt.f32.partialorder %v447_v59, 0.0  ;;  %v812_v62 = vmul.f32 0.2, %v447_v59  ;;  %vm789_vm9 = vcmp.gt.f32.partialorder %v551_v61, 0.0  ;;  %v838_v63 = vmul.f32 0.2, %v551_v61 }
  0xf4   :  { %v1492_v0 = vpop.f32.mrf.mxu0  ;;  %v1544_v1 = vpop.f32.mrf.mxu1 }
  0xf5   :  { %v861_v3 = vsel %vm763_vm8, %v447_v59, %v812_v62  ;;  %v887_v4 = vsel %vm789_vm9, %v551_v61, %v838_v63 }
  0xf6   :  { %v1326_v5 = vpack.c.bf16 %v861_v3, %v860_v2  ;;  %v452_v6 = vpop.f32.mrf.mxu0  ;;  %v1391_v7 = vpack.c.bf16 %v887_v4, %v886_v60  ;;  %v556_v8 = vpop.f32.mrf.mxu1 }
  0xf7   :  { %vm790_vm10 = vcmp.gt.f32.partialorder %v556_v8, 0.0  ;;  %v839_v9 = vmul.f32 0.2, %v556_v8  ;;  %v813_v12 = vmul.f32 0.2, %v452_v6  ;;  %vm764_vm11 = vcmp.gt.f32.partialorder %v452_v6, 0.0 }
  0xf8   :  { %1422 = vst [vmem:[%s1848_s2 + $0x28] sm:$0xff] %v1326_v5   ;;  %v1495_v10 = vpop.f32.mrf.mxu0  ;;  %1435 = vst [vmem:[%s1848_s2 + $0x90] sm:$0xff] %v1391_v7   ;;  %v1547_v11 = vpop.f32.mrf.mxu1 }
  0xf9   :  { %v888_v14 = vsel %vm790_vm10, %v556_v8, %v839_v9  ;;  %v862_v20 = vsel %vm764_vm11, %v452_v6, %v813_v12 }
  0xfa   :  { %v455_v13 = vpop.f32.mrf.mxu0  ;;  %v559_v15 = vpop.f32.mrf.mxu1 }
  0xfb   :  { %vm765_vm12 = vcmp.gt.f32.partialorder %v455_v13, 0.0  ;;  %v814_v16 = vmul.f32 0.2, %v455_v13  ;;  %vm791_vm13 = vcmp.gt.f32.partialorder %v559_v15, 0.0  ;;  %v840_v17 = vmul.f32 0.2, %v559_v15 }
  0xfc   :  { %v1496_v18 = vpop.f32.mrf.mxu0  ;;  %v1548_v19 = vpop.f32.mrf.mxu1 }
  0xfd   :  { %v863_v21 = vsel %vm765_vm12, %v455_v13, %v814_v16  ;;  %v889_v22 = vsel %vm791_vm13, %v559_v15, %v840_v17 }
  0xfe   :  { %v1331_v23 = vpack.c.bf16 %v863_v21, %v862_v20  ;;  %v460_v24 = vpop.f32.mrf.mxu0  ;;  %v1396_v25 = vpack.c.bf16 %v889_v22, %v888_v14  ;;  %v564_v26 = vpop.f32.mrf.mxu1 }
  0xff   :  { %vm792_vm14 = vcmp.gt.f32.partialorder %v564_v26, 0.0  ;;  %v841_v27 = vmul.f32 0.2, %v564_v26  ;;  %v815_v30 = vmul.f32 0.2, %v460_v24  ;;  %vm766_vm15 = vcmp.gt.f32.partialorder %v460_v24, 0.0 }
 0x100   :  { %1423 = vst [vmem:[%s1848_s2 + $0x30] sm:$0xff] %v1331_v23   ;;  %v1499_v28 = vpop.f32.mrf.mxu0  ;;  %1436 = vst [vmem:[%s1848_s2 + $0x98] sm:$0xff] %v1396_v25   ;;  %v1551_v29 = vpop.f32.mrf.mxu1 }
 0x101   :  { %v890_v32 = vsel %vm792_vm14, %v564_v26, %v841_v27  ;;  %v864_v38 = vsel %vm766_vm15, %v460_v24, %v815_v30 }
 0x102   :  { %v463_v31 = vpop.f32.mrf.mxu0  ;;  %v567_v33 = vpop.f32.mrf.mxu1 }
 0x103   :  { %vm767_vm0 = vcmp.gt.f32.partialorder %v463_v31, 0.0  ;;  %v816_v34 = vmul.f32 0.2, %v463_v31  ;;  %vm793_vm1 = vcmp.gt.f32.partialorder %v567_v33, 0.0  ;;  %v842_v35 = vmul.f32 0.2, %v567_v33 }
 0x104   :  { %v1500_v36 = vpop.f32.mrf.mxu0  ;;  %v1552_v37 = vpop.f32.mrf.mxu1 }
 0x105   :  { %v865_v39 = vsel %vm767_vm0, %v463_v31, %v816_v34  ;;  %v891_v40 = vsel %vm793_vm1, %v567_v33, %v842_v35 }
 0x106   :  { %v1336_v41 = vpack.c.bf16 %v865_v39, %v864_v38  ;;  %v468_v42 = vpop.f32.mrf.mxu0  ;;  %v1401_v43 = vpack.c.bf16 %v891_v40, %v890_v32  ;;  %v572_v44 = vpop.f32.mrf.mxu1 }
 0x107   :  { %vm794_vm2 = vcmp.gt.f32.partialorder %v572_v44, 0.0  ;;  %v843_v45 = vmul.f32 0.2, %v572_v44  ;;  %v817_v48 = vmul.f32 0.2, %v468_v42  ;;  %vm768_vm3 = vcmp.gt.f32.partialorder %v468_v42, 0.0 }
 0x108   :  { %1424 = vst [vmem:[%s1848_s2 + $0x38] sm:$0xff] %v1336_v41   ;;  %v1503_v46 = vpop.f32.mrf.mxu0  ;;  %1437 = vst [vmem:[%s1848_s2 + $0xa0] sm:$0xff] %v1401_v43   ;;  %v1555_v47 = vpop.f32.mrf.mxu1 }
 0x109   :  { %v892_v50 = vsel %vm794_vm2, %v572_v44, %v843_v45  ;;  %v866_v56 = vsel %vm768_vm3, %v468_v42, %v817_v48 }
 0x10a   :  { %v471_v49 = vpop.f32.mrf.mxu0  ;;  %v575_v51 = vpop.f32.mrf.mxu1 }
 0x10b   :  { %vm769_vm4 = vcmp.gt.f32.partialorder %v471_v49, 0.0  ;;  %v818_v52 = vmul.f32 0.2, %v471_v49  ;;  %vm795_vm5 = vcmp.gt.f32.partialorder %v575_v51, 0.0  ;;  %v844_v53 = vmul.f32 0.2, %v575_v51 }
 0x10c   :  { %v1504_v54 = vpop.f32.mrf.mxu0  ;;  %v1556_v55 = vpop.f32.mrf.mxu1 }
 0x10d   :  { %v867_v57 = vsel %vm769_vm4, %v471_v49, %v818_v52  ;;  %v893_v58 = vsel %vm795_vm5, %v575_v51, %v844_v53 }
 0x10e   :  { %v1341_v59 = vpack.c.bf16 %v867_v57, %v866_v56  ;;  %v476_v60 = vpop.f32.mrf.mxu0  ;;  %v1406_v61 = vpack.c.bf16 %v893_v58, %v892_v50  ;;  %v580_v62 = vpop.f32.mrf.mxu1 }
 0x10f   :  { %vm796_vm6 = vcmp.gt.f32.partialorder %v580_v62, 0.0  ;;  %v845_v63 = vmul.f32 0.2, %v580_v62  ;;  %v819_v2 = vmul.f32 0.2, %v476_v60  ;;  %vm770_vm7 = vcmp.gt.f32.partialorder %v476_v60, 0.0 }
 0x110   :  { %1425 = vst [vmem:[%s1848_s2 + $0x40] sm:$0xff] %v1341_v59   ;;  %v1507_v0 = vpop.f32.mrf.mxu0  ;;  %1438 = vst [vmem:[%s1848_s2 + $0xa8] sm:$0xff] %v1406_v61   ;;  %v1559_v1 = vpop.f32.mrf.mxu1 }
 0x111   :  { %v894_v4 = vsel %vm796_vm6, %v580_v62, %v845_v63  ;;  %v868_v10 = vsel %vm770_vm7, %v476_v60, %v819_v2 }
 0x112   :  { %v479_v3 = vpop.f32.mrf.mxu0  ;;  %v583_v5 = vpop.f32.mrf.mxu1 }
 0x113   :  { %vm771_vm8 = vcmp.gt.f32.partialorder %v479_v3, 0.0  ;;  %v820_v6 = vmul.f32 0.2, %v479_v3  ;;  %vm797_vm9 = vcmp.gt.f32.partialorder %v583_v5, 0.0  ;;  %v846_v7 = vmul.f32 0.2, %v583_v5 }
 0x114   :  { %v1508_v8 = vpop.f32.mrf.mxu0  ;;  %v1560_v9 = vpop.f32.mrf.mxu1 }
 0x115   :  { %v869_v11 = vsel %vm771_vm8, %v479_v3, %v820_v6  ;;  %v895_v12 = vsel %vm797_vm9, %v583_v5, %v846_v7 }
 0x116   :  { %v1346_v13 = vpack.c.bf16 %v869_v11, %v868_v10  ;;  %v484_v14 = vpop.f32.mrf.mxu0  ;;  %v1411_v15 = vpack.c.bf16 %v895_v12, %v894_v4  ;;  %v588_v16 = vpop.f32.mrf.mxu1 }
 0x117   :  { %vm798_vm10 = vcmp.gt.f32.partialorder %v588_v16, 0.0  ;;  %v847_v17 = vmul.f32 0.2, %v588_v16  ;;  %v821_v20 = vmul.f32 0.2, %v484_v14  ;;  %vm772_vm11 = vcmp.gt.f32.partialorder %v484_v14, 0.0 }
 0x118   :  { %1426 = vst [vmem:[%s1848_s2 + $0x48] sm:$0xff] %v1346_v13   ;;  %v1511_v18 = vpop.f32.mrf.mxu0  ;;  %1439 = vst [vmem:[%s1848_s2 + $0xb0] sm:$0xff] %v1411_v15   ;;  %v1563_v19 = vpop.f32.mrf.mxu1 }
 0x119   :  { %v896_v22 = vsel %vm798_vm10, %v588_v16, %v847_v17  ;;  %v870_v28 = vsel %vm772_vm11, %v484_v14, %v821_v20 }
 0x11a   :  { %v487_v21 = vpop.f32.mrf.mxu0  ;;  %v591_v23 = vpop.f32.mrf.mxu1 }
 0x11b   :  { %vm773_vm12 = vcmp.gt.f32.partialorder %v487_v21, 0.0  ;;  %v822_v24 = vmul.f32 0.2, %v487_v21  ;;  %vm799_vm13 = vcmp.gt.f32.partialorder %v591_v23, 0.0  ;;  %v848_v25 = vmul.f32 0.2, %v591_v23 }
 0x11c   :  { %v1512_v26 = vpop.f32.mrf.mxu0  ;;  %v1564_v27 = vpop.f32.mrf.mxu1 }
 0x11d   :  { %v871_v29 = vsel %vm773_vm12, %v487_v21, %v822_v24  ;;  %v897_v30 = vsel %vm799_vm13, %v591_v23, %v848_v25 }
 0x11e   :  { %v1351_v31 = vpack.c.bf16 %v871_v29, %v870_v28  ;;  %v492_v32 = vpop.f32.mrf.mxu0  ;;  %v1416_v33 = vpack.c.bf16 %v897_v30, %v896_v22  ;;  %v596_v34 = vpop.f32.mrf.mxu1 }
 0x11f   :  { %vm800_vm14 = vcmp.gt.f32.partialorder %v596_v34, 0.0  ;;  %v849_v35 = vmul.f32 0.2, %v596_v34  ;;  %v823_v38 = vmul.f32 0.2, %v492_v32  ;;  %vm774_vm15 = vcmp.gt.f32.partialorder %v492_v32, 0.0 }
 0x120   :  { %1427 = vst [vmem:[%s1848_s2 + $0x50] sm:$0xff] %v1351_v31   ;;  %v1515_v36 = vpop.f32.mrf.mxu0  ;;  %1440 = vst [vmem:[%s1848_s2 + $0xb8] sm:$0xff] %v1416_v33   ;;  %v1567_v37 = vpop.f32.mrf.mxu1 }
 0x121   :  { %v898_v39 = vsel %vm800_vm14, %v596_v34, %v849_v35  ;;  %v872_v46 = vsel %vm774_vm15, %v492_v32, %v823_v38 }
 0x122   :  { %v495_v40 = vpop.f32.mrf.mxu0  ;;  %v1297_v41 = vpack.c.bf16 %v898_v39, %v898_v39  ;;  %v599_v42 = vpop.f32.mrf.mxu1 }
 0x123   :  { %vm775_vm0 = vcmp.gt.f32.partialorder %v495_v40, 0.0  ;;  %v824_v43 = vmul.f32 0.2, %v495_v40 }
 0x124   :  { %v1516_v44 = vpop.f32.mrf.mxu0  ;;  %1144 = vst [vmem:[%s1848_s2 + $0xc0] sm:$0xf] %v1297_v41  ;;  %v1568_v45 = vpop.f32.mrf.mxu1 }
 0x125   :  { %v873_v47 = vsel %vm775_vm0, %v495_v40, %v824_v43 }
 0x126   :  { %v1356_v48 = vpack.c.bf16 %v873_v47, %v872_v46  ;;  %v500_v49 = vpop.f32.mrf.mxu0 }
 0x127   :  { %v825_v51 = vmul.f32 0.2, %v500_v49  ;;  %vm776_vm1 = vcmp.gt.f32.partialorder %v500_v49, 0.0 }
 0x128   :  { %1428 = vst [vmem:[%s1848_s2 + $0x58] sm:$0xff] %v1356_v48   ;;  %v1519_v50 = vpop.f32.mrf.mxu0 }
 0x129   :  { %v874_v55 = vsel %vm776_vm1, %v500_v49, %v825_v51 }
 0x12a   :  { %v503_v52 = vpop.f32.mrf.mxu0 }
 0x12b   :  { %vm777_vm2 = vcmp.gt.f32.partialorder %v503_v52, 0.0  ;;  %v826_v53 = vmul.f32 0.2, %v503_v52 }
 0x12c   :  { %v1520_v54 = vpop.f32.mrf.mxu0 }
 0x12d   :  { %v875_v56 = vsel %vm777_vm2, %v503_v52, %v826_v53 }
 0x12e   :  { %v1361_v57 = vpack.c.bf16 %v875_v56, %v874_v55 }
 0x130   :  { %1429 = vst [vmem:[%s1848_s2 + $0x60] sm:$0xff] %v1361_v57  }

// kernel: discriminator_cnn.8
= control target key start
LH: loop header
LB: loop body
LE: loop exit
PB: predicated region body
PF: predicated region fallthrough
CT: control target
= control target key end

     0   :  { %v42_v0 = vlaneseq  ;;  %s521_s1 = inlined_call_operand.vmem [shape: f32[1,256], index: 1, kind: input, shape index: {}]   ;;  %s522_s2 = inlined_call_operand.vmem [shape: f32[1,256], index: 2, kind: input, shape index: {}]   ;;  %s523_s0 = inlined_call_operand.vmem [shape: f32[104,256], index: 0, kind: input, shape index: {}]   ;;  %s524_s3 = inlined_call_operand.vmem [shape: bf16[104,256], index: 3, kind: output, shape index: {}]  }
   0x1   :  { %v40_v2 = vld [vmem:[%s521_s1] sm:$0x3]  ;;  %v15_v5 = vld [vmem:[%s523_s0 + $0x8] sm:$0xff]  ;;  %v16_v8 = vld [vmem:[%s523_s0 + $0x10] sm:$0xff] }
   0x2   :  { %v43_v1 = vshrl.u32 %v42_v0, 7  ;;  %v78_v3 = vld [vmem:[%s522_s2] sm:$0x3]  ;;  %v17_v9 = vld [vmem:[%s523_s0 + $0x18] sm:$0xff]  ;;  %v19_v15 = vld [vmem:[%s523_s0 + $0x28] sm:$0xff] }
   0x3   :  { %v14_v4 = vld [vmem:[%s523_s0] sm:$0xff]  ;;  %v20_v16 = vld [vmem:[%s523_s0 + $0x30] sm:$0xff]  ;;  %v21_v17 = vld [vmem:[%s523_s0 + $0x38] sm:$0xff] }
   0x4   :  { %v44_v6 = vsub.s32 0, %v43_v1  ;;  %v48_v7 = vsub.s32 1, %v43_v1  ;;  %v18_v10 = vld [vmem:[%s523_s0 + $0x20] sm:$0xff]  ;;  %v23_v45 = vld [vmem:[%s523_s0 + $0x48] sm:$0xff]  ;;  %v24_v46 = vld [vmem:[%s523_s0 + $0x50] sm:$0xff] }
   0x5   :  { %v22_v40 = vld [vmem:[%s523_s0 + $0x40] sm:$0xff]  ;;  %v25_v47 = vld [vmem:[%s523_s0 + $0x58] sm:$0xff]  ;;  %v27_v59 = vld [vmem:[%s523_s0 + $0x68] sm:$0xff] }
   0x6   :  { %v358_v11 = vrot.slane %v40_v2, %v44_v6  ;;  %v360_v12 = vrot.slane %v40_v2, %v48_v7  ;;  %v362_v13 = vrot.slane %v78_v3, %v44_v6  ;;  %v364_v14 = vrot.slane %v78_v3, %v48_v7  ;;  %v26_v58 = vld [vmem:[%s523_s0 + $0x60] sm:$0xff]  ;;  %v28_v7 = vld [vmem:[%s523_s0 + $0x70] sm:$0xff] }
   0x8   :  { %v52_v18 = vmul.f32 %v358_v11, %v14_v4  ;;  %v53_v19 = vmul.f32 %v360_v12, %v15_v5  ;;  %v54_v20 = vmul.f32 %v358_v11, %v16_v8  ;;  %v55_v21 = vmul.f32 %v360_v12, %v17_v9  ;;  %v29_v8 = vld [vmem:[%s523_s0 + $0x78] sm:$0xff] }
   0x9   :  { %v56_v22 = vmul.f32 %v358_v11, %v18_v10  ;;  %v57_v23 = vmul.f32 %v360_v12, %v19_v15  ;;  %v58_v24 = vmul.f32 %v358_v11, %v20_v16  ;;  %v59_v25 = vmul.f32 %v360_v12, %v21_v17 }
   0xa   :  { %v90_v26 = vadd.f32 %v362_v13, %v52_v18  ;;  %v91_v27 = vadd.f32 %v364_v14, %v53_v19  ;;  %v92_v28 = vadd.f32 %v362_v13, %v54_v20  ;;  %v93_v29 = vadd.f32 %v364_v14, %v55_v21 }
   0xb   :  { %v94_v30 = vadd.f32 %v362_v13, %v56_v22  ;;  %v95_v31 = vadd.f32 %v364_v14, %v57_v23  ;;  %v96_v32 = vadd.f32 %v362_v13, %v58_v24  ;;  %v97_v33 = vadd.f32 %v364_v14, %v59_v25  ;;  %v30_v22 = vld [vmem:[%s523_s0 + $0x80] sm:$0xff]  ;;  %v31_v23 = vld [vmem:[%s523_s0 + $0x88] sm:$0xff] }
   0xc   :  { %vm116_vm0 = vcmp.gt.f32.partialorder %v90_v26, 0.0  ;;  %vm117_vm1 = vcmp.gt.f32.partialorder %v91_v27, 0.0  ;;  %v142_v34 = vmul.f32 0.2, %v90_v26  ;;  %v143_v35 = vmul.f32 0.2, %v91_v27 }
   0xd   :  { %vm118_vm2 = vcmp.gt.f32.partialorder %v92_v28, 0.0  ;;  %vm119_vm3 = vcmp.gt.f32.partialorder %v93_v29, 0.0  ;;  %v144_v36 = vmul.f32 0.2, %v92_v28  ;;  %v145_v37 = vmul.f32 0.2, %v93_v29 }
   0xe   :  { %v168_v38 = vsel %vm116_vm0, %v90_v26, %v142_v34  ;;  %v169_v39 = vsel %vm117_vm1, %v91_v27, %v143_v35  ;;  %vm120_vm4 = vcmp.gt.f32.partialorder %v94_v30, 0.0  ;;  %vm121_vm5 = vcmp.gt.f32.partialorder %v95_v31, 0.0  ;;  %v32_v27 = vld [vmem:[%s523_s0 + $0x90] sm:$0xff] }
   0xf   :  { %v304_v41 = vpack.c.bf16 %v169_v39, %v168_v38  ;;  %v170_v42 = vsel %vm118_vm2, %v92_v28, %v144_v36  ;;  %v171_v43 = vsel %vm119_vm3, %v93_v29, %v145_v37  ;;  %v146_v44 = vmul.f32 0.2, %v94_v30  ;;  %v33_v28 = vld [vmem:[%s523_s0 + $0x98] sm:$0xff] }
  0x10   :  { %v305_v48 = vpack.c.bf16 %v171_v43, %v170_v42  ;;  %v147_v49 = vmul.f32 0.2, %v95_v31  ;;  %vm122_vm6 = vcmp.gt.f32.partialorder %v96_v32, 0.0  ;;  %vm123_vm7 = vcmp.gt.f32.partialorder %v97_v33, 0.0 }
  0x11   :  { %274 = vst [vmem:[%s524_s3] sm:$0xff] %v304_v41  ;;  %v172_v50 = vsel %vm120_vm4, %v94_v30, %v146_v44  ;;  %v148_v51 = vmul.f32 0.2, %v96_v32  ;;  %v149_v52 = vmul.f32 0.2, %v97_v33  ;;  %v60_v53 = vmul.f32 %v358_v11, %v22_v40  ;;  %v34_v40 = vld [vmem:[%s523_s0 + $0xa0] sm:$0xff]  ;;  %v35_v41 = vld [vmem:[%s523_s0 + $0xa8] sm:$0xff] }
  0x12   :  { %275 = vst [vmem:[%s524_s3 + $0x8] sm:$0xff] %v305_v48  ;;  %v173_v54 = vsel %vm121_vm5, %v95_v31, %v147_v49  ;;  %v61_v55 = vmul.f32 %v360_v12, %v23_v45  ;;  %v62_v56 = vmul.f32 %v358_v11, %v24_v46  ;;  %v63_v57 = vmul.f32 %v360_v12, %v25_v47 }
  0x13   :  { %v306_v60 = vpack.c.bf16 %v173_v54, %v172_v50  ;;  %v174_v61 = vsel %vm122_vm6, %v96_v32, %v148_v51  ;;  %v175_v62 = vsel %vm123_vm7, %v97_v33, %v149_v52  ;;  %v98_v63 = vadd.f32 %v362_v13, %v60_v53  ;;  %v36_v54 = vld [vmem:[%s523_s0 + $0xb0] sm:$0xff] }
  0x14   :  { %v307_v0 = vpack.c.bf16 %v175_v62, %v174_v61  ;;  %v99_v1 = vadd.f32 %v364_v14, %v61_v55  ;;  %v100_v2 = vadd.f32 %v362_v13, %v62_v56  ;;  %v101_v3 = vadd.f32 %v364_v14, %v63_v57  ;;  %v37_v55 = vld [vmem:[%s523_s0 + $0xb8] sm:$0xff] }
  0x15   :  { %276 = vst [vmem:[%s524_s3 + $0x10] sm:$0xff] %v306_v60  ;;  %vm124_vm8 = vcmp.gt.f32.partialorder %v98_v63, 0.0  ;;  %v150_v4 = vmul.f32 0.2, %v98_v63  ;;  %v64_v5 = vmul.f32 %v358_v11, %v26_v58  ;;  %v65_v6 = vmul.f32 %v360_v12, %v27_v59 }
  0x16   :  { %277 = vst [vmem:[%s524_s3 + $0x18] sm:$0xff] %v307_v0  ;;  %vm125_vm9 = vcmp.gt.f32.partialorder %v99_v1, 0.0  ;;  %v151_v9 = vmul.f32 0.2, %v99_v1  ;;  %vm126_vm10 = vcmp.gt.f32.partialorder %v100_v2, 0.0  ;;  %vm127_vm11 = vcmp.gt.f32.partialorder %v101_v3, 0.0 }
  0x17   :  { %v176_v10 = vsel %vm124_vm8, %v98_v63, %v150_v4  ;;  %v152_v15 = vmul.f32 0.2, %v100_v2  ;;  %v153_v16 = vmul.f32 0.2, %v101_v3  ;;  %v102_v17 = vadd.f32 %v362_v13, %v64_v5 }
  0x18   :  { %v177_v18 = vsel %vm125_vm9, %v99_v1, %v151_v9  ;;  %v103_v19 = vadd.f32 %v364_v14, %v65_v6  ;;  %v66_v20 = vmul.f32 %v358_v11, %v28_v7  ;;  %v67_v21 = vmul.f32 %v360_v12, %v29_v8 }
  0x19   :  { %v308_v24 = vpack.c.bf16 %v177_v18, %v176_v10  ;;  %v178_v25 = vsel %vm126_vm10, %v100_v2, %v152_v15  ;;  %v179_v26 = vsel %vm127_vm11, %v101_v3, %v153_v16  ;;  %vm128_vm12 = vcmp.gt.f32.partialorder %v102_v17, 0.0  ;;  %v38_v2 = vld [vmem:[%s523_s0 + $0xc0] sm:$0xff]  ;;  %v39_v3 = vld [vmem:[%s523_s0 + $0xc8] sm:$0xff] }
  0x1a   :  { %v309_v29 = vpack.c.bf16 %v179_v26, %v178_v25  ;;  %vm129_vm13 = vcmp.gt.f32.partialorder %v103_v19, 0.0  ;;  %v154_v30 = vmul.f32 0.2, %v102_v17  ;;  %v155_v31 = vmul.f32 0.2, %v103_v19 }
  0x1b   :  { %278 = vst [vmem:[%s524_s3 + $0x20] sm:$0xff] %v308_v24  ;;  %v104_v32 = vadd.f32 %v362_v13, %v66_v20  ;;  %v105_v33 = vadd.f32 %v364_v14, %v67_v21  ;;  %v68_v34 = vmul.f32 %v358_v11, %v30_v22  ;;  %v69_v35 = vmul.f32 %v360_v12, %v31_v23 }
  0x1c   :  { %279 = vst [vmem:[%s524_s3 + $0x28] sm:$0xff] %v309_v29  ;;  %v180_v36 = vsel %vm128_vm12, %v102_v17, %v154_v30  ;;  %v181_v37 = vsel %vm129_vm13, %v103_v19, %v155_v31  ;;  %v70_v38 = vmul.f32 %v358_v11, %v32_v27  ;;  %v71_v39 = vmul.f32 %v360_v12, %v33_v28 }
  0x1d   :  { %v310_v42 = vpack.c.bf16 %v181_v37, %v180_v36  ;;  %vm130_vm14 = vcmp.gt.f32.partialorder %v104_v32, 0.0  ;;  %vm131_vm15 = vcmp.gt.f32.partialorder %v105_v33, 0.0  ;;  %v156_v43 = vmul.f32 0.2, %v104_v32 }
  0x1e   :  { %v157_v44 = vmul.f32 0.2, %v105_v33  ;;  %v106_v45 = vadd.f32 %v362_v13, %v68_v34  ;;  %v107_v46 = vadd.f32 %v364_v14, %v69_v35  ;;  %v108_v47 = vadd.f32 %v362_v13, %v70_v38 }
  0x1f   :  { %280 = vst [vmem:[%s524_s3 + $0x30] sm:$0xff] %v310_v42  ;;  %v182_v48 = vsel %vm130_vm14, %v104_v32, %v156_v43  ;;  %v109_v49 = vadd.f32 %v364_v14, %v71_v39  ;;  %v72_v50 = vmul.f32 %v358_v11, %v34_v40  ;;  %v73_v51 = vmul.f32 %v360_v12, %v35_v41 }
  0x20   :  { %v183_v52 = vsel %vm131_vm15, %v105_v33, %v157_v44  ;;  %vm132_vm0 = vcmp.gt.f32.partialorder %v106_v45, 0.0  ;;  %vm133_vm1 = vcmp.gt.f32.partialorder %v107_v46, 0.0  ;;  %v158_v53 = vmul.f32 0.2, %v106_v45 }
  0x21   :  { %v311_v56 = vpack.c.bf16 %v183_v52, %v182_v48  ;;  %v159_v57 = vmul.f32 0.2, %v107_v46  ;;  %vm134_vm2 = vcmp.gt.f32.partialorder %v108_v47, 0.0  ;;  %vm135_vm3 = vcmp.gt.f32.partialorder %v109_v49, 0.0 }
  0x22   :  { %v184_v58 = vsel %vm132_vm0, %v106_v45, %v158_v53  ;;  %v160_v59 = vmul.f32 0.2, %v108_v47  ;;  %v161_v60 = vmul.f32 0.2, %v109_v49  ;;  %v110_v61 = vadd.f32 %v362_v13, %v72_v50 }
  0x23   :  { %281 = vst [vmem:[%s524_s3 + $0x38] sm:$0xff] %v311_v56  ;;  %v185_v62 = vsel %vm133_vm1, %v107_v46, %v159_v57  ;;  %v111_v63 = vadd.f32 %v364_v14, %v73_v51  ;;  %v74_v0 = vmul.f32 %v358_v11, %v36_v54  ;;  %v75_v1 = vmul.f32 %v360_v12, %v37_v55 }
  0x24   :  { %v312_v4 = vpack.c.bf16 %v185_v62, %v184_v58  ;;  %v186_v5 = vsel %vm134_vm2, %v108_v47, %v160_v59  ;;  %v187_v6 = vsel %vm135_vm3, %v109_v49, %v161_v60  ;;  %vm136_vm4 = vcmp.gt.f32.partialorder %v110_v61, 0.0 }
  0x25   :  { %v313_v7 = vpack.c.bf16 %v187_v6, %v186_v5  ;;  %vm137_vm5 = vcmp.gt.f32.partialorder %v111_v63, 0.0  ;;  %v162_v8 = vmul.f32 0.2, %v110_v61  ;;  %v163_v9 = vmul.f32 0.2, %v111_v63 }
  0x26   :  { %282 = vst [vmem:[%s524_s3 + $0x40] sm:$0xff] %v312_v4  ;;  %v112_v10 = vadd.f32 %v362_v13, %v74_v0  ;;  %v113_v15 = vadd.f32 %v364_v14, %v75_v1  ;;  %v76_v16 = vmul.f32 %v358_v11, %v38_v2  ;;  %v77_v17 = vmul.f32 %v360_v12, %v39_v3 }
  0x27   :  { %283 = vst [vmem:[%s524_s3 + $0x48] sm:$0xff] %v313_v7  ;;  %v188_v18 = vsel %vm136_vm4, %v110_v61, %v162_v8  ;;  %v189_v19 = vsel %vm137_vm5, %v111_v63, %v163_v9 }
  0x28   :  { %v314_v20 = vpack.c.bf16 %v189_v19, %v188_v18  ;;  %vm138_vm6 = vcmp.gt.f32.partialorder %v112_v10, 0.0  ;;  %vm139_vm7 = vcmp.gt.f32.partialorder %v113_v15, 0.0  ;;  %v164_v21 = vmul.f32 0.2, %v112_v10 }
  0x29   :  { %v165_v22 = vmul.f32 0.2, %v113_v15  ;;  %v114_v23 = vadd.f32 %v362_v13, %v76_v16  ;;  %v115_v24 = vadd.f32 %v364_v14, %v77_v17 }
  0x2a   :  { %284 = vst [vmem:[%s524_s3 + $0x50] sm:$0xff] %v314_v20  ;;  %v190_v11 = vsel %vm138_vm6, %v112_v10, %v164_v21 }
  0x2b   :  { %v191_v12 = vsel %vm139_vm7, %v113_v15, %v165_v22  ;;  %vm140_vm8 = vcmp.gt.f32.partialorder %v114_v23, 0.0  ;;  %vm141_vm9 = vcmp.gt.f32.partialorder %v115_v24, 0.0  ;;  %v166_v25 = vmul.f32 0.2, %v114_v23 }
  0x2c   :  { %v315_v26 = vpack.c.bf16 %v191_v12, %v190_v11  ;;  %v167_v27 = vmul.f32 0.2, %v115_v24 }
  0x2d   :  { %v192_v28 = vsel %vm140_vm8, %v114_v23, %v166_v25 }
  0x2e   :  { %285 = vst [vmem:[%s524_s3 + $0x58] sm:$0xff] %v315_v26  ;;  %v193_v29 = vsel %vm141_vm9, %v115_v24, %v167_v27 }
  0x2f   :  { %v316_v13 = vpack.c.bf16 %v193_v29, %v192_v28 }
  0x31   :  { %286 = vst [vmem:[%s524_s3 + $0x60] sm:$0xff] %v316_v13 }

// kernel: discriminator_cnn.7
= control target key start
LH: loop header
LB: loop body
LE: loop exit
PB: predicated region body
PF: predicated region fallthrough
CT: control target
= control target key end

     0   :  { %s2748_s15 = smov 0   ;;  %s2750_s16 = smov 0   ;;  %s3360_s0 = inlined_call_operand.vmem [shape: bf16[104,2048], index: 0, kind: input, shape index: {}]   ;;  %s3361_s1 = inlined_call_operand.vmem [shape: bf16[2048,256], index: 1, kind: input, shape index: {}]   ;;  %s3362_s2 = inlined_call_operand.vmem [shape: f32[104,256], index: 2, kind: output, shape index: {0}]   ;;  %s3363_s3 = inlined_call_operand.vmem [shape: f32[8,256], index: 3, kind: output, shape index: {1}]   ;;  %s3364_s4 = inlined_call_operand.vmem [shape: f32[8,256], index: 4, kind: output, shape index: {2}]  }
   0x1   :  { %s2752_s17 = smov 0   ;;  %s2754_s18 = smov 0  }
   0x2   :  { %s2756_s19 = smov 0  }
   0x3 LB: > { %s24_s20 = sadd.s32 1, %s2715_s18  ;;  %p43_p1 = scmp.ne.s32.totalorder %s2707_s16, %s2703_s15  ;;  %s2719_s19 = sphi %s2756_s19, %s15_s19   ;;  %s2715_s18 = sphi %s2754_s18, %s3382_s18   ;;  %s2711_s17 = sphi %s2752_s17, %s3381_s17   ;;  %s2707_s16 = sphi %s2750_s16, %s3380_s16   ;;  %s2703_s15 = sphi %s2748_s15, %s3379_s15  }
   0x4   : > { %p25_p0 = scmp.ge.s32.totalorder %s24_s20, 2  ;;  %p44_p2 = scmp.eq.s32.totalorder %s2719_s19, 0 }
   0x5   : > { %s36_s22 = sadd.s32 1, %s2707_s16  ;;  %p2236_p5 = scmp.ge.s32.totalorder %s2719_s19, 2 }
   0x6   : > { %s3384_s20 = smov (%p25_p0, %s24_s20), 0  ;;  %p45_p3 = por %p44_p2, %p43_p1 }
   0x7   : > { %s32_s21 = ssub.s32 %s2715_s18, %s3384_s20  ;;  %163 = sbr.rel (%p2236_p5) target bundleno = 43 (0x2b), region = 16 }
   0x8   : > { %p34_p4 = scmp.eq.s32.totalorder %s32_s21, 0 }
   0xa   : > { %s2783_s23 = scalar_select %p34_p4, %s2707_s16, %s36_s22  }
   0xc   : > { %166 = sbr.rel (!%p45_p3) target bundleno = 43 (0x2b), region = 20  ;;  %s168_s24 = sand.u32 (%p45_p3), 1, %s2707_s16  }
   0xd   : > { %s2434_s25 = sshll.u32 (%p45_p3), %s2715_s18, 5  ;;  %s2437_s26 = smul.u32 (%p45_p3), 416, %s168_s24 }
   0xe   : > { %s2791_s29 = scalar_lea.vmem (%p45_p3), %s3360_s0, %s2434_s25 }
   0xf   : > { %v189_v0 = vld [vmem:[%s2791_s29] sm:$0xff] (%p45_p3)  ;;  %v191_v1 = vld [vmem:[%s2791_s29 + $0x8] sm:$0xff] (%p45_p3)  ;;  %v193_v2 = vld [vmem:[%s2791_s29 + $0x10] sm:$0xff] (%p45_p3)  ;;  %s2799_s30 = scalar_lea.vmem (%p45_p3), [#allocation3], %s2437_s26 }
  0x10   : > { %v195_v3 = vld [vmem:[%s2791_s29 + $0x18] sm:$0xff] (%p45_p3)  ;;  %v197_v4 = vld [vmem:[%s2791_s29 + $0x40] sm:$0xff] (%p45_p3)  ;;  %v199_v5 = vld [vmem:[%s2791_s29 + $0x48] sm:$0xff] (%p45_p3)  ;;  %190 = vst [vmem:[%s2799_s30] sm:$0xff] (%p45_p3), %v189_v0 }
  0x11   : > { %192 = vst [vmem:[%s2799_s30 + $0x8] sm:$0xff] %v191_v1  ;;  %194 = vst [vmem:[%s2799_s30 + $0x10] sm:$0xff] %v193_v2  ;;  %v201_v6 = vld [vmem:[%s2791_s29 + $0x50] sm:$0xff]  ;;  %v203_v7 = vld [vmem:[%s2791_s29 + $0x58] sm:$0xff] }
  0x12   : > { %196 = vst [vmem:[%s2799_s30 + $0x18] sm:$0xff] %v195_v3  ;;  %198 = vst [vmem:[%s2799_s30 + $0x20] sm:$0xff] %v197_v4  ;;  %v205_v8 = vld [vmem:[%s2791_s29 + $0x80] sm:$0xff]  ;;  %v207_v9 = vld [vmem:[%s2791_s29 + $0x88] sm:$0xff] }
  0x13   : > { %200 = vst [vmem:[%s2799_s30 + $0x28] sm:$0xff] %v199_v5  ;;  %202 = vst [vmem:[%s2799_s30 + $0x30] sm:$0xff] %v201_v6  ;;  %v209_v10 = vld [vmem:[%s2791_s29 + $0x90] sm:$0xff]  ;;  %v211_v11 = vld [vmem:[%s2791_s29 + $0x98] sm:$0xff] }
  0x14   : > { %204 = vst [vmem:[%s2799_s30 + $0x38] sm:$0xff] %v203_v7  ;;  %206 = vst [vmem:[%s2799_s30 + $0x40] sm:$0xff] %v205_v8  ;;  %v213_v12 = vld [vmem:[%s2791_s29 + $0xc0] sm:$0xff]  ;;  %v215_v13 = vld [vmem:[%s2791_s29 + $0xc8] sm:$0xff] }
  0x15   : > { %208 = vst [vmem:[%s2799_s30 + $0x48] sm:$0xff] %v207_v9  ;;  %210 = vst [vmem:[%s2799_s30 + $0x50] sm:$0xff] %v209_v10  ;;  %v217_v14 = vld [vmem:[%s2791_s29 + $0xd0] sm:$0xff]  ;;  %v219_v15 = vld [vmem:[%s2791_s29 + $0xd8] sm:$0xff] }
  0x16   : > { %212 = vst [vmem:[%s2799_s30 + $0x58] sm:$0xff] %v211_v11  ;;  %214 = vst [vmem:[%s2799_s30 + $0x60] sm:$0xff] %v213_v12  ;;  %v221_v16 = vld [vmem:[%s2791_s29 + $0x100] sm:$0xff]  ;;  %v223_v17 = vld [vmem:[%s2791_s29 + $0x108] sm:$0xff] }
  0x17   : > { %216 = vst [vmem:[%s2799_s30 + $0x68] sm:$0xff] %v215_v13  ;;  %218 = vst [vmem:[%s2799_s30 + $0x70] sm:$0xff] %v217_v14  ;;  %v225_v18 = vld [vmem:[%s2791_s29 + $0x110] sm:$0xff]  ;;  %v227_v19 = vld [vmem:[%s2791_s29 + $0x118] sm:$0xff] }
  0x18   : > { %220 = vst [vmem:[%s2799_s30 + $0x78] sm:$0xff] %v219_v15  ;;  %222 = vst [vmem:[%s2799_s30 + $0x80] sm:$0xff] %v221_v16  ;;  %v229_v20 = vld [vmem:[%s2791_s29 + $0x140] sm:$0xff]  ;;  %v231_v21 = vld [vmem:[%s2791_s29 + $0x148] sm:$0xff] }
  0x19   : > { %224 = vst [vmem:[%s2799_s30 + $0x88] sm:$0xff] %v223_v17  ;;  %226 = vst [vmem:[%s2799_s30 + $0x90] sm:$0xff] %v225_v18  ;;  %v233_v22 = vld [vmem:[%s2791_s29 + $0x150] sm:$0xff]  ;;  %v235_v23 = vld [vmem:[%s2791_s29 + $0x158] sm:$0xff] }
  0x1a   : > { %228 = vst [vmem:[%s2799_s30 + $0x98] sm:$0xff] %v227_v19  ;;  %230 = vst [vmem:[%s2799_s30 + $0xa0] sm:$0xff] %v229_v20  ;;  %v237_v24 = vld [vmem:[%s2791_s29 + $0x180] sm:$0xff]  ;;  %v239_v25 = vld [vmem:[%s2791_s29 + $0x188] sm:$0xff] }
  0x1b   : > { %232 = vst [vmem:[%s2799_s30 + $0xa8] sm:$0xff] %v231_v21  ;;  %234 = vst [vmem:[%s2799_s30 + $0xb0] sm:$0xff] %v233_v22  ;;  %v241_v26 = vld [vmem:[%s2791_s29 + $0x190] sm:$0xff]  ;;  %v243_v27 = vld [vmem:[%s2791_s29 + $0x198] sm:$0xff] }
  0x1c   : > { %236 = vst [vmem:[%s2799_s30 + $0xb8] sm:$0xff] %v235_v23  ;;  %238 = vst [vmem:[%s2799_s30 + $0xc0] sm:$0xff] %v237_v24  ;;  %v245_v28 = vld [vmem:[%s2791_s29 + $0x1c0] sm:$0xff]  ;;  %v247_v29 = vld [vmem:[%s2791_s29 + $0x1c8] sm:$0xff] }
  0x1d   : > { %240 = vst [vmem:[%s2799_s30 + $0xc8] sm:$0xff] %v239_v25  ;;  %242 = vst [vmem:[%s2799_s30 + $0xd0] sm:$0xff] %v241_v26  ;;  %v249_v30 = vld [vmem:[%s2791_s29 + $0x1d0] sm:$0xff]  ;;  %v251_v31 = vld [vmem:[%s2791_s29 + $0x1d8] sm:$0xff] }
  0x1e   : > { %244 = vst [vmem:[%s2799_s30 + $0xd8] sm:$0xff] %v243_v27  ;;  %246 = vst [vmem:[%s2799_s30 + $0xe0] sm:$0xff] %v245_v28  ;;  %v253_v32 = vld [vmem:[%s2791_s29 + $0x200] sm:$0xff]  ;;  %v255_v33 = vld [vmem:[%s2791_s29 + $0x208] sm:$0xff] }
  0x1f   : > { %248 = vst [vmem:[%s2799_s30 + $0xe8] sm:$0xff] %v247_v29  ;;  %250 = vst [vmem:[%s2799_s30 + $0xf0] sm:$0xff] %v249_v30  ;;  %v257_v34 = vld [vmem:[%s2791_s29 + $0x210] sm:$0xff]  ;;  %v259_v35 = vld [vmem:[%s2791_s29 + $0x218] sm:$0xff] }
  0x20   : > { %252 = vst [vmem:[%s2799_s30 + $0xf8] sm:$0xff] %v251_v31  ;;  %254 = vst [vmem:[%s2799_s30 + $0x100] sm:$0xff] %v253_v32  ;;  %v261_v36 = vld [vmem:[%s2791_s29 + $0x240] sm:$0xff]  ;;  %v263_v37 = vld [vmem:[%s2791_s29 + $0x248] sm:$0xff] }
  0x21   : > { %256 = vst [vmem:[%s2799_s30 + $0x108] sm:$0xff] %v255_v33  ;;  %258 = vst [vmem:[%s2799_s30 + $0x110] sm:$0xff] %v257_v34  ;;  %v265_v38 = vld [vmem:[%s2791_s29 + $0x250] sm:$0xff]  ;;  %v267_v39 = vld [vmem:[%s2791_s29 + $0x258] sm:$0xff] }
  0x22   : > { %260 = vst [vmem:[%s2799_s30 + $0x118] sm:$0xff] %v259_v35  ;;  %262 = vst [vmem:[%s2799_s30 + $0x120] sm:$0xff] %v261_v36  ;;  %v269_v40 = vld [vmem:[%s2791_s29 + $0x280] sm:$0xff]  ;;  %v271_v41 = vld [vmem:[%s2791_s29 + $0x288] sm:$0xff] }
  0x23   : > { %264 = vst [vmem:[%s2799_s30 + $0x128] sm:$0xff] %v263_v37  ;;  %266 = vst [vmem:[%s2799_s30 + $0x130] sm:$0xff] %v265_v38  ;;  %v273_v42 = vld [vmem:[%s2791_s29 + $0x290] sm:$0xff]  ;;  %v275_v43 = vld [vmem:[%s2791_s29 + $0x298] sm:$0xff] }
  0x24   : > { %268 = vst [vmem:[%s2799_s30 + $0x138] sm:$0xff] %v267_v39  ;;  %270 = vst [vmem:[%s2799_s30 + $0x140] sm:$0xff] %v269_v40  ;;  %v277_v44 = vld [vmem:[%s2791_s29 + $0x2c0] sm:$0xff]  ;;  %v279_v45 = vld [vmem:[%s2791_s29 + $0x2c8] sm:$0xff] }
  0x25   : > { %272 = vst [vmem:[%s2799_s30 + $0x148] sm:$0xff] %v271_v41  ;;  %274 = vst [vmem:[%s2799_s30 + $0x150] sm:$0xff] %v273_v42  ;;  %v281_v46 = vld [vmem:[%s2791_s29 + $0x2d0] sm:$0xff]  ;;  %v283_v47 = vld [vmem:[%s2791_s29 + $0x2d8] sm:$0xff] }
  0x26   : > { %276 = vst [vmem:[%s2799_s30 + $0x158] sm:$0xff] %v275_v43  ;;  %278 = vst [vmem:[%s2799_s30 + $0x160] sm:$0xff] %v277_v44  ;;  %v285_v48 = vld [vmem:[%s2791_s29 + $0x300] sm:$0xff]  ;;  %v287_v49 = vld [vmem:[%s2791_s29 + $0x308] sm:$0xff] }
  0x27   : > { %280 = vst [vmem:[%s2799_s30 + $0x168] sm:$0xff] %v279_v45  ;;  %282 = vst [vmem:[%s2799_s30 + $0x170] sm:$0xff] %v281_v46  ;;  %v289_v50 = vld [vmem:[%s2791_s29 + $0x310] sm:$0xff]  ;;  %v291_v51 = vld [vmem:[%s2791_s29 + $0x318] sm:$0xff] }
  0x28   : > { %284 = vst [vmem:[%s2799_s30 + $0x178] sm:$0xff] %v283_v47  ;;  %286 = vst [vmem:[%s2799_s30 + $0x180] sm:$0xff] %v285_v48 }
  0x29   : > { %288 = vst [vmem:[%s2799_s30 + $0x188] sm:$0xff] %v287_v49  ;;  %290 = vst [vmem:[%s2799_s30 + $0x190] sm:$0xff] %v289_v50 }
  0x2a   : > { %292 = vst [vmem:[%s2799_s30 + $0x198] sm:$0xff] %v291_v51 }
  0x2b PF: > { %p2239_p6 = scmp.ge.s32.totalorder %s2719_s19, 1  ;;  %p307_p7 = scmp.lt.s32.totalorder %s2719_s19, 3 }
  0x2d   : > { %p308_p8 = pnand %p2239_p6, %p307_p7 }
  0x2f   : > { %311 = sbr.rel (%p308_p8) target bundleno = 504 (0x1f8), region = 47 }
  0x34   : > { %s314_s5 = sand.u32 1, %s2703_s15   ;;  %s2240_s6 = sshll.u32 %s2711_s17, 7 }
  0x35   : > { %s2438_s7 = smul.u32 416, %s314_s5  ;;  %p349_p9 = scmp.lt.s32.totalorder %s2240_s6, 255 }
  0x36   : > { %p363_p10 = scmp.eq.s32.totalorder %s2711_s17, 0 }
  0x37   : > { %s3386_s6 = smov (!%p349_p9, %s2240_s6), 255  ;;  %s2909_s12 = scalar_lea.vmem [#allocation3], %s2438_s7  ;;  %v2721_v52 = vmov (%p363_p10), 0.0  }
  0x38   : > { %s2435_s8 = sshll.u32 %s3386_s6, 3  ;;  %367 = sbr.rel (!%p363_p10) target bundleno = 61 (0x3d), region = 55  ;;  %368 = vst [vmem:[%s3363_s3] sm:$0xff] (%p363_p10), %v2721_v52  ;;  %369 = vst [vmem:[%s3363_s3 + $0x8] sm:$0xff] (%p363_p10), %v2721_v52 }
  0x39   : > { %s2907_s11 = scalar_lea.vmem %s3361_s1, %s2435_s8  ;;  %370 = vst [vmem:[%s3364_s4] sm:$0xff] (%p363_p10), %v2721_v52  ;;  %371 = vst [vmem:[%s3364_s4 + $0x8] sm:$0xff] (%p363_p10), %v2721_v52 }
  0x3d PF: > { %p2244_p11 = scmp.ne.s32.totalorder %s2711_s17, 0 }
  0x3f   : > { %374 = sbr.rel (%p2244_p11) target bundleno = 82 (0x52), region = 59 }
  0x44   : > { %v2722_v53 = vmov 0.0  }
  0x45   : > { %375 = vst [vmem:[#allocation2 + $0xb0] sm:$0xff] %v2722_v53  ;;  %376 = vst [vmem:[#allocation2] sm:$0xff] %v2722_v53 }
  0x46   : > { %377 = vst [vmem:[#allocation2 + $0x10] sm:$0xff] %v2722_v53  ;;  %378 = vst [vmem:[#allocation2 + $0x48] sm:$0xff] %v2722_v53 }
  0x47   : > { %379 = vst [vmem:[#allocation2 + $0x60] sm:$0xff] %v2722_v53  ;;  %380 = vst [vmem:[#allocation2 + $0x28] sm:$0xff] %v2722_v53 }
  0x48   : > { %381 = vst [vmem:[#allocation2 + $0x40] sm:$0xff] %v2722_v53  ;;  %382 = vst [vmem:[#allocation2 + $0x78] sm:$0xff] %v2722_v53 }
  0x49   : > { %383 = vst [vmem:[#allocation2 + $0x80] sm:$0xff] %v2722_v53  ;;  %384 = vst [vmem:[#allocation2 + $0xa8] sm:$0xff] %v2722_v53 }
  0x4a   : > { %385 = vst [vmem:[#allocation2 + $0x50] sm:$0xff] %v2722_v53  ;;  %386 = vst [vmem:[#allocation2 + $0x30] sm:$0xff] %v2722_v53 }
  0x4b   : > { %387 = vst [vmem:[#allocation2 + $0x88] sm:$0xff] %v2722_v53  ;;  %388 = vst [vmem:[#allocation2 + $0x70] sm:$0xff] %v2722_v53 }
  0x4c   : > { %389 = vst [vmem:[#allocation2 + $0x8] sm:$0xff] %v2722_v53  ;;  %390 = vst [vmem:[#allocation2 + $0x38] sm:$0xff] %v2722_v53 }
  0x4d   : > { %391 = vst [vmem:[#allocation2 + $0x20] sm:$0xff] %v2722_v53  ;;  %392 = vst [vmem:[#allocation2 + $0xb8] sm:$0xff] %v2722_v53 }
  0x4e   : > { %393 = vst [vmem:[#allocation2 + $0x58] sm:$0xff] %v2722_v53  ;;  %394 = vst [vmem:[#allocation2 + $0xc8] sm:$0xff] %v2722_v53 }
  0x4f   : > { %395 = vst [vmem:[#allocation2 + $0xa0] sm:$0xff] %v2722_v53  ;;  %396 = vst [vmem:[#allocation2 + $0x90] sm:$0xff] %v2722_v53 }
  0x50   : > { %397 = vst [vmem:[#allocation2 + $0x98] sm:$0xff] %v2722_v53  ;;  %398 = vst [vmem:[#allocation2 + $0x18] sm:$0xff] %v2722_v53 }
  0x51   : > { %399 = vst [vmem:[#allocation2 + $0xc0] sm:$0xff] %v2722_v53  ;;  %400 = vst [vmem:[#allocation2 + $0x68] sm:$0xff] %v2722_v53 }
  0x52 PF: > { %v2481_v54 = vld [vmem:[%s2907_s11 + $0x74] ss:$8 sps:$4 sm:$0xff]   ;;  %v2485_v56 = vld [vmem:[%s2907_s11 + $0x70] ss:$8 sps:$4 sm:$0xff]   ;;  %v2487_v58 = vld [vmem:[%s2907_s11 + $0x64] ss:$8 sps:$4 sm:$0xff]  }
  0x53   : > { %v2483_v55 = vld [vmem:[%s2907_s11 + $0x174] ss:$8 sps:$4 sm:$0xff]   ;;  %1515 = vmatprep.subr.bf16.mxu0 %v2481_v54  ;;  %v2486_v57 = vld [vmem:[%s2907_s11 + $0x170] ss:$8 sps:$4 sm:$0xff]   ;;  %v2489_v59 = vld [vmem:[%s2907_s11 + $0x164] ss:$8 sps:$4 sm:$0xff]  }
  0x54   : > { %1616 = vmatprep.subr.bf16.mxu1 %v2483_v55  ;;  %1516 = vmatpush1.bf16.msra.mxu0 %v2485_v56  ;;  %v2491_v60 = vld [vmem:[%s2907_s11 + $0x60] ss:$8 sps:$4 sm:$0xff]   ;;  %v2493_v62 = vld [vmem:[%s2907_s11 + $0x54] ss:$8 sps:$4 sm:$0xff]   ;;  %v2497_v0 = vld [vmem:[%s2907_s11 + $0x50] ss:$8 sps:$4 sm:$0xff]  }
  0x55   : > { %1617 = vmatpush1.bf16.msra.mxu1 %v2486_v57  ;;  %1517 = vmatprep.subr.bf16.mxu0 %v2487_v58  ;;  %v2492_v61 = vld [vmem:[%s2907_s11 + $0x160] ss:$8 sps:$4 sm:$0xff]   ;;  %v2495_v63 = vld [vmem:[%s2907_s11 + $0x154] ss:$8 sps:$4 sm:$0xff]   ;;  %v2498_v1 = vld [vmem:[%s2907_s11 + $0x150] ss:$8 sps:$4 sm:$0xff]  }
  0x56   : > { %1618 = vmatprep.subr.bf16.mxu1 %v2489_v59  ;;  %v2499_v2 = vld [vmem:[%s2907_s11 + $0x44] ss:$8 sps:$4 sm:$0xff]   ;;  %v2503_v4 = vld [vmem:[%s2907_s11 + $0x40] ss:$8 sps:$4 sm:$0xff]   ;;  %v2505_v6 = vld [vmem:[%s2907_s11 + $0x34] ss:$8 sps:$4 sm:$0xff]  }
  0x57   : > { %v2501_v3 = vld [vmem:[%s2907_s11 + $0x144] ss:$8 sps:$4 sm:$0xff]   ;;  %v2504_v5 = vld [vmem:[%s2907_s11 + $0x140] ss:$8 sps:$4 sm:$0xff]   ;;  %v2507_v7 = vld [vmem:[%s2907_s11 + $0x134] ss:$8 sps:$4 sm:$0xff]  }
  0x58   : > { %1518 = vmatpush1.bf16.msra.mxu0 %v2491_v60  ;;  %v2509_v8 = vld [vmem:[%s2907_s11 + $0x30] ss:$8 sps:$4 sm:$0xff]   ;;  %v2511_v10 = vld [vmem:[%s2907_s11 + $0x24] ss:$8 sps:$4 sm:$0xff]   ;;  %v2515_v12 = vld [vmem:[%s2907_s11 + $0x20] ss:$8 sps:$4 sm:$0xff]  }
  0x59   : > { %1619 = vmatpush1.bf16.msra.mxu1 %v2492_v61  ;;  %1519 = vmatprep.subr.bf16.mxu0 %v2493_v62  ;;  %v2510_v9 = vld [vmem:[%s2907_s11 + $0x130] ss:$8 sps:$4 sm:$0xff]   ;;  %v2513_v11 = vld [vmem:[%s2907_s11 + $0x124] ss:$8 sps:$4 sm:$0xff]   ;;  %v2516_v13 = vld [vmem:[%s2907_s11 + $0x120] ss:$8 sps:$4 sm:$0xff]  }
  0x5a   : > { %1620 = vmatprep.subr.bf16.mxu1 %v2495_v63  ;;  %v2517_v14 = vld [vmem:[%s2907_s11 + $0x14] ss:$8 sps:$4 sm:$0xff]   ;;  %v2521_v16 = vld [vmem:[%s2907_s11 + $0x10] ss:$8 sps:$4 sm:$0xff]   ;;  %v2523_v18 = vld [vmem:[%s2907_s11 + $0x4] ss:$8 sps:$4 sm:$0xff]  }
  0x5b   : > { %v2519_v15 = vld [vmem:[%s2907_s11 + $0x114] ss:$8 sps:$4 sm:$0xff]   ;;  %v2522_v17 = vld [vmem:[%s2907_s11 + $0x110] ss:$8 sps:$4 sm:$0xff]   ;;  %v2525_v19 = vld [vmem:[%s2907_s11 + $0x104] ss:$8 sps:$4 sm:$0xff]  }
  0x5c   : > { %1520 = vmatpush1.bf16.msra.mxu0 %v2497_v0  ;;  %v2527_v20 = vld [vmem:[%s2907_s11] ss:$8 sps:$4 sm:$0xff]   ;;  %v2529_v22 = vld [vmem:[%s2907_s11 + $0xf4] ss:$8 sps:$4 sm:$0xff]   ;;  %v2533_v24 = vld [vmem:[%s2907_s11 + $0xf0] ss:$8 sps:$4 sm:$0xff]  }
  0x5d   : > { %1621 = vmatpush1.bf16.msra.mxu1 %v2498_v1  ;;  %1521 = vmatprep.subr.bf16.mxu0 %v2499_v2  ;;  %v2528_v21 = vld [vmem:[%s2907_s11 + $0x100] ss:$8 sps:$4 sm:$0xff]   ;;  %v2531_v23 = vld [vmem:[%s2907_s11 + $0x1f4] ss:$8 sps:$4 sm:$0xff]   ;;  %v2534_v25 = vld [vmem:[%s2907_s11 + $0x1f0] ss:$8 sps:$4 sm:$0xff]  }
  0x5e   : > { %1622 = vmatprep.subr.bf16.mxu1 %v2501_v3  ;;  %v2535_v26 = vld [vmem:[%s2907_s11 + $0xe4] ss:$8 sps:$4 sm:$0xff]   ;;  %v2539_v28 = vld [vmem:[%s2907_s11 + $0xe0] ss:$8 sps:$4 sm:$0xff]   ;;  %v2541_v30 = vld [vmem:[%s2907_s11 + $0xd4] ss:$8 sps:$4 sm:$0xff]  }
  0x5f   : > { %v2537_v27 = vld [vmem:[%s2907_s11 + $0x1e4] ss:$8 sps:$4 sm:$0xff]   ;;  %v2540_v29 = vld [vmem:[%s2907_s11 + $0x1e0] ss:$8 sps:$4 sm:$0xff]   ;;  %v2543_v31 = vld [vmem:[%s2907_s11 + $0x1d4] ss:$8 sps:$4 sm:$0xff]  }
  0x60   : > { %1522 = vmatpush1.bf16.msra.mxu0 %v2503_v4  ;;  %v2545_v32 = vld [vmem:[%s2907_s11 + $0xd0] ss:$8 sps:$4 sm:$0xff]   ;;  %v2547_v34 = vld [vmem:[%s2907_s11 + $0xc4] ss:$8 sps:$4 sm:$0xff]   ;;  %v2551_v36 = vld [vmem:[%s2907_s11 + $0xc0] ss:$8 sps:$4 sm:$0xff]  }
  0x61   : > { %1623 = vmatpush1.bf16.msra.mxu1 %v2504_v5  ;;  %1523 = vmatprep.subr.bf16.mxu0 %v2505_v6  ;;  %v2546_v33 = vld [vmem:[%s2907_s11 + $0x1d0] ss:$8 sps:$4 sm:$0xff]   ;;  %v2549_v35 = vld [vmem:[%s2907_s11 + $0x1c4] ss:$8 sps:$4 sm:$0xff]   ;;  %v2552_v37 = vld [vmem:[%s2907_s11 + $0x1c0] ss:$8 sps:$4 sm:$0xff]  }
  0x62   : > { %1624 = vmatprep.subr.bf16.mxu1 %v2507_v7  ;;  %v427_v38 = vld [vmem:[%s2909_s12] sm:$0xff]  ;;  %v428_v40 = vld [vmem:[%s2909_s12 + $0x8] sm:$0xff]  ;;  %v2559_v48 = vld [vmem:[%s2907_s11 + $0xa4] ss:$8 sps:$4 sm:$0xff]   ;;  %p2429_p12 = scmp.ne.s32.totalorder %s2711_s17, 1 }
  0x63   : > { %v431_v39 = vld [vmem:[%s2909_s12 + $0x20] sm:$0xff]  ;;  %v432_v41 = vld [vmem:[%s2909_s12 + $0x28] sm:$0xff]  ;;  %v2561_v49 = vld [vmem:[%s2907_s11 + $0x1a4] ss:$8 sps:$4 sm:$0xff]  }
  0x64   : > { %1524 = vmatpush1.bf16.msra.mxu0 %v2509_v8  ;;  %v2553_v42 = vld [vmem:[%s2907_s11 + $0xb4] ss:$8 sps:$4 sm:$0xff]   ;;  %v2246_v43 = vcombine.high %v427_v38, %v431_v39  ;;  %v2248_v45 = vcombine.high %v428_v40, %v432_v41  ;;  %v2557_v46 = vld [vmem:[%s2907_s11 + $0xb0] ss:$8 sps:$4 sm:$0xff]   ;;  %v2563_v50 = vld [vmem:[%s2907_s11 + $0xa0] ss:$8 sps:$4 sm:$0xff]   ;;  %v2245_v1 = vcombine.low %v427_v38, %v431_v39  ;;  %v2247_v2 = vcombine.low %v428_v40, %v432_v41 }
  0x65   : > { %1625 = vmatpush1.bf16.msra.mxu1 %v2510_v9  ;;  %1525 = vmatprep.subr.bf16.mxu0 %v2511_v10  ;;  %v2555_v44 = vld [vmem:[%s2907_s11 + $0x1b4] ss:$8 sps:$4 sm:$0xff]   ;;  %v2558_v47 = vld [vmem:[%s2907_s11 + $0x1b0] ss:$8 sps:$4 sm:$0xff]   ;;  %v2564_v51 = vld [vmem:[%s2907_s11 + $0x1a0] ss:$8 sps:$4 sm:$0xff]  }
  0x66   : > { %1626 = vmatprep.subr.bf16.mxu1 %v2513_v11  ;;  %1547 = vmatprep.mubr.bf16.mxu0 %v2246_v43  ;;  %v2565_v52 = vld [vmem:[%s2907_s11 + $0x94] ss:$8 sps:$4 sm:$0xff]   ;;  %v2569_v54 = vld [vmem:[%s2907_s11 + $0x90] ss:$8 sps:$4 sm:$0xff]   ;;  %v2571_v56 = vld [vmem:[%s2907_s11 + $0x84] ss:$8 sps:$4 sm:$0xff]  }
  0x67   : > { %1648 = vmatprep.mubr.bf16.mxu1 %v2248_v45  ;;  %v2567_v53 = vld [vmem:[%s2907_s11 + $0x194] ss:$8 sps:$4 sm:$0xff]   ;;  %v2570_v55 = vld [vmem:[%s2907_s11 + $0x190] ss:$8 sps:$4 sm:$0xff]   ;;  %v2573_v57 = vld [vmem:[%s2907_s11 + $0x184] ss:$8 sps:$4 sm:$0xff]  }
  0x68   : > { %1526 = vmatpush1.bf16.msra.mxu0 %v2515_v12  ;;  %v2575_v58 = vld [vmem:[%s2907_s11 + $0x80] ss:$8 sps:$4 sm:$0xff]   ;;  %v2579_v60 = vld [vmem:[%s2907_s11 + $0x274] ss:$8 sps:$4 sm:$0xff]   ;;  %v2577_v62 = vld [vmem:[%s2907_s11 + $0x270] ss:$8 sps:$4 sm:$0xff]  }
  0x69   : > { %1627 = vmatpush1.bf16.msra.mxu1 %v2516_v13  ;;  %1527 = vmatprep.subr.bf16.mxu0 %v2517_v14  ;;  %v2576_v59 = vld [vmem:[%s2907_s11 + $0x180] ss:$8 sps:$4 sm:$0xff]   ;;  %v2582_v61 = vld [vmem:[%s2907_s11 + $0x374] ss:$8 sps:$4 sm:$0xff]   ;;  %v2580_v5 = vld [vmem:[%s2907_s11 + $0x370] ss:$8 sps:$4 sm:$0xff]  }
  0x6a   : > { %1628 = vmatprep.subr.bf16.mxu1 %v2519_v15  ;;  %v435_v63 = vld [vmem:[%s2909_s12 + $0x40] sm:$0xff]  ;;  %v436_v3 = vld [vmem:[%s2909_s12 + $0x48] sm:$0xff]  ;;  %v2585_v6 = vld [vmem:[%s2907_s11 + $0x264] ss:$8 sps:$4 sm:$0xff]  }
  0x6b   : > { %v439_v0 = vld [vmem:[%s2909_s12 + $0x60] sm:$0xff]  ;;  %v440_v4 = vld [vmem:[%s2909_s12 + $0x68] sm:$0xff]  ;;  %v2588_v7 = vld [vmem:[%s2907_s11 + $0x364] ss:$8 sps:$4 sm:$0xff]  }
  0x6c   : > { %1528 = vmatpush1.bf16.msra.mxu0 %v2521_v16  ;;  %v2254_v8 = vcombine.high %v435_v63, %v439_v0  ;;  %v2256_v9 = vcombine.high %v436_v3, %v440_v4  ;;  %v2583_v10 = vld [vmem:[%s2907_s11 + $0x260] ss:$8 sps:$4 sm:$0xff]   ;;  %v2591_v12 = vld [vmem:[%s2907_s11 + $0x254] ss:$8 sps:$4 sm:$0xff]   ;;  %v2253_v16 = vcombine.low %v435_v63, %v439_v0  ;;  %v2609_v38 = vld [vmem:[%s2907_s11 + $0x224] ss:$8 sps:$4 sm:$0xff]  }
  0x6d   : > { %1629 = vmatpush1.bf16.msra.mxu1 %v2522_v17  ;;  %1529 = vmatprep.subr.bf16.mxu0 %v2523_v18  ;;  %v2586_v11 = vld [vmem:[%s2907_s11 + $0x360] ss:$8 sps:$4 sm:$0xff]   ;;  %v2594_v13 = vld [vmem:[%s2907_s11 + $0x354] ss:$8 sps:$4 sm:$0xff]   ;;  %v2255_v17 = vcombine.low %v436_v3, %v440_v4  ;;  %v2612_v39 = vld [vmem:[%s2907_s11 + $0x324] ss:$8 sps:$4 sm:$0xff]  }
  0x6e   : > { %1630 = vmatprep.subr.bf16.mxu1 %v2525_v19  ;;  %v443_v14 = vld [vmem:[%s2909_s12 + $0x80] sm:$0xff]  ;;  %v444_v18 = vld [vmem:[%s2909_s12 + $0x88] sm:$0xff]  ;;  %v2610_v43 = vld [vmem:[%s2907_s11 + $0x320] ss:$8 sps:$4 sm:$0xff]  }
  0x6f   : > { %v447_v15 = vld [vmem:[%s2909_s12 + $0xa0] sm:$0xff]  ;;  %v448_v19 = vld [vmem:[%s2909_s12 + $0xa8] sm:$0xff] }
  0x70   : > { %1530 = vmatpush1.bf16.msra.mxu0 %v2527_v20  ;;  %v2589_v20 = vld [vmem:[%s2907_s11 + $0x250] ss:$8 sps:$4 sm:$0xff]   ;;  %v2618_v45 = vld [vmem:[%s2907_s11 + $0x314] ss:$8 sps:$4 sm:$0xff]  }
  0x71   : > { %1631 = vmatpush1.bf16.msra.mxu1 %v2528_v21  ;;  %1531 = vmatprep.subr.bf16.mxu0 %v2529_v22  ;;  %v2592_v21 = vld [vmem:[%s2907_s11 + $0x350] ss:$8 sps:$4 sm:$0xff]   ;;  %v2597_v22 = vld [vmem:[%s2907_s11 + $0x244] ss:$8 sps:$4 sm:$0xff]  }
  0x72   : > { %1632 = vmatprep.subr.bf16.mxu1 %v2531_v23  ;;  %v2600_v23 = vld [vmem:[%s2907_s11 + $0x344] ss:$8 sps:$4 sm:$0xff]   ;;  %v472_v3 = vld [vmem:[%s2909_s12 + $0x168] sm:$0xff] }
  0x73   : > { %v2625_v4 = vld [vmem:[%s2907_s11 + $0x2f0] ss:$8 sps:$4 sm:$0xff]  }
  0x74   : > { %1532 = vmatpush2.bf16.msra.mxu0 %v2533_v24  ;;  %v2262_v24 = vcombine.high %v443_v14, %v447_v15 }
  0x75   : > { %1633 = vmatpush2.bf16.msra.mxu1 %v2534_v25  ;;  %1533 = vmatprep.subr.bf16.mxu0 %v2535_v26  ;;  %v2264_v25 = vcombine.high %v444_v18, %v448_v19  ;;  %v2595_v26 = vld [vmem:[%s2907_s11 + $0x240] ss:$8 sps:$4 sm:$0xff]  }
  0x76   : > { %1634 = vmatprep.subr.bf16.mxu1 %v2537_v27  ;;  %v2598_v27 = vld [vmem:[%s2907_s11 + $0x340] ss:$8 sps:$4 sm:$0xff]  }
  0x78   : > { %1534 = vmatpush2.bf16.msra.mxu0 %v2539_v28  ;;  %v2603_v28 = vld [vmem:[%s2907_s11 + $0x234] ss:$8 sps:$4 sm:$0xff]  }
  0x79   : > { %1635 = vmatpush2.bf16.msra.mxu1 %v2540_v29  ;;  %1535 = vmatprep.subr.bf16.mxu0 %v2541_v30  ;;  %v2606_v29 = vld [vmem:[%s2907_s11 + $0x334] ss:$8 sps:$4 sm:$0xff]   ;;  %v2601_v30 = vld [vmem:[%s2907_s11 + $0x230] ss:$8 sps:$4 sm:$0xff]  }
  0x7a   : > { %1636 = vmatprep.subr.bf16.mxu1 %v2543_v31  ;;  %v2604_v31 = vld [vmem:[%s2907_s11 + $0x330] ss:$8 sps:$4 sm:$0xff]  }
  0x7c   : > { %1536 = vmatpush2.bf16.msra.mxu0 %v2545_v32  ;;  %v451_v32 = vld [vmem:[%s2909_s12 + $0xc0] sm:$0xff] }
  0x7d   : > { %1637 = vmatpush2.bf16.msra.mxu1 %v2546_v33  ;;  %1537 = vmatprep.subr.bf16.mxu0 %v2547_v34  ;;  %v2261_v33 = vcombine.low %v443_v14, %v447_v15  ;;  %v2263_v34 = vcombine.low %v444_v18, %v448_v19  ;;  %v2637_v18 = vld [vmem:[%s2907_s11 + $0x2d0] ss:$8 sps:$4 sm:$0xff]  }
  0x7e   : > { %1638 = vmatprep.subr.bf16.mxu1 %v2549_v35  ;;  %v455_v35 = vld [vmem:[%s2909_s12 + $0xe0] sm:$0xff] }
  0x7f   : > { %v2270_v40 = vcombine.high %v451_v32, %v455_v35  ;;  %v2640_v19 = vld [vmem:[%s2907_s11 + $0x3d0] ss:$8 sps:$4 sm:$0xff]  }
  0x80   : > { %1538 = vmatpush2.bf16.msra.mxu0 %v2551_v36  ;;  %v452_v36 = vld [vmem:[%s2909_s12 + $0xc8] sm:$0xff] }
  0x81   : > { %1639 = vmatpush2.bf16.msra.mxu1 %v2552_v37  ;;  %1539 = vmatprep.subr.bf16.mxu0 %v2553_v42  ;;  %v456_v37 = vld [vmem:[%s2909_s12 + $0xe8] sm:$0xff]  ;;  %v2607_v42 = vld [vmem:[%s2907_s11 + $0x220] ss:$8 sps:$4 sm:$0xff]  }
  0x82   : > { %1640 = vmatprep.subr.bf16.mxu1 %v2555_v44  ;;  %v2272_v41 = vcombine.high %v452_v36, %v456_v37  ;;  %v2615_v44 = vld [vmem:[%s2907_s11 + $0x214] ss:$8 sps:$4 sm:$0xff]  }
  0x84   : > { %1540 = vmatpush2.bf16.msra.mxu0 %v2557_v46  ;;  %v459_v46 = vld [vmem:[%s2909_s12 + $0x100] sm:$0xff] }
  0x85   : > { %1641 = vmatpush2.bf16.msra.mxu1 %v2558_v47  ;;  %1541 = vmatprep.subr.bf16.mxu0 %v2559_v48  ;;  %v463_v47 = vld [vmem:[%s2909_s12 + $0x120] sm:$0xff]  ;;  %v460_v48 = vld [vmem:[%s2909_s12 + $0x108] sm:$0xff] }
  0x86   : > { %1642 = vmatprep.subr.bf16.mxu1 %v2561_v49  ;;  %v2269_v49 = vcombine.low %v451_v32, %v455_v35  ;;  %v2277_v63 = vcombine.low %v459_v46, %v463_v47  ;;  %v430_v32 = vld [vmem:[%s2909_s12 + $0x18] sm:$0xff]  ;;  %v2652_v35 = vld [vmem:[%s2907_s11 + $0x3b0] ss:$8 sps:$4 sm:$0xff]  }
  0x88   : > { %1542 = vmatpush2.bf16.msra.mxu0 %v2563_v50  ;;  %v2271_v50 = vcombine.low %v452_v36, %v456_v37  ;;  %v2661_v36 = vld [vmem:[%s2907_s11 + $0x2a4] ss:$8 sps:$4 sm:$0xff]  }
  0x89   : > { %1643 = vmatpush2.bf16.msra.mxu1 %v2564_v51  ;;  %1543 = vmatprep.subr.bf16.mxu0 %v2565_v52  ;;  %v464_v51 = vld [vmem:[%s2909_s12 + $0x128] sm:$0xff]  ;;  %v2664_v37 = vld [vmem:[%s2907_s11 + $0x3a4] ss:$8 sps:$4 sm:$0xff]  }
  0x8a   : > { %1644 = vmatprep.subr.bf16.mxu1 %v2567_v53  ;;  %v2613_v52 = vld [vmem:[%s2907_s11 + $0x210] ss:$8 sps:$4 sm:$0xff]   ;;  %v2279_v0 = vcombine.low %v460_v48, %v464_v51 }
  0x8b   : > { %v2616_v53 = vld [vmem:[%s2907_s11 + $0x310] ss:$8 sps:$4 sm:$0xff]  }
  0x8c   : > { %1544 = vmatpush2.bf16.msra.mxu0 %v2569_v54  ;;  %v2621_v54 = vld [vmem:[%s2907_s11 + $0x204] ss:$8 sps:$4 sm:$0xff]  }
  0x8d   : > { %1645 = vmatpush2.bf16.msra.mxu1 %v2570_v55  ;;  %1545 = vmatprep.subr.bf16.mxu0 %v2571_v56  ;;  %v2624_v55 = vld [vmem:[%s2907_s11 + $0x304] ss:$8 sps:$4 sm:$0xff]   ;;  %v2278_v56 = vcombine.high %v459_v46, %v463_v47 }
  0x8e   : > { %1646 = vmatprep.subr.bf16.mxu1 %v2573_v57  ;;  %v2280_v57 = vcombine.high %v460_v48, %v464_v51  ;;  %v2673_v46 = vld [vmem:[%s2907_s11 + $0x284] ss:$8 sps:$4 sm:$0xff]   ;;  %v2671_v48 = vld [vmem:[%s2907_s11 + $0x280] ss:$8 sps:$4 sm:$0xff]  }
  0x8f   : > { %v2676_v47 = vld [vmem:[%s2907_s11 + $0x384] ss:$8 sps:$4 sm:$0xff]  }
  0x90   : > { %1546 = vmatpush2.bf16.msra.mxu0 %v2575_v58  ;;  %v2619_v58 = vld [vmem:[%s2907_s11 + $0x200] ss:$8 sps:$4 sm:$0xff]  }
  0x91   : > { %1647 = vmatpush2.bf16.msra.mxu1 %v2576_v59  ;;  %1717 = vmatprep.subr.bf16.mxu0 %v2579_v60  ;;  %v2622_v59 = vld [vmem:[%s2907_s11 + $0x300] ss:$8 sps:$4 sm:$0xff]   ;;  %v2627_v60 = vld [vmem:[%s2907_s11 + $0x2f4] ss:$8 sps:$4 sm:$0xff]  }
  0x92   : > { %1818 = vmatprep.subr.bf16.mxu1 %v2582_v61  ;;  %v2630_v61 = vld [vmem:[%s2907_s11 + $0x3f4] ss:$8 sps:$4 sm:$0xff]   ;;  %v441_v51 = vld [vmem:[%s2909_s12 + $0x70] sm:$0xff] }
  0x93   : > { %1548 = vmatmul.mubr.bf16.vlgmr.msra.gmra.mxu0 %v2245_v1  ;;  %v471_v1 = vld [vmem:[%s2909_s12 + $0x160] sm:$0xff] }
  0x94   : > { %1649 = vmatmul.mubr.bf16.vlgmr.msra.gmra.mxu1 %v2247_v2  ;;  %1718 = vmatpush1.bf16.msra.mxu0 %v2577_v62  ;;  %v467_v62 = vld [vmem:[%s2909_s12 + $0x140] sm:$0xff]  ;;  %v468_v2 = vld [vmem:[%s2909_s12 + $0x148] sm:$0xff] }
  0x95   : > { %1819 = vmatpush1.bf16.msra.mxu1 %v2580_v5  ;;  %1719 = vmatprep.subr.bf16.mxu0 %v2585_v6  ;;  %v2628_v5 = vld [vmem:[%s2907_s11 + $0x3f0] ss:$8 sps:$4 sm:$0xff]   ;;  %v2633_v6 = vld [vmem:[%s2907_s11 + $0x2e4] ss:$8 sps:$4 sm:$0xff]   ;;  %v2285_v14 = vcombine.low %v467_v62, %v471_v1  ;;  %v2287_v15 = vcombine.low %v468_v2, %v472_v3 }
  0x96   : > { %1820 = vmatprep.subr.bf16.mxu1 %v2588_v7  ;;  %1557 = vmatprep.mubr.bf16.mxu0 %v2254_v8  ;;  %v2636_v7 = vld [vmem:[%s2907_s11 + $0x3e4] ss:$8 sps:$4 sm:$0xff]   ;;  %v2286_v8 = vcombine.high %v467_v62, %v471_v1 }
  0x97   : > { %1658 = vmatprep.mubr.bf16.mxu1 %v2256_v9  ;;  %v2288_v9 = vcombine.high %v468_v2, %v472_v3  ;;  %v453_v2 = vld [vmem:[%s2909_s12 + $0xd0] sm:$0xff] }
  0x98   : > { %1720 = vmatpush1.bf16.msra.mxu0 %v2583_v10  ;;  %v2631_v10 = vld [vmem:[%s2907_s11 + $0x2e0] ss:$8 sps:$4 sm:$0xff]  }
  0x99   : > { %1821 = vmatpush1.bf16.msra.mxu1 %v2586_v11  ;;  %1721 = vmatprep.subr.bf16.mxu0 %v2591_v12  ;;  %v2634_v11 = vld [vmem:[%s2907_s11 + $0x3e0] ss:$8 sps:$4 sm:$0xff]   ;;  %v2639_v12 = vld [vmem:[%s2907_s11 + $0x2d4] ss:$8 sps:$4 sm:$0xff]  }
  0x9a   : > { %1822 = vmatprep.subr.bf16.mxu1 %v2594_v13  ;;  %v2642_v13 = vld [vmem:[%s2907_s11 + $0x3d4] ss:$8 sps:$4 sm:$0xff]   ;;  %v457_v3 = vld [vmem:[%s2909_s12 + $0xf0] sm:$0xff] }
  0x9b   : > { %1558 = vmatmul.mubr.bf16.gmra.mxu0 %v2253_v16  ;;  %v475_v16 = vld [vmem:[%s2909_s12 + $0x180] sm:$0xff] }
  0x9c   : > { %1659 = vmatmul.mubr.bf16.gmra.mxu1 %v2255_v17  ;;  %1722 = vmatpush1.bf16.msra.mxu0 %v2589_v20  ;;  %v476_v17 = vld [vmem:[%s2909_s12 + $0x188] sm:$0xff]  ;;  %v2645_v20 = vld [vmem:[%s2907_s11 + $0x2c4] ss:$8 sps:$4 sm:$0xff]  }
  0x9d   : > { %1823 = vmatpush1.bf16.msra.mxu1 %v2592_v21  ;;  %1723 = vmatprep.subr.bf16.mxu0 %v2597_v22  ;;  %v2648_v21 = vld [vmem:[%s2907_s11 + $0x3c4] ss:$8 sps:$4 sm:$0xff]   ;;  %v2294_v22 = vcombine.high %v475_v16, %v475_v16 }
  0x9e   : > { %1824 = vmatprep.subr.bf16.mxu1 %v2600_v23  ;;  %1567 = vmatprep.mubr.bf16.mxu0 %v2262_v24  ;;  %v2296_v23 = vcombine.high %v476_v17, %v476_v17  ;;  %v2643_v24 = vld [vmem:[%s2907_s11 + $0x2c0] ss:$8 sps:$4 sm:$0xff]  }
  0x9f   : > { %1668 = vmatprep.mubr.bf16.mxu1 %v2264_v25  ;;  %v2646_v25 = vld [vmem:[%s2907_s11 + $0x3c0] ss:$8 sps:$4 sm:$0xff]  }
  0xa0   : > { %1724 = vmatpush1.bf16.msra.mxu0 %v2595_v26  ;;  %v2651_v26 = vld [vmem:[%s2907_s11 + $0x2b4] ss:$8 sps:$4 sm:$0xff]  }
  0xa1   : > { %1825 = vmatpush1.bf16.msra.mxu1 %v2598_v27  ;;  %1725 = vmatprep.subr.bf16.mxu0 %v2603_v28  ;;  %v2654_v27 = vld [vmem:[%s2907_s11 + $0x3b4] ss:$8 sps:$4 sm:$0xff]   ;;  %v429_v28 = vld [vmem:[%s2909_s12 + $0x10] sm:$0xff] }
  0xa2   : > { %1826 = vmatprep.subr.bf16.mxu1 %v2606_v29  ;;  %v2293_v29 = vcombine.low %v475_v16, %v475_v16 }
  0xa3   : > { %1568 = vmatmul.mubr.bf16.gmra.mxu0 %v2261_v33  ;;  %v434_v33 = vld [vmem:[%s2909_s12 + $0x38] sm:$0xff] }
  0xa4   : > { %1669 = vmatmul.mubr.bf16.gmra.mxu1 %v2263_v34  ;;  %1726 = vmatpush1.bf16.msra.mxu0 %v2601_v30  ;;  %v2295_v30 = vcombine.low %v476_v17, %v476_v17  ;;  %v2649_v34 = vld [vmem:[%s2907_s11 + $0x2b0] ss:$8 sps:$4 sm:$0xff]  }
  0xa5   : > { %1827 = vmatpush1.bf16.msra.mxu1 %v2604_v31  ;;  %1727 = vmatprep.subr.bf16.mxu0 %v2609_v38  ;;  %v433_v31 = vld [vmem:[%s2909_s12 + $0x30] sm:$0xff] }
  0xa6   : > { %1828 = vmatprep.subr.bf16.mxu1 %v2612_v39  ;;  %1577 = vmatprep.mubr.bf16.mxu0 %v2270_v40  ;;  %v2250_v38 = vcombine.high %v429_v28, %v433_v31  ;;  %v2252_v39 = vcombine.high %v430_v32, %v434_v33  ;;  %v2659_v40 = vld [vmem:[%s2907_s11 + $0x2a0] ss:$8 sps:$4 sm:$0xff]  }
  0xa7   : > { %1678 = vmatprep.mubr.bf16.mxu1 %v2272_v41  ;;  %v2662_v41 = vld [vmem:[%s2907_s11 + $0x3a0] ss:$8 sps:$4 sm:$0xff]  }
  0xa8   : > { %1728 = vmatpush1.bf16.msra.mxu0 %v2607_v42  ;;  %v2667_v42 = vld [vmem:[%s2907_s11 + $0x294] ss:$8 sps:$4 sm:$0xff]  }
  0xa9   : > { %1829 = vmatpush1.bf16.msra.mxu1 %v2610_v43  ;;  %1729 = vmatprep.subr.bf16.mxu0 %v2615_v44  ;;  %v2670_v43 = vld [vmem:[%s2907_s11 + $0x394] ss:$8 sps:$4 sm:$0xff]   ;;  %v2665_v44 = vld [vmem:[%s2907_s11 + $0x290] ss:$8 sps:$4 sm:$0xff]  }
  0xaa   : > { %1830 = vmatprep.subr.bf16.mxu1 %v2618_v45  ;;  %v2668_v45 = vld [vmem:[%s2907_s11 + $0x390] ss:$8 sps:$4 sm:$0xff]  }
  0xab   : > { %1578 = vmatmul.mubr.bf16.gmra.mxu0 %v2269_v49  ;;  %v2674_v49 = vld [vmem:[%s2907_s11 + $0x380] ss:$8 sps:$4 sm:$0xff]  }
  0xac   : > { %1679 = vmatmul.mubr.bf16.gmra.mxu1 %v2271_v50  ;;  %1730 = vmatpush1.bf16.msra.mxu0 %v2613_v52  ;;  %v437_v50 = vld [vmem:[%s2909_s12 + $0x50] sm:$0xff]  ;;  %v438_v52 = vld [vmem:[%s2909_s12 + $0x58] sm:$0xff] }
  0xad   : > { %1831 = vmatpush1.bf16.msra.mxu1 %v2616_v53  ;;  %1731 = vmatprep.subr.bf16.mxu0 %v2621_v54  ;;  %v442_v53 = vld [vmem:[%s2909_s12 + $0x78] sm:$0xff]  ;;  %v2249_v54 = vcombine.low %v429_v28, %v433_v31  ;;  %v2257_v62 = vcombine.low %v437_v50, %v441_v51 }
  0xae   : > { %1832 = vmatprep.subr.bf16.mxu1 %v2624_v55  ;;  %1587 = vmatprep.mubr.bf16.mxu0 %v2278_v56  ;;  %v2251_v55 = vcombine.low %v430_v32, %v434_v33  ;;  %v2258_v56 = vcombine.high %v437_v50, %v441_v51 }
  0xaf   : > { %1688 = vmatprep.mubr.bf16.mxu1 %v2280_v57  ;;  %v2260_v57 = vcombine.high %v438_v52, %v442_v53 }
  0xb0   : > { %1732 = vmatpush1.bf16.msra.mxu0 %v2619_v58  ;;  %v445_v58 = vld [vmem:[%s2909_s12 + $0x90] sm:$0xff] }
  0xb1   : > { %1833 = vmatpush1.bf16.msra.mxu1 %v2622_v59  ;;  %1733 = vmatprep.subr.bf16.mxu0 %v2627_v60  ;;  %v449_v59 = vld [vmem:[%s2909_s12 + $0xb0] sm:$0xff]  ;;  %v446_v60 = vld [vmem:[%s2909_s12 + $0x98] sm:$0xff] }
  0xb2   : > { %1834 = vmatprep.subr.bf16.mxu1 %v2630_v61  ;;  %v450_v61 = vld [vmem:[%s2909_s12 + $0xb8] sm:$0xff] }
  0xb3   : > { %1588 = vmatmul.mubr.bf16.gmra.mxu0 %v2277_v63  ;;  %v2259_v63 = vcombine.low %v438_v52, %v442_v53  ;;  %v2268_v1 = vcombine.high %v446_v60, %v450_v61 }
  0xb4   : > { %1689 = vmatmul.mubr.bf16.gmra.mxu1 %v2279_v0  ;;  %1734 = vmatpush2.bf16.msra.mxu0 %v2625_v4  ;;  %v2266_v0 = vcombine.high %v445_v58, %v449_v59  ;;  %v454_v4 = vld [vmem:[%s2909_s12 + $0xd8] sm:$0xff] }
  0xb5   : > { %1835 = vmatpush2.bf16.msra.mxu1 %v2628_v5  ;;  %1735 = vmatprep.subr.bf16.mxu0 %v2633_v6  ;;  %v458_v5 = vld [vmem:[%s2909_s12 + $0xf8] sm:$0xff]  ;;  %v2265_v6 = vcombine.low %v445_v58, %v449_v59 }
  0xb6   : > { %1836 = vmatprep.subr.bf16.mxu1 %v2636_v7  ;;  %1597 = vmatprep.mubr.bf16.mxu0 %v2286_v8  ;;  %v2267_v7 = vcombine.low %v446_v60, %v450_v61  ;;  %v2274_v8 = vcombine.high %v453_v2, %v457_v3 }
  0xb7   : > { %1698 = vmatprep.mubr.bf16.mxu1 %v2288_v9  ;;  %v2276_v9 = vcombine.high %v454_v4, %v458_v5 }
  0xb8   : > { %1736 = vmatpush2.bf16.msra.mxu0 %v2631_v10  ;;  %v461_v10 = vld [vmem:[%s2909_s12 + $0x110] sm:$0xff] }
  0xb9   : > { %1837 = vmatpush2.bf16.msra.mxu1 %v2634_v11  ;;  %1737 = vmatprep.subr.bf16.mxu0 %v2639_v12  ;;  %v465_v11 = vld [vmem:[%s2909_s12 + $0x130] sm:$0xff]  ;;  %v462_v12 = vld [vmem:[%s2909_s12 + $0x118] sm:$0xff] }
  0xba   : > { %1838 = vmatprep.subr.bf16.mxu1 %v2642_v13  ;;  %v466_v13 = vld [vmem:[%s2909_s12 + $0x138] sm:$0xff]  ;;  %v2282_v16 = vcombine.high %v461_v10, %v465_v11 }
  0xbb   : > { %1598 = vmatmul.mubr.bf16.gmra.mxu0 %v2285_v14  ;;  %v2273_v14 = vcombine.low %v453_v2, %v457_v3  ;;  %v2284_v17 = vcombine.high %v462_v12, %v466_v13 }
  0xbc   : > { %1699 = vmatmul.mubr.bf16.gmra.mxu1 %v2287_v15  ;;  %1738 = vmatpush2.bf16.msra.mxu0 %v2637_v18  ;;  %v2275_v15 = vcombine.low %v454_v4, %v458_v5  ;;  %v469_v18 = vld [vmem:[%s2909_s12 + $0x150] sm:$0xff] }
  0xbd   : > { %1839 = vmatpush2.bf16.msra.mxu1 %v2640_v19  ;;  %1739 = vmatprep.subr.bf16.mxu0 %v2645_v20  ;;  %v473_v19 = vld [vmem:[%s2909_s12 + $0x170] sm:$0xff]  ;;  %v470_v20 = vld [vmem:[%s2909_s12 + $0x158] sm:$0xff] }
  0xbe   : > { %1840 = vmatprep.subr.bf16.mxu1 %v2648_v21  ;;  %1607 = vmatprep.mubr.bf16.mxu0 %v2294_v22  ;;  %v474_v21 = vld [vmem:[%s2909_s12 + $0x178] sm:$0xff]  ;;  %v2281_v22 = vcombine.low %v461_v10, %v465_v11  ;;  %v2289_v28 = vcombine.low %v469_v18, %v473_v19 }
  0xbf   : > { %1708 = vmatprep.mubr.bf16.mxu1 %v2296_v23  ;;  %v2283_v23 = vcombine.low %v462_v12, %v466_v13 }
  0xc0   : > { %1740 = vmatpush2.bf16.msra.mxu0 %v2643_v24  ;;  %v2290_v24 = vcombine.high %v469_v18, %v473_v19 }
  0xc1   : > { %1841 = vmatpush2.bf16.msra.mxu1 %v2646_v25  ;;  %1741 = vmatprep.subr.bf16.mxu0 %v2651_v26  ;;  %v2292_v25 = vcombine.high %v470_v20, %v474_v21  ;;  %v477_v26 = vld [vmem:[%s2909_s12 + $0x190] sm:$0xff] }
  0xc2   : > { %1842 = vmatprep.subr.bf16.mxu1 %v2654_v27  ;;  %v478_v27 = vld [vmem:[%s2909_s12 + $0x198] sm:$0xff]  ;;  %v2297_v32 = vcombine.low %v477_v26, %v477_v26 }
  0xc3   : > { %1608 = vmatmul.mubr.bf16.gmra.mxu0 %v2293_v29  ;;  %v2291_v29 = vcombine.low %v470_v20, %v474_v21  ;;  %v2300_v31 = vcombine.high %v478_v27, %v478_v27  ;;  %v2299_v33 = vcombine.low %v478_v27, %v478_v27 }
  0xc4   : > { %1709 = vmatmul.mubr.bf16.gmra.mxu1 %v2295_v30  ;;  %1742 = vmatpush2.bf16.msra.mxu0 %v2649_v34  ;;  %v2298_v30 = vcombine.high %v477_v26, %v477_v26 }
  0xc5   : > { %1843 = vmatpush2.bf16.msra.mxu1 %v2652_v35  ;;  %1743 = vmatprep.subr.bf16.mxu0 %v2661_v36 }
  0xc6   : > { %1844 = vmatprep.subr.bf16.mxu1 %v2664_v37  ;;  %1749 = vmatprep.mubr.bf16.mxu0 %v2250_v38 }
  0xc7   : > { %1850 = vmatprep.mubr.bf16.mxu1 %v2252_v39 }
  0xc8   : > { %1744 = vmatpush2.bf16.msra.mxu0 %v2659_v40 }
  0xc9   : > { %1845 = vmatpush2.bf16.msra.mxu1 %v2662_v41  ;;  %1745 = vmatprep.subr.bf16.mxu0 %v2667_v42 }
  0xca   : > { %1846 = vmatprep.subr.bf16.mxu1 %v2670_v43 }
  0xcc   : > { %1746 = vmatpush2.bf16.msra.mxu0 %v2665_v44 }
  0xcd   : > { %1847 = vmatpush2.bf16.msra.mxu1 %v2668_v45  ;;  %1747 = vmatprep.subr.bf16.mxu0 %v2673_v46 }
  0xce   : > { %1848 = vmatprep.subr.bf16.mxu1 %v2676_v47 }
  0xd0   : > { %1748 = vmatpush2.bf16.msra.mxu0 %v2671_v48 }
  0xd1   : > { %1849 = vmatpush2.bf16.msra.mxu1 %v2674_v49 }
  0xd3   : > { %1750 = vmatmul.mubr.bf16.vlgmr.msra.gmra.mxu0 %v2249_v54 }
  0xd4   : > { %1851 = vmatmul.mubr.bf16.vlgmr.msra.gmra.mxu1 %v2251_v55  ;;  %1759 = vmatprep.mubr.bf16.mxu0 %v2258_v56 }
  0xd5   : > { %1860 = vmatprep.mubr.bf16.mxu1 %v2260_v57 }
  0xdb   : > { %1760 = vmatmul.mubr.bf16.gmra.mxu0 %v2257_v62 }
  0xdc   : > { %1861 = vmatmul.mubr.bf16.gmra.mxu1 %v2259_v63  ;;  %1769 = vmatprep.mubr.bf16.mxu0 %v2266_v0 }
  0xdd   : > { %1870 = vmatprep.mubr.bf16.mxu1 %v2268_v1 }
  0xe3   : > { %1770 = vmatmul.mubr.bf16.gmra.mxu0 %v2265_v6 }
  0xe4   : > { %1871 = vmatmul.mubr.bf16.gmra.mxu1 %v2267_v7  ;;  %1779 = vmatprep.mubr.bf16.mxu0 %v2274_v8 }
  0xe5   : > { %1880 = vmatprep.mubr.bf16.mxu1 %v2276_v9 }
  0xeb   : > { %1780 = vmatmul.mubr.bf16.gmra.mxu0 %v2273_v14 }
  0xec   : > { %1881 = vmatmul.mubr.bf16.gmra.mxu1 %v2275_v15  ;;  %1789 = vmatprep.mubr.bf16.mxu0 %v2282_v16 }
  0xed   : > { %1890 = vmatprep.mubr.bf16.mxu1 %v2284_v17 }
  0xf3   : > { %1790 = vmatmul.mubr.bf16.gmra.mxu0 %v2281_v22 }
  0xf4   : > { %1891 = vmatmul.mubr.bf16.gmra.mxu1 %v2283_v23  ;;  %1799 = vmatprep.mubr.bf16.mxu0 %v2290_v24 }
  0xf5   : > { %1900 = vmatprep.mubr.bf16.mxu1 %v2292_v25 }
  0xfb   : > { %1800 = vmatmul.mubr.bf16.gmra.mxu0 %v2289_v28 }
  0xfc   : > { %1901 = vmatmul.mubr.bf16.gmra.mxu1 %v2291_v29  ;;  %1809 = vmatprep.mubr.bf16.mxu0 %v2298_v30 }
  0xfd   : > { %1910 = vmatprep.mubr.bf16.mxu1 %v2300_v31  ;;  %v401_v31 = vld [vmem:[#allocation2 + $0xb0] sm:$0xff] }
 0x103   : > { %1810 = vmatmul.mubr.bf16.gmra.mxu0 %v2297_v32 }
 0x104   : > { %1911 = vmatmul.mubr.bf16.gmra.mxu1 %v2299_v33 }
 0x153   : > { %v1549_v34 = vpop.f32.mrf.mxu0 }
 0x154   : > { %v1650_v35 = vpop.f32.mrf.mxu1 }
 0x155   : > { %v1551_v36 = vpop.f32.mrf.mxu0  ;;  %v1651_v26 = vadd.f32 %v1650_v35, %v1549_v34  ;;  %v403_v34 = vld [vmem:[#allocation2 + $0x10] sm:$0xff] }
 0x156   : > { %v1652_v37 = vpop.f32.mrf.mxu1 }
 0x157   : > { %v1553_v38 = vpop.f32.mrf.mxu0  ;;  %v1653_v29 = vadd.f32 %v1652_v37, %v1551_v36 }
 0x158   : > { %v1654_v39 = vpop.f32.mrf.mxu1 }
 0x159   : > { %v3104_v40 = vpop.f32.mrf.mxu0 }
 0x15a   : > { %v3106_v41 = vpop.f32.mrf.mxu1 }
 0x15b   : > { %v3108_v42 = vpop.f32.mrf.mxu0 }
 0x15c   : > { %v3110_v43 = vpop.f32.mrf.mxu1 }
 0x15d   : > { %v3112_v44 = vpop.f32.mrf.mxu0  ;;  %v1661_v36 = vadd.f32 %v3110_v43, %v3108_v42 }
 0x15e   : > { %v3114_v45 = vpop.f32.mrf.mxu1 }
 0x15f   : > { %v3116_v46 = vpop.f32.mrf.mxu0 }
 0x160   : > { %v3118_v47 = vpop.f32.mrf.mxu1 }
 0x161   : > { %v3120_v48 = vpop.f32.mrf.mxu0  ;;  %v1665_v42 = vadd.f32 %v3118_v47, %v3116_v46 }
 0x162   : > { %v3122_v49 = vpop.f32.mrf.mxu1 }
 0x163   : > { %v3124_v50 = vpop.f32.mrf.mxu0 }
 0x164   : > { %v3126_v51 = vpop.f32.mrf.mxu1 }
 0x165   : > { %v3128_v52 = vpop.f32.mrf.mxu0  ;;  %v1671_v46 = vadd.f32 %v3126_v51, %v3124_v50 }
 0x166   : > { %v3130_v53 = vpop.f32.mrf.mxu1 }
 0x167   : > { %v3132_v54 = vpop.f32.mrf.mxu0 }
 0x168   : > { %v3134_v55 = vpop.f32.mrf.mxu1 }
 0x169   : > { %v3136_v56 = vpop.f32.mrf.mxu0  ;;  %v1675_v50 = vadd.f32 %v3134_v55, %v3132_v54 }
 0x16a   : > { %v3138_v57 = vpop.f32.mrf.mxu1 }
 0x16b   : > { %v3140_v58 = vpop.f32.mrf.mxu0 }
 0x16c   : > { %v3142_v59 = vpop.f32.mrf.mxu1 }
 0x16d   : > { %v3144_v60 = vpop.f32.mrf.mxu0  ;;  %v1681_v54 = vadd.f32 %v3142_v59, %v3140_v58 }
 0x16e   : > { %v3146_v61 = vpop.f32.mrf.mxu1 }
 0x16f   : > { %v3148_v62 = vpop.f32.mrf.mxu0 }
 0x170   : > { %v3150_v63 = vpop.f32.mrf.mxu1 }
 0x171   : > { %v3152_v0 = vpop.f32.mrf.mxu0  ;;  %v1685_v58 = vadd.f32 %v3150_v63, %v3148_v62 }
 0x172   : > { %v3154_v1 = vpop.f32.mrf.mxu1 }
 0x173   : > { %v3156_v2 = vpop.f32.mrf.mxu0 }
 0x174   : > { %v3158_v3 = vpop.f32.mrf.mxu1 }
 0x175   : > { %v3160_v4 = vpop.f32.mrf.mxu0  ;;  %v1691_v62 = vadd.f32 %v3158_v3, %v3156_v2 }
 0x176   : > { %v3162_v5 = vpop.f32.mrf.mxu1 }
 0x177   : > { %v3164_v6 = vpop.f32.mrf.mxu0 }
 0x178   : > { %v3166_v7 = vpop.f32.mrf.mxu1 }
 0x179   : > { %v3168_v8 = vpop.f32.mrf.mxu0  ;;  %v1695_v2 = vadd.f32 %v3166_v7, %v3164_v6 }
 0x17a   : > { %v3170_v9 = vpop.f32.mrf.mxu1 }
 0x17b   : > { %v3172_v10 = vpop.f32.mrf.mxu0 }
 0x17c   : > { %v3174_v11 = vpop.f32.mrf.mxu1 }
 0x17d   : > { %v3176_v12 = vpop.f32.mrf.mxu0  ;;  %v1701_v6 = vadd.f32 %v3174_v11, %v3172_v10 }
 0x17e   : > { %v3178_v13 = vpop.f32.mrf.mxu1 }
 0x17f   : > { %v3180_v14 = vpop.f32.mrf.mxu0 }
 0x180   : > { %v3182_v15 = vpop.f32.mrf.mxu1 }
 0x181   : > { %3365 = vst [vmem:[#allocation4_spill] sm:$0xff] %v3182_v15  ;;  %v3184_v16 = vpop.f32.mrf.mxu0 }
 0x182   : > { %3366 = vst [vmem:[#allocation5_spill] sm:$0xff] %v3184_v16  ;;  %v3186_v17 = vpop.f32.mrf.mxu1 }
 0x183   : > { %3367 = vst [vmem:[#allocation6_spill] sm:$0xff] %v3186_v17  ;;  %v3188_v18 = vpop.f32.mrf.mxu0  ;;  %v1655_v17 = vadd.f32 %v1654_v39, %v1553_v38 }
 0x184   : > { %3368 = vst [vmem:[#allocation7_spill] sm:$0xff] %v3188_v18  ;;  %v3190_v19 = vpop.f32.mrf.mxu1 }
 0x185   : > { %3369 = vst [vmem:[#allocation8_spill] sm:$0xff] %v3190_v19  ;;  %v3192_v20 = vpop.f32.mrf.mxu0  ;;  %v402_v19 = vld [vmem:[#allocation2] sm:$0xff] }
 0x186   : > { %3370 = vst [vmem:[#allocation9_spill] sm:$0xff] %v3192_v20  ;;  %v3194_v21 = vpop.f32.mrf.mxu1 }
 0x187   : > { %3371 = vst [vmem:[#allocation10_spill] sm:$0xff] %v3194_v21  ;;  %v1613_v22 = vpop.f32.mrf.mxu0 }
 0x188   : > { %v1714_v23 = vpop.f32.mrf.mxu1  ;;  %v1657_v22 = vadd.f32 %v3106_v41, %v3104_v40 }
 0x189   : > { %v1614_v24 = vpop.f32.mrf.mxu0 }
 0x18a   : > { %v1715_v25 = vpop.f32.mrf.mxu1 }
 0x193   : > { %v1751_v27 = vpop.f32.mrf.mxu0 }
 0x194   : > { %v1852_v28 = vpop.f32.mrf.mxu1  ;;  %v1752_v30 = vadd.f32 %v1751_v27, %v1651_v26  ;;  %v404_v26 = vld [vmem:[#allocation2 + $0x48] sm:$0xff] }
 0x195   : > { %v1753_v32 = vpop.f32.mrf.mxu0 }
 0x196   : > { %v1854_v33 = vpop.f32.mrf.mxu1  ;;  %v1853_v18 = vadd.f32 %v1852_v28, %v1752_v30  ;;  %v1754_v16 = vadd.f32 %v1753_v32, %v1653_v29  ;;  %v1663_v29 = vadd.f32 %v3114_v45, %v3112_v44  ;;  %v406_v30 = vld [vmem:[#allocation2 + $0x28] sm:$0xff]  ;;  %v1667_v44 = vadd.f32 %v3122_v49, %v3120_v48 }
 0x197   : > { %v1755_v15 = vpop.f32.mrf.mxu0  ;;  %v1673_v48 = vadd.f32 %v3130_v53, %v3128_v52  ;;  %v1677_v52 = vadd.f32 %v3138_v57, %v3136_v56  ;;  %v1683_v56 = vadd.f32 %v3146_v61, %v3144_v60  ;;  %v1687_v60 = vadd.f32 %v3154_v1, %v3152_v0 }
 0x198   : > { %v1856_v20 = vpop.f32.mrf.mxu1  ;;  %v1919_v23 = vadd.f32 %v1853_v18, %v401_v31  ;;  %v1855_v24 = vadd.f32 %v1854_v33, %v1754_v16  ;;  %v1756_v25 = vadd.f32 %v1755_v15, %v1655_v17  ;;  %v405_v16 = vld [vmem:[#allocation2 + $0x60] sm:$0xff]  ;;  %v1693_v0 = vadd.f32 %v3162_v5, %v3160_v4 }
 0x199   : > { %v1757_v35 = vpop.f32.mrf.mxu0  ;;  %v1697_v4 = vadd.f32 %v3170_v9, %v3168_v8  ;;  %v1703_v8 = vadd.f32 %v3178_v13, %v3176_v12 }
 0x19a   : > { %v1858_v21 = vpop.f32.mrf.mxu1  ;;  %1945 = vst [vmem:[#allocation2 + $0xb0] sm:$0xff] %v1919_v23  ;;  %v1920_v37 = vadd.f32 %v1855_v24, %v402_v19  ;;  %v1857_v38 = vadd.f32 %v1856_v20, %v1756_v25  ;;  %v1758_v39 = vadd.f32 %v1757_v35, %v1657_v22  ;;  %v407_v22 = vld [vmem:[#allocation2 + $0x40] sm:$0xff]  ;;  %v408_v35 = vld [vmem:[#allocation2 + $0x78] sm:$0xff] }
 0x19b   : > { %v1761_v27 = vpop.f32.mrf.mxu0 }
 0x19c   : > { %v1862_v28 = vpop.f32.mrf.mxu1  ;;  %1946 = vst [vmem:[#allocation2] sm:$0xff] %v1920_v37  ;;  %v1921_v40 = vadd.f32 %v1857_v38, %v403_v34  ;;  %v1859_v41 = vadd.f32 %v1858_v21, %v1758_v39  ;;  %v1762_v15 = vadd.f32 %v1761_v27, %v1661_v36 }
 0x19d   : > { %v1763_v17 = vpop.f32.mrf.mxu0 }
 0x19e   : > { %v1864_v18 = vpop.f32.mrf.mxu1  ;;  %1947 = vst [vmem:[#allocation2 + $0x10] sm:$0xff] %v1921_v40  ;;  %v1922_v43 = vadd.f32 %v1859_v41, %v404_v26  ;;  %v1863_v19 = vadd.f32 %v1862_v28, %v1762_v15  ;;  %v1764_v20 = vadd.f32 %v1763_v17, %v1663_v29  ;;  %v409_v26 = vld [vmem:[#allocation2 + $0x80] sm:$0xff]  ;;  %v410_v41 = vld [vmem:[#allocation2 + $0xa8] sm:$0xff] }
 0x19f   : > { %v1765_v31 = vpop.f32.mrf.mxu0 }
 0x1a0   : > { %v1866_v32 = vpop.f32.mrf.mxu1  ;;  %1948 = vst [vmem:[#allocation2 + $0x48] sm:$0xff] %v1922_v43  ;;  %v1923_v45 = vadd.f32 %v1863_v19, %v405_v16  ;;  %v1865_v21 = vadd.f32 %v1864_v18, %v1764_v20  ;;  %v1766_v33 = vadd.f32 %v1765_v31, %v1665_v42  ;;  %v411_v42 = vld [vmem:[#allocation2 + $0x50] sm:$0xff] }
 0x1a1   : > { %v1767_v23 = vpop.f32.mrf.mxu0  ;;  %v412_v31 = vld [vmem:[#allocation2 + $0x30] sm:$0xff] }
 0x1a2   : > { %v1868_v24 = vpop.f32.mrf.mxu1  ;;  %1949 = vst [vmem:[#allocation2 + $0x60] sm:$0xff] %v1923_v45  ;;  %v1924_v47 = vadd.f32 %v1865_v21, %v406_v30  ;;  %v1867_v25 = vadd.f32 %v1866_v32, %v1766_v33  ;;  %v1768_v34 = vadd.f32 %v1767_v23, %v1667_v44  ;;  %v413_v33 = vld [vmem:[#allocation2 + $0x88] sm:$0xff] }
 0x1a3   : > { %v1771_v36 = vpop.f32.mrf.mxu0 }
 0x1a4   : > { %v1872_v37 = vpop.f32.mrf.mxu1  ;;  %1950 = vst [vmem:[#allocation2 + $0x28] sm:$0xff] %v1924_v47  ;;  %v1925_v49 = vadd.f32 %v1867_v25, %v407_v22  ;;  %v1869_v38 = vadd.f32 %v1868_v24, %v1768_v34  ;;  %v1772_v39 = vadd.f32 %v1771_v36, %v1671_v46  ;;  %v414_v47 = vld [vmem:[#allocation2 + $0x70] sm:$0xff] }
 0x1a5   : > { %v1773_v27 = vpop.f32.mrf.mxu0 }
 0x1a6   : > { %v1874_v28 = vpop.f32.mrf.mxu1  ;;  %1951 = vst [vmem:[#allocation2 + $0x40] sm:$0xff] %v1925_v49  ;;  %v1926_v51 = vadd.f32 %v1869_v38, %v408_v35  ;;  %v1873_v29 = vadd.f32 %v1872_v37, %v1772_v39  ;;  %v1774_v40 = vadd.f32 %v1773_v27, %v1673_v48  ;;  %v415_v37 = vld [vmem:[#allocation2 + $0x8] sm:$0xff] }
 0x1a7   : > { %v1775_v15 = vpop.f32.mrf.mxu0 }
 0x1a8   : > { %v1876_v16 = vpop.f32.mrf.mxu1  ;;  %1952 = vst [vmem:[#allocation2 + $0x78] sm:$0xff] %v1926_v51  ;;  %v1927_v53 = vadd.f32 %v1873_v29, %v409_v26  ;;  %v1875_v17 = vadd.f32 %v1874_v28, %v1774_v40  ;;  %v1776_v18 = vadd.f32 %v1775_v15, %v1675_v50  ;;  %v416_v26 = vld [vmem:[#allocation2 + $0x38] sm:$0xff]  ;;  %v417_v29 = vld [vmem:[#allocation2 + $0x20] sm:$0xff] }
 0x1a9   : > { %v1777_v43 = vpop.f32.mrf.mxu0 }
 0x1aa   : > { %v1878_v19 = vpop.f32.mrf.mxu1  ;;  %1953 = vst [vmem:[#allocation2 + $0x80] sm:$0xff] %v1927_v53  ;;  %v1928_v55 = vadd.f32 %v1875_v17, %v410_v41  ;;  %v1877_v20 = vadd.f32 %v1876_v16, %v1776_v18  ;;  %v1778_v30 = vadd.f32 %v1777_v43, %v1677_v52  ;;  %v418_v52 = vld [vmem:[#allocation2 + $0xb8] sm:$0xff] }
 0x1ab   : > { %v1781_v32 = vpop.f32.mrf.mxu0  ;;  %v419_v43 = vld [vmem:[#allocation2 + $0x58] sm:$0xff] }
 0x1ac   : > { %v1882_v44 = vpop.f32.mrf.mxu1  ;;  %1954 = vst [vmem:[#allocation2 + $0xa8] sm:$0xff] %v1928_v55  ;;  %v1929_v57 = vadd.f32 %v1877_v20, %v411_v42  ;;  %v1879_v45 = vadd.f32 %v1878_v19, %v1778_v30  ;;  %v1782_v21 = vadd.f32 %v1781_v32, %v1681_v54  ;;  %v420_v30 = vld [vmem:[#allocation2 + $0xc8] sm:$0xff] }
 0x1ad   : > { %v1783_v22 = vpop.f32.mrf.mxu0 }
 0x1ae   : > { %v1884_v23 = vpop.f32.mrf.mxu1  ;;  %1955 = vst [vmem:[#allocation2 + $0x50] sm:$0xff] %v1929_v57  ;;  %v1930_v59 = vadd.f32 %v1879_v45, %v412_v31  ;;  %v1883_v24 = vadd.f32 %v1882_v44, %v1782_v21  ;;  %v1784_v46 = vadd.f32 %v1783_v22, %v1683_v56  ;;  %v421_v57 = vld [vmem:[#allocation2 + $0xa0] sm:$0xff] }
 0x1af   : > { %v1785_v25 = vpop.f32.mrf.mxu0 }
 0x1b0   : > { %v1886_v34 = vpop.f32.mrf.mxu1  ;;  %1956 = vst [vmem:[#allocation2 + $0x30] sm:$0xff] %v1930_v59  ;;  %v1931_v61 = vadd.f32 %v1883_v24, %v413_v33  ;;  %v1885_v35 = vadd.f32 %v1884_v23, %v1784_v46  ;;  %v1786_v36 = vadd.f32 %v1785_v25, %v1685_v58  ;;  %v3372_v33 = vld [vmem:[#allocation4_spill] sm:$0xff]  ;;  %v3373_v46 = vld [vmem:[#allocation5_spill] sm:$0xff] }
 0x1b1   : > { %v1787_v48 = vpop.f32.mrf.mxu0  ;;  %v1705_v10 = vadd.f32 %v3372_v33, %v3180_v14  ;;  %v422_v58 = vld [vmem:[#allocation2 + $0x90] sm:$0xff] }
 0x1b2   : > { %v1888_v49 = vpop.f32.mrf.mxu1  ;;  %1957 = vst [vmem:[#allocation2 + $0x88] sm:$0xff] %v1931_v61  ;;  %v1932_v63 = vadd.f32 %v1885_v35, %v414_v47  ;;  %v1887_v38 = vadd.f32 %v1886_v34, %v1786_v36  ;;  %v1788_v39 = vadd.f32 %v1787_v48, %v1687_v60  ;;  %v3374_v47 = vld [vmem:[#allocation6_spill] sm:$0xff]  ;;  %v423_v60 = vld [vmem:[#allocation2 + $0x98] sm:$0xff]  ;;  %v3375_v36 = vld [vmem:[#allocation7_spill] sm:$0xff] }
 0x1b3   : > { %v1791_v27 = vpop.f32.mrf.mxu0  ;;  %v1707_v12 = vadd.f32 %v3374_v47, %v3373_v46 }
 0x1b4   : > { %v1892_v28 = vpop.f32.mrf.mxu1  ;;  %1958 = vst [vmem:[#allocation2 + $0x70] sm:$0xff] %v1932_v63  ;;  %v1933_v1 = vadd.f32 %v1887_v38, %v415_v37  ;;  %v1889_v50 = vadd.f32 %v1888_v49, %v1788_v39  ;;  %v1792_v51 = vadd.f32 %v1791_v27, %v1691_v62  ;;  %v3376_v37 = vld [vmem:[#allocation8_spill] sm:$0xff]  ;;  %v424_v63 = vld [vmem:[#allocation2 + $0x18] sm:$0xff]  ;;  %v3378_v27 = vld [vmem:[#allocation10_spill] sm:$0xff] }
 0x1b5   : > { %v1793_v40 = vpop.f32.mrf.mxu0  ;;  %v1711_v14 = vadd.f32 %v3376_v37, %v3375_v36 }
 0x1b6   : > { %v1894_v41 = vpop.f32.mrf.mxu1  ;;  %1959 = vst [vmem:[#allocation2 + $0x8] sm:$0xff] %v1933_v1  ;;  %v1934_v3 = vadd.f32 %v1889_v50, %v416_v26  ;;  %v1893_v15 = vadd.f32 %v1892_v28, %v1792_v51  ;;  %v1794_v16 = vadd.f32 %v1793_v40, %v1693_v0  ;;  %v3377_v26 = vld [vmem:[#allocation9_spill] sm:$0xff]  ;;  %v425_v51 = vld [vmem:[#allocation2 + $0xc0] sm:$0xff] }
 0x1b7   : > { %v1795_v53 = vpop.f32.mrf.mxu0  ;;  %v1713_v28 = vadd.f32 %v3378_v27, %v3377_v26 }
 0x1b8   : > { %v1896_v17 = vpop.f32.mrf.mxu1  ;;  %1960 = vst [vmem:[#allocation2 + $0x38] sm:$0xff] %v1934_v3  ;;  %v1935_v5 = vadd.f32 %v1893_v15, %v417_v29  ;;  %v1895_v18 = vadd.f32 %v1894_v41, %v1794_v16  ;;  %v1796_v42 = vadd.f32 %v1795_v53, %v1695_v2  ;;  %v426_v15 = vld [vmem:[#allocation2 + $0x68] sm:$0xff] }
 0x1b9   : > { %v1797_v19 = vpop.f32.mrf.mxu0 }
 0x1ba   : > { %v1898_v54 = vpop.f32.mrf.mxu1  ;;  %1961 = vst [vmem:[#allocation2 + $0x20] sm:$0xff] %v1935_v5  ;;  %v1936_v7 = vadd.f32 %v1895_v18, %v418_v52  ;;  %v1897_v55 = vadd.f32 %v1896_v17, %v1796_v42  ;;  %v1798_v20 = vadd.f32 %v1797_v19, %v1697_v4 }
 0x1bb   : > { %v1801_v31 = vpop.f32.mrf.mxu0 }
 0x1bc   : > { %v1902_v32 = vpop.f32.mrf.mxu1  ;;  %1962 = vst [vmem:[#allocation2 + $0xb8] sm:$0xff] %v1936_v7  ;;  %v1937_v9 = vadd.f32 %v1897_v55, %v419_v43  ;;  %v1899_v44 = vadd.f32 %v1898_v54, %v1798_v20  ;;  %v1802_v56 = vadd.f32 %v1801_v31, %v1701_v6 }
 0x1bd   : > { %v1803_v45 = vpop.f32.mrf.mxu0 }
 0x1be   : > { %v1904_v21 = vpop.f32.mrf.mxu1  ;;  %1963 = vst [vmem:[#allocation2 + $0x58] sm:$0xff] %v1937_v9  ;;  %v1938_v11 = vadd.f32 %v1899_v44, %v420_v30  ;;  %v1903_v22 = vadd.f32 %v1902_v32, %v1802_v56  ;;  %v1804_v23 = vadd.f32 %v1803_v45, %v1703_v8 }
 0x1bf   : > { %v1805_v59 = vpop.f32.mrf.mxu0 }
 0x1c0   : > { %v1906_v24 = vpop.f32.mrf.mxu1  ;;  %1964 = vst [vmem:[#allocation2 + $0xc8] sm:$0xff] %v1938_v11  ;;  %v1939_v13 = vadd.f32 %v1903_v22, %v421_v57  ;;  %v1905_v25 = vadd.f32 %v1904_v21, %v1804_v23  ;;  %v1806_v34 = vadd.f32 %v1805_v59, %v1705_v10 }
 0x1c1   : > { %v1807_v61 = vpop.f32.mrf.mxu0 }
 0x1c2   : > { %v1908_v35 = vpop.f32.mrf.mxu1  ;;  %1965 = vst [vmem:[#allocation2 + $0xa0] sm:$0xff] %v1939_v13  ;;  %v1940_v48 = vadd.f32 %v1905_v25, %v422_v58  ;;  %v1907_v49 = vadd.f32 %v1906_v24, %v1806_v34  ;;  %v1808_v62 = vadd.f32 %v1807_v61, %v1707_v12 }
 0x1c3   : > { %v1811_v38 = vpop.f32.mrf.mxu0 }
 0x1c4   : > { %v1912_v39 = vpop.f32.mrf.mxu1  ;;  %1966 = vst [vmem:[#allocation2 + $0x90] sm:$0xff] %v1940_v48  ;;  %v1941_v0 = vadd.f32 %v1907_v49, %v423_v60  ;;  %v1909_v1 = vadd.f32 %v1908_v35, %v1808_v62  ;;  %v1812_v50 = vadd.f32 %v1811_v38, %v1711_v14 }
 0x1c5   : > { %v1813_v29 = vpop.f32.mrf.mxu0 }
 0x1c6   : > { %v1914_v40 = vpop.f32.mrf.mxu1  ;;  %1967 = vst [vmem:[#allocation2 + $0x98] sm:$0xff] %v1941_v0  ;;  %v1942_v41 = vadd.f32 %v1909_v1, %v424_v63  ;;  %v1913_v2 = vadd.f32 %v1912_v39, %v1812_v50  ;;  %v1814_v3 = vadd.f32 %v1813_v29, %v1713_v28 }
 0x1c7   : > { %v1815_v16 = vpop.f32.mrf.mxu0 }
 0x1c8   : > { %v1916_v52 = vpop.f32.mrf.mxu1  ;;  %1968 = vst [vmem:[#allocation2 + $0x18] sm:$0xff] %v1942_v41  ;;  %v1943_v53 = vadd.f32 %v1913_v2, %v425_v51  ;;  %v1915_v17 = vadd.f32 %v1914_v40, %v1814_v3  ;;  %1974 = sbr.rel (%p2429_p12) target bundleno = 504 (0x1f8), region = 63 }
 0x1c9   : > { %v1816_v4 = vpop.f32.mrf.mxu0 }
 0x1ca   : > { %v1917_v5 = vpop.f32.mrf.mxu1  ;;  %1969 = vst [vmem:[#allocation2 + $0xc0] sm:$0xff] %v1943_v53  ;;  %v1944_v18 = vadd.f32 %v1915_v17, %v426_v15 }
 0x1cc   : > { %1970 = vst [vmem:[#allocation2 + $0x68] sm:$0xff] %v1944_v18 }
 0x1cd   : > { %v1975_v42 = vld [vmem:[#allocation2 + $0xb0] sm:$0xff]  ;;  %v1976_v43 = vld [vmem:[#allocation2] sm:$0xff]  ;;  %v1978_v20 = vld [vmem:[#allocation2 + $0x48] sm:$0xff] }
 0x1ce   : > { %v1977_v19 = vld [vmem:[#allocation2 + $0x10] sm:$0xff]  ;;  %2001 = vst [vmem:[%s3362_s2] sm:$0xff] %v1975_v42  ;;  %v2063_v54 = vmul.f32 %v1975_v42, %v1975_v42  ;;  %2002 = vst [vmem:[%s3362_s2 + $0x8] sm:$0xff] %v1976_v43  ;;  %v2064_v6 = vmul.f32 %v1976_v43, %v1976_v43  ;;  %v1979_v30 = vld [vmem:[#allocation2 + $0x60] sm:$0xff]  ;;  %v2045_v32 = vadd.f32 %v1978_v20, %v1976_v43 }
 0x1cf   : > { %2003 = vst [vmem:[%s3362_s2 + $0x10] sm:$0xff] %v1977_v19  ;;  %v2027_v7 = vadd.f32 %v1977_v19, %v1975_v42  ;;  %v2065_v55 = vmul.f32 %v1977_v19, %v1977_v19  ;;  %v1980_v31 = vld [vmem:[#allocation2 + $0x28] sm:$0xff]  ;;  %2004 = vst [vmem:[%s3362_s2 + $0x18] sm:$0xff] %v1978_v20  ;;  %v2066_v8 = vmul.f32 %v1978_v20, %v1978_v20  ;;  %v1981_v56 = vld [vmem:[#allocation2 + $0x40] sm:$0xff] }
 0x1d0   : > { %2005 = vst [vmem:[%s3362_s2 + $0x20] sm:$0xff] %v1979_v30  ;;  %v2067_v9 = vmul.f32 %v1979_v30, %v1979_v30  ;;  %2006 = vst [vmem:[%s3362_s2 + $0x28] sm:$0xff] %v1980_v31  ;;  %v2068_v44 = vmul.f32 %v1980_v31, %v1980_v31  ;;  %v1982_v57 = vld [vmem:[#allocation2 + $0x78] sm:$0xff]  ;;  %v1983_v45 = vld [vmem:[#allocation2 + $0x80] sm:$0xff]  ;;  %v2069_v10 = vmul.f32 %v1981_v56, %v1981_v56 }
 0x1d1   : > { %v2089_v21 = vadd.f32 %v2065_v55, %v2063_v54  ;;  %v2028_v33 = vadd.f32 %v2027_v7, %v1979_v30  ;;  %2007 = vst [vmem:[%s3362_s2 + $0x30] sm:$0xff] %v1981_v56  ;;  %2008 = vst [vmem:[%s3362_s2 + $0x38] sm:$0xff] %v1982_v57  ;;  %v1984_v11 = vld [vmem:[#allocation2 + $0xa8] sm:$0xff]  ;;  %v1985_v22 = vld [vmem:[#allocation2 + $0x50] sm:$0xff]  ;;  %v2107_v58 = vadd.f32 %v2066_v8, %v2064_v6 }
 0x1d2   : > { %2009 = vst [vmem:[%s3362_s2 + $0x40] sm:$0xff] %v1983_v45  ;;  %v1986_v23 = vld [vmem:[#allocation2 + $0x30] sm:$0xff]  ;;  %v2046_v59 = vadd.f32 %v2045_v32, %v1980_v31  ;;  %v2070_v24 = vmul.f32 %v1982_v57, %v1982_v57  ;;  %2010 = vst [vmem:[%s3362_s2 + $0x48] sm:$0xff] %v1984_v11  ;;  %v1987_v46 = vld [vmem:[#allocation2 + $0x88] sm:$0xff]  ;;  %v2071_v34 = vmul.f32 %v1983_v45, %v1983_v45 }
 0x1d3   : > { %2011 = vst [vmem:[%s3362_s2 + $0x50] sm:$0xff] %v1985_v22  ;;  %2012 = vst [vmem:[%s3362_s2 + $0x58] sm:$0xff] %v1986_v23  ;;  %v1988_v47 = vld [vmem:[#allocation2 + $0x70] sm:$0xff]  ;;  %v1989_v12 = vld [vmem:[#allocation2 + $0x8] sm:$0xff]  ;;  %v2090_v13 = vadd.f32 %v2089_v21, %v2067_v9  ;;  %v2029_v25 = vadd.f32 %v2028_v33, %v1981_v56  ;;  %v2108_v36 = vadd.f32 %v2107_v58, %v2068_v44 }
 0x1d4   : > { %2013 = vst [vmem:[%s3362_s2 + $0x60] sm:$0xff] %v1987_v46  ;;  %2014 = vst [vmem:[%s3362_s2 + $0x68] sm:$0xff] %v1988_v47  ;;  %v1990_v60 = vld [vmem:[#allocation2 + $0x38] sm:$0xff]  ;;  %v1991_v61 = vld [vmem:[#allocation2 + $0x20] sm:$0xff]  ;;  %v2047_v37 = vadd.f32 %v2046_v59, %v1982_v57  ;;  %v2072_v14 = vmul.f32 %v1984_v11, %v1984_v11  ;;  %v2073_v39 = vmul.f32 %v1985_v22, %v1985_v22 }
 0x1d5   : > { %2015 = vst [vmem:[%s3362_s2 + $0x70] sm:$0xff] %v1989_v12  ;;  %v1992_v35 = vld [vmem:[#allocation2 + $0xb8] sm:$0xff]  ;;  %2016 = vst [vmem:[%s3362_s2 + $0x78] sm:$0xff] %v1990_v60  ;;  %v1994_v49 = vld [vmem:[#allocation2 + $0xc8] sm:$0xff]  ;;  %v2091_v63 = vadd.f32 %v2090_v13, %v2069_v10  ;;  %v2030_v38 = vadd.f32 %v2029_v25, %v1983_v45  ;;  %v2109_v0 = vadd.f32 %v2108_v36, %v2070_v24 }
 0x1d6   : > { %2017 = vst [vmem:[%s3362_s2 + $0x80] sm:$0xff] %v1991_v61  ;;  %2018 = vst [vmem:[%s3362_s2 + $0x88] sm:$0xff] %v1992_v35  ;;  %v1993_v48 = vld [vmem:[#allocation2 + $0x58] sm:$0xff]  ;;  %v1995_v62 = vld [vmem:[#allocation2 + $0xa0] sm:$0xff]  ;;  %v2048_v1 = vadd.f32 %v2047_v37, %v1984_v11  ;;  %v2074_v50 = vmul.f32 %v1986_v23, %v1986_v23  ;;  %v2075_v2 = vmul.f32 %v1987_v46, %v1987_v46 }
 0x1d7   : > { %2019 = vst [vmem:[%s3362_s2 + $0x90] sm:$0xff] %v1993_v48  ;;  %2020 = vst [vmem:[%s3362_s2 + $0x98] sm:$0xff] %v1994_v49  ;;  %v1996_v26 = vld [vmem:[#allocation2 + $0x90] sm:$0xff]  ;;  %v1997_v27 = vld [vmem:[#allocation2 + $0x98] sm:$0xff]  ;;  %v2092_v40 = vadd.f32 %v2091_v63, %v2071_v34  ;;  %v2031_v41 = vadd.f32 %v2030_v38, %v1985_v22  ;;  %v2110_v3 = vadd.f32 %v2109_v0, %v2072_v14 }
 0x1d8   : > { %2021 = vst [vmem:[%s3362_s2 + $0xa0] sm:$0xff] %v1995_v62  ;;  %v1998_v28 = vld [vmem:[#allocation2 + $0x18] sm:$0xff]  ;;  %2022 = vst [vmem:[%s3362_s2 + $0xa8] sm:$0xff] %v1996_v26  ;;  %v1999_v51 = vld [vmem:[#allocation2 + $0xc0] sm:$0xff]  ;;  %v2049_v15 = vadd.f32 %v2048_v1, %v1986_v23  ;;  %v2076_v16 = vmul.f32 %v1988_v47, %v1988_v47  ;;  %v2077_v17 = vmul.f32 %v1989_v12, %v1989_v12 }
 0x1d9   : > { %2023 = vst [vmem:[%s3362_s2 + $0xb0] sm:$0xff] %v1997_v27  ;;  %2024 = vst [vmem:[%s3362_s2 + $0xb8] sm:$0xff] %v1998_v28  ;;  %v2000_v29 = vld [vmem:[#allocation2 + $0x68] sm:$0xff]  ;;  %v2093_v52 = vadd.f32 %v2092_v40, %v2073_v39  ;;  %v2032_v53 = vadd.f32 %v2031_v41, %v1987_v46  ;;  %v2111_v4 = vadd.f32 %v2110_v3, %v2074_v50 }
 0x1da   : > { %2025 = vst [vmem:[%s3362_s2 + $0xc0] sm:$0xff] %v1999_v51  ;;  %2026 = vst [vmem:[%s3362_s2 + $0xc8] sm:$0xff] %v2000_v29  ;;  %v2050_v5 = vadd.f32 %v2049_v15, %v1988_v47  ;;  %v2078_v18 = vmul.f32 %v1990_v60, %v1990_v60  ;;  %v2079_v19 = vmul.f32 %v1991_v61, %v1991_v61  ;;  %v2126_v15 = vld [vmem:[%s3363_s3 + $0x8] sm:$0xff] }
 0x1db   : > { %v2094_v42 = vadd.f32 %v2093_v52, %v2075_v2  ;;  %v2033_v43 = vadd.f32 %v2032_v53, %v1989_v12  ;;  %v2112_v54 = vadd.f32 %v2111_v4, %v2076_v16  ;;  %v2080_v7 = vmul.f32 %v1992_v35, %v1992_v35  ;;  %v2131_v53 = vld [vmem:[%s3364_s4] sm:$0xff] }
 0x1dc   : > { %v2051_v6 = vadd.f32 %v2050_v5, %v1990_v60  ;;  %v2081_v30 = vmul.f32 %v1993_v48, %v1993_v48  ;;  %v2082_v8 = vmul.f32 %v1994_v49, %v1994_v49  ;;  %v2083_v56 = vmul.f32 %v1995_v62, %v1995_v62 }
 0x1dd   : > { %v2095_v55 = vadd.f32 %v2094_v42, %v2077_v17  ;;  %v2034_v20 = vadd.f32 %v2033_v43, %v1991_v61  ;;  %v2113_v31 = vadd.f32 %v2112_v54, %v2078_v18  ;;  %v2084_v21 = vmul.f32 %v1996_v26, %v1996_v26  ;;  %v2132_v18 = vld [vmem:[%s3364_s4 + $0x8] sm:$0xff] }
 0x1de   : > { %v2052_v32 = vadd.f32 %v2051_v6, %v1992_v35  ;;  %v2085_v11 = vmul.f32 %v1997_v27, %v1997_v27  ;;  %v2086_v58 = vmul.f32 %v1998_v28, %v1998_v28  ;;  %v2087_v46 = vmul.f32 %v1999_v51, %v1999_v51 }
 0x1df   : > { %v2096_v9 = vadd.f32 %v2095_v55, %v2079_v19  ;;  %v2035_v44 = vadd.f32 %v2034_v20, %v1993_v48  ;;  %v2114_v57 = vadd.f32 %v2113_v31, %v2080_v7  ;;  %v2088_v13 = vmul.f32 %v2000_v29, %v2000_v29 }
 0x1e0   : > { %v2053_v45 = vadd.f32 %v2052_v32, %v1994_v49 }
 0x1e1   : > { %v2097_v33 = vadd.f32 %v2096_v9, %v2081_v30  ;;  %v2036_v10 = vadd.f32 %v2035_v44, %v1995_v62  ;;  %v2115_v22 = vadd.f32 %v2114_v57, %v2082_v8 }
 0x1e2   : > { %v2054_v23 = vadd.f32 %v2053_v45, %v1996_v26 }
 0x1e3   : > { %v2098_v59 = vadd.f32 %v2097_v33, %v2083_v56  ;;  %v2037_v24 = vadd.f32 %v2036_v10, %v1997_v27  ;;  %v2116_v47 = vadd.f32 %v2115_v22, %v2084_v21 }
 0x1e4   : > { %v2055_v12 = vadd.f32 %v2054_v23, %v1998_v28 }
 0x1e5   : > { %v2099_v25 = vadd.f32 %v2098_v59, %v2085_v11  ;;  %v2038_v34 = vadd.f32 %v2037_v24, %v1999_v51  ;;  %v2117_v60 = vadd.f32 %v2116_v47, %v2086_v58 }
 0x1e6   : > { %v2056_v61 = vadd.f32 %v2055_v12, %v2000_v29  ;;  %v2125_v29 = vld [vmem:[%s3363_s3] sm:$0xff] }
 0x1e7   : > { %v2039_v35 = vrot.slane %v2038_v34, 4  ;;  %v2100_v36 = vadd.f32 %v2099_v25, %v2087_v46  ;;  %v2118_v14 = vadd.f32 %v2117_v60, %v2088_v13 }
 0x1e8   : > { %v2057_v37 = vrot.slane %v2056_v61, 4 }
 0x1e9   : > { %v2040_v48 = vadd.f32 %v2039_v35, %v2038_v34  ;;  %v2101_v49 = vrot.slane %v2100_v36, 4  ;;  %v2119_v63 = vrot.slane %v2118_v14, 4 }
 0x1ea   : > { %v2058_v62 = vadd.f32 %v2057_v37, %v2056_v61 }
 0x1eb   : > { %v2041_v38 = vrot.slane %v2040_v48, 2  ;;  %v2102_v39 = vadd.f32 %v2101_v49, %v2100_v36  ;;  %v2120_v27 = vadd.f32 %v2119_v63, %v2118_v14 }
 0x1ec   : > { %v2059_v26 = vrot.slane %v2058_v62, 2 }
 0x1ed   : > { %v2042_v0 = vadd.f32 %v2041_v38, %v2040_v48  ;;  %v2103_v1 = vrot.slane %v2102_v39, 2  ;;  %v2121_v50 = vrot.slane %v2120_v27, 2 }
 0x1ee   : > { %v2060_v28 = vadd.f32 %v2059_v26, %v2058_v62 }
 0x1ef   : > { %v2043_v40 = vrot.slane %v2042_v0, 1  ;;  %v2104_v51 = vadd.f32 %v2103_v1, %v2102_v39  ;;  %v2122_v2 = vadd.f32 %v2121_v50, %v2120_v27 }
 0x1f0   : > { %v2061_v41 = vrot.slane %v2060_v28, 1 }
 0x1f1   : > { %v2044_v3 = vadd.f32 %v2043_v40, %v2042_v0  ;;  %v2105_v16 = vrot.slane %v2104_v51, 1  ;;  %v2123_v17 = vrot.slane %v2122_v2, 1 }
 0x1f2   : > { %v2062_v52 = vadd.f32 %v2061_v41, %v2060_v28 }
 0x1f3   : > { %v2127_v4 = vadd.f32 %v2125_v29, %v2044_v3  ;;  %v2106_v5 = vadd.f32 %v2105_v16, %v2104_v51  ;;  %v2124_v43 = vadd.f32 %v2123_v17, %v2122_v2 }
 0x1f4   : > { %v2128_v42 = vadd.f32 %v2126_v15, %v2062_v52 }
 0x1f5   : > { %2129 = vst [vmem:[%s3363_s3] sm:$0xff] %v2127_v4  ;;  %v2133_v19 = vadd.f32 %v2131_v53, %v2106_v5  ;;  %v2134_v54 = vadd.f32 %v2132_v18, %v2124_v43 }
 0x1f6   : > { %2130 = vst [vmem:[%s3363_s3 + $0x8] sm:$0xff] %v2128_v42 }
 0x1f7   : > { %2135 = vst [vmem:[%s3364_s4] sm:$0xff] %v2133_v19  ;;  %2136 = vst [vmem:[%s3364_s4 + $0x8] sm:$0xff] %v2134_v54 }
 0x1f8 PF: > { %s15_s19 = sadd.s32 1, %s2719_s19   ;;  %s3379_s15 = smov %s2707_s16 }
 0x1f9   : > { %p12_p13 = scmp.ge.s32.totalorder %s15_s19, 4   ;;  %s3380_s16 = smov %s2783_s23 }
 0x1fa   : > { %s3381_s17 = smov %s2715_s18  ;;  %s3382_s18 = smov %s3384_s20 }
 0x1fb   :  { %14 = sbr.rel (!%p12_p13) target bundleno = 3 (0x3), region = 117 }

// kernel: discriminator_cnn.10
= control target key start
LH: loop header
LB: loop body
LE: loop exit
PB: predicated region body
PF: predicated region fallthrough
CT: control target
= control target key end

     0   :  { %v32_v0 = vlaneseq  ;;  %s377_s1 = inlined_call_operand.vmem [shape: f32[1,512], index: 1, kind: input, shape index: {}]   ;;  %s378_s2 = inlined_call_operand.vmem [shape: f32[1,512], index: 2, kind: input, shape index: {}]   ;;  %s379_s0 = inlined_call_operand.vmem [shape: f32[32,512], index: 0, kind: input, shape index: {}]   ;;  %s380_s3 = inlined_call_operand.vmem [shape: bf16[32,512], index: 3, kind: output, shape index: {}]  }
   0x1   :  { %v30_v2 = vld [vmem:[%s377_s1] sm:$0xf]  ;;  %v15_v5 = vld [vmem:[%s379_s0 + $0x8] sm:$0xff]  ;;  %v16_v10 = vld [vmem:[%s379_s0 + $0x10] sm:$0xff] }
   0x2   :  { %v33_v1 = vshrl.u32 %v32_v0, 7  ;;  %v68_v3 = vld [vmem:[%s378_s2] sm:$0xf]  ;;  %v19_v12 = vld [vmem:[%s379_s0 + $0x28] sm:$0xff]  ;;  %v17_v17 = vld [vmem:[%s379_s0 + $0x18] sm:$0xff] }
   0x3   :  { %v14_v4 = vld [vmem:[%s379_s0] sm:$0xff]  ;;  %v20_v18 = vld [vmem:[%s379_s0 + $0x30] sm:$0xff]  ;;  %v21_v19 = vld [vmem:[%s379_s0 + $0x38] sm:$0xff] }
   0x4   :  { %v34_v6 = vsub.s32 0, %v33_v1  ;;  %v38_v7 = vsub.s32 1, %v33_v1  ;;  %v42_v8 = vsub.s32 2, %v33_v1  ;;  %v46_v9 = vsub.s32 3, %v33_v1  ;;  %v18_v11 = vld [vmem:[%s379_s0 + $0x20] sm:$0xff]  ;;  %v23_v51 = vld [vmem:[%s379_s0 + $0x48] sm:$0xff] }
   0x5   :  { %v22_v46 = vld [vmem:[%s379_s0 + $0x40] sm:$0xff]  ;;  %v24_v52 = vld [vmem:[%s379_s0 + $0x50] sm:$0xff]  ;;  %v25_v53 = vld [vmem:[%s379_s0 + $0x58] sm:$0xff] }
   0x6   :  { %v271_v13 = vrot.slane %v30_v2, %v34_v6  ;;  %v273_v14 = vrot.slane %v30_v2, %v38_v7  ;;  %v275_v15 = vrot.slane %v68_v3, %v34_v6  ;;  %v277_v16 = vrot.slane %v68_v3, %v38_v7  ;;  %v26_v0 = vld [vmem:[%s379_s0 + $0x60] sm:$0xff]  ;;  %v27_v1 = vld [vmem:[%s379_s0 + $0x68] sm:$0xff] }
   0x7   :  { %v288_v20 = vrot.slane %v30_v2, %v42_v8  ;;  %v290_v21 = vrot.slane %v30_v2, %v46_v9  ;;  %v292_v22 = vrot.slane %v68_v3, %v42_v8  ;;  %v294_v23 = vrot.slane %v68_v3, %v46_v9 }
   0x8   :  { %v52_v24 = vmul.f32 %v271_v13, %v14_v4  ;;  %v53_v25 = vmul.f32 %v273_v14, %v15_v5  ;;  %v56_v26 = vmul.f32 %v271_v13, %v18_v11  ;;  %v57_v27 = vmul.f32 %v273_v14, %v19_v12 }
   0x9   :  { %v54_v28 = vmul.f32 %v288_v20, %v16_v10  ;;  %v55_v29 = vmul.f32 %v290_v21, %v17_v17  ;;  %v58_v30 = vmul.f32 %v288_v20, %v20_v18  ;;  %v59_v31 = vmul.f32 %v290_v21, %v21_v19  ;;  %v28_v17 = vld [vmem:[%s379_s0 + $0x70] sm:$0xff]  ;;  %v29_v18 = vld [vmem:[%s379_s0 + $0x78] sm:$0xff] }
   0xa   :  { %v90_v32 = vadd.f32 %v275_v15, %v52_v24  ;;  %v91_v33 = vadd.f32 %v277_v16, %v53_v25  ;;  %v94_v34 = vadd.f32 %v275_v15, %v56_v26  ;;  %v95_v35 = vadd.f32 %v277_v16, %v57_v27 }
   0xb   :  { %v92_v36 = vadd.f32 %v292_v22, %v54_v28  ;;  %v93_v37 = vadd.f32 %v294_v23, %v55_v29  ;;  %v96_v38 = vadd.f32 %v292_v22, %v58_v30  ;;  %v97_v39 = vadd.f32 %v294_v23, %v59_v31 }
   0xc   :  { %vm106_vm0 = vcmp.gt.f32.partialorder %v90_v32, 0.0  ;;  %vm107_vm1 = vcmp.gt.f32.partialorder %v91_v33, 0.0  ;;  %v122_v40 = vmul.f32 0.2, %v90_v32  ;;  %v123_v41 = vmul.f32 0.2, %v91_v33 }
   0xd   :  { %vm108_vm2 = vcmp.gt.f32.partialorder %v92_v36, 0.0  ;;  %vm109_vm3 = vcmp.gt.f32.partialorder %v93_v37, 0.0  ;;  %v124_v42 = vmul.f32 0.2, %v92_v36  ;;  %v125_v43 = vmul.f32 0.2, %v93_v37 }
   0xe   :  { %v138_v44 = vsel %vm106_vm0, %v90_v32, %v122_v40  ;;  %v139_v45 = vsel %vm107_vm1, %v91_v33, %v123_v41  ;;  %vm110_vm4 = vcmp.gt.f32.partialorder %v94_v34, 0.0  ;;  %vm111_vm5 = vcmp.gt.f32.partialorder %v95_v35, 0.0 }
   0xf   :  { %v222_v47 = vpack.c.bf16 %v139_v45, %v138_v44  ;;  %v140_v48 = vsel %vm108_vm2, %v92_v36, %v124_v42  ;;  %v141_v49 = vsel %vm109_vm3, %v93_v37, %v125_v43  ;;  %v126_v50 = vmul.f32 0.2, %v94_v34 }
  0x10   :  { %v223_v54 = vpack.c.bf16 %v141_v49, %v140_v48  ;;  %v127_v55 = vmul.f32 0.2, %v95_v35  ;;  %vm112_vm6 = vcmp.gt.f32.partialorder %v96_v38, 0.0  ;;  %vm113_vm7 = vcmp.gt.f32.partialorder %v97_v39, 0.0 }
  0x11   :  { %202 = vst [vmem:[%s380_s3] sm:$0xff] %v222_v47  ;;  %v142_v56 = vsel %vm110_vm4, %v94_v34, %v126_v50  ;;  %v128_v57 = vmul.f32 0.2, %v96_v38  ;;  %v129_v58 = vmul.f32 0.2, %v97_v39  ;;  %v60_v59 = vmul.f32 %v271_v13, %v22_v46 }
  0x12   :  { %203 = vst [vmem:[%s380_s3 + $0x8] sm:$0xff] %v223_v54  ;;  %v143_v60 = vsel %vm111_vm5, %v95_v35, %v127_v55  ;;  %v61_v61 = vmul.f32 %v273_v14, %v23_v51  ;;  %v62_v62 = vmul.f32 %v288_v20, %v24_v52  ;;  %v63_v63 = vmul.f32 %v290_v21, %v25_v53 }
  0x13   :  { %v224_v2 = vpack.c.bf16 %v143_v60, %v142_v56  ;;  %v144_v3 = vsel %vm112_vm6, %v96_v38, %v128_v57  ;;  %v145_v4 = vsel %vm113_vm7, %v97_v39, %v129_v58  ;;  %v98_v5 = vadd.f32 %v275_v15, %v60_v59 }
  0x14   :  { %v225_v6 = vpack.c.bf16 %v145_v4, %v144_v3  ;;  %v99_v7 = vadd.f32 %v277_v16, %v61_v61  ;;  %v100_v8 = vadd.f32 %v292_v22, %v62_v62  ;;  %v101_v9 = vadd.f32 %v294_v23, %v63_v63 }
  0x15   :  { %204 = vst [vmem:[%s380_s3 + $0x10] sm:$0xff] %v224_v2  ;;  %vm114_vm8 = vcmp.gt.f32.partialorder %v98_v5, 0.0  ;;  %v130_v10 = vmul.f32 0.2, %v98_v5  ;;  %v64_v11 = vmul.f32 %v271_v13, %v26_v0  ;;  %v65_v12 = vmul.f32 %v273_v14, %v27_v1 }
  0x16   :  { %205 = vst [vmem:[%s380_s3 + $0x18] sm:$0xff] %v225_v6  ;;  %vm115_vm9 = vcmp.gt.f32.partialorder %v99_v7, 0.0  ;;  %v131_v19 = vmul.f32 0.2, %v99_v7  ;;  %vm116_vm10 = vcmp.gt.f32.partialorder %v100_v8, 0.0  ;;  %vm117_vm11 = vcmp.gt.f32.partialorder %v101_v9, 0.0 }
  0x17   :  { %v146_v24 = vsel %vm114_vm8, %v98_v5, %v130_v10  ;;  %v132_v13 = vmul.f32 0.2, %v100_v8  ;;  %v133_v25 = vmul.f32 0.2, %v101_v9  ;;  %v102_v14 = vadd.f32 %v275_v15, %v64_v11 }
  0x18   :  { %v147_v26 = vsel %vm115_vm9, %v99_v7, %v131_v19  ;;  %v103_v27 = vadd.f32 %v277_v16, %v65_v12  ;;  %v66_v28 = vmul.f32 %v288_v20, %v28_v17  ;;  %v67_v29 = vmul.f32 %v290_v21, %v29_v18 }
  0x19   :  { %v226_v30 = vpack.c.bf16 %v147_v26, %v146_v24  ;;  %v148_v31 = vsel %vm116_vm10, %v100_v8, %v132_v13  ;;  %v149_v32 = vsel %vm117_vm11, %v101_v9, %v133_v25  ;;  %vm118_vm12 = vcmp.gt.f32.partialorder %v102_v14, 0.0 }
  0x1a   :  { %v227_v33 = vpack.c.bf16 %v149_v32, %v148_v31  ;;  %vm119_vm13 = vcmp.gt.f32.partialorder %v103_v27, 0.0  ;;  %v134_v34 = vmul.f32 0.2, %v102_v14  ;;  %v135_v35 = vmul.f32 0.2, %v103_v27 }
  0x1b   :  { %206 = vst [vmem:[%s380_s3 + $0x20] sm:$0xff] %v226_v30  ;;  %v104_v15 = vadd.f32 %v292_v22, %v66_v28  ;;  %v105_v16 = vadd.f32 %v294_v23, %v67_v29 }
  0x1c   :  { %207 = vst [vmem:[%s380_s3 + $0x28] sm:$0xff] %v227_v33  ;;  %v150_v20 = vsel %vm118_vm12, %v102_v14, %v134_v34  ;;  %v151_v21 = vsel %vm119_vm13, %v103_v27, %v135_v35 }
  0x1d   :  { %v228_v36 = vpack.c.bf16 %v151_v21, %v150_v20  ;;  %vm120_vm14 = vcmp.gt.f32.partialorder %v104_v15, 0.0  ;;  %vm121_vm15 = vcmp.gt.f32.partialorder %v105_v16, 0.0  ;;  %v136_v37 = vmul.f32 0.2, %v104_v15 }
  0x1e   :  { %v137_v38 = vmul.f32 0.2, %v105_v16 }
  0x1f   :  { %208 = vst [vmem:[%s380_s3 + $0x30] sm:$0xff] %v228_v36  ;;  %v152_v39 = vsel %vm120_vm14, %v104_v15, %v136_v37 }
  0x20   :  { %v153_v40 = vsel %vm121_vm15, %v105_v16, %v137_v38 }
  0x21   :  { %v229_v22 = vpack.c.bf16 %v153_v40, %v152_v39 }
  0x23   :  { %209 = vst [vmem:[%s380_s3 + $0x38] sm:$0xff] %v229_v22 }

// kernel: discriminator_cnn.9
= control target key start
LH: loop header
LB: loop body
LE: loop exit
PB: predicated region body
PF: predicated region fallthrough
CT: control target
= control target key end

     0   :  { %s2788_s15 = smov 0   ;;  %s2790_s16 = smov 0   ;;  %s3232_s0 = inlined_call_operand.vmem [shape: bf16[32,2304], index: 0, kind: input, shape index: {}]   ;;  %s3233_s1 = inlined_call_operand.vmem [shape: bf16[2304,512], index: 1, kind: input, shape index: {}]   ;;  %s3234_s2 = inlined_call_operand.vmem [shape: f32[32,512], index: 2, kind: output, shape index: {0}]   ;;  %s3235_s3 = inlined_call_operand.vmem [shape: f32[8,512], index: 3, kind: output, shape index: {1}]   ;;  %s3236_s4 = inlined_call_operand.vmem [shape: f32[8,512], index: 4, kind: output, shape index: {2}]  }
   0x1   :  { %s2792_s17 = smov 0   ;;  %s2794_s18 = smov 0  }
   0x2   :  { %s2796_s19 = smov 0  }
   0x3 LB: > { %s24_s20 = sadd.s32 1, %s2755_s18  ;;  %p43_p1 = scmp.ne.s32.totalorder %s2747_s16, %s2743_s15  ;;  %s2759_s19 = sphi %s2796_s19, %s15_s19   ;;  %s2755_s18 = sphi %s2794_s18, %s3240_s18   ;;  %s2751_s17 = sphi %s2792_s17, %s3239_s17   ;;  %s2747_s16 = sphi %s2790_s16, %s3238_s16   ;;  %s2743_s15 = sphi %s2788_s15, %s3237_s15  }
   0x4   : > { %p25_p0 = scmp.ge.s32.totalorder %s24_s20, 3  ;;  %p44_p2 = scmp.eq.s32.totalorder %s2759_s19, 0 }
   0x5   : > { %s36_s22 = sadd.s32 1, %s2747_s16  ;;  %p2152_p5 = scmp.ge.s32.totalorder %s2759_s19, 3 }
   0x6   : > { %s3242_s20 = smov (%p25_p0, %s24_s20), 0  ;;  %p45_p3 = por %p44_p2, %p43_p1 }
   0x7   : > { %s32_s21 = ssub.s32 %s2755_s18, %s3242_s20  ;;  %163 = sbr.rel (%p2152_p5) target bundleno = 23 (0x17), region = 16 }
   0x8   : > { %p34_p4 = scmp.eq.s32.totalorder %s32_s21, 0 }
   0xa   : > { %s2823_s23 = scalar_select %p34_p4, %s2747_s16, %s36_s22  }
   0xc   : > { %166 = sbr.rel (!%p45_p3) target bundleno = 23 (0x17), region = 20  ;;  %s168_s24 = sand.u32 (%p45_p3), 1, %s2747_s16  }
   0xd   : > { %s2368_s25 = smul.u32 (%p45_p3), 24, %s2755_s18 }
   0xe   : > { %s2371_s26 = smul.u32 (%p45_p3), 96, %s168_s24 }
   0xf   : > { %s176_s29 = scalar_lea.vmem (%p45_p3), %s3232_s0, %s2368_s25 }
  0x10   : > { %v189_v0 = vld [vmem:[%s176_s29] sm:$0xff] (%p45_p3)  ;;  %v191_v1 = vld [vmem:[%s176_s29 + $0x8] sm:$0xff] (%p45_p3)  ;;  %v193_v2 = vld [vmem:[%s176_s29 + $0x10] sm:$0xff] (%p45_p3)  ;;  %s170_s30 = scalar_lea.vmem (%p45_p3), [#allocation3], %s2371_s26 }
  0x11   : > { %190 = vst [vmem:[%s170_s30] sm:$0xff] %v189_v0  ;;  %192 = vst [vmem:[%s170_s30 + $0x8] sm:$0xff] %v191_v1  ;;  %v195_v3 = vld [vmem:[%s176_s29 + $0x48] sm:$0xff]  ;;  %v197_v4 = vld [vmem:[%s176_s29 + $0x50] sm:$0xff] }
  0x12   : > { %194 = vst [vmem:[%s170_s30 + $0x10] sm:$0xff] %v193_v2  ;;  %v199_v5 = vld [vmem:[%s176_s29 + $0x58] sm:$0xff]  ;;  %196 = vst [vmem:[%s170_s30 + $0x18] sm:$0xff] %v195_v3  ;;  %v201_v6 = vld [vmem:[%s176_s29 + $0x90] sm:$0xff] }
  0x13   : > { %198 = vst [vmem:[%s170_s30 + $0x20] sm:$0xff] %v197_v4  ;;  %200 = vst [vmem:[%s170_s30 + $0x28] sm:$0xff] %v199_v5  ;;  %v203_v7 = vld [vmem:[%s176_s29 + $0x98] sm:$0xff]  ;;  %v205_v8 = vld [vmem:[%s176_s29 + $0xa0] sm:$0xff] }
  0x14   : > { %202 = vst [vmem:[%s170_s30 + $0x30] sm:$0xff] %v201_v6  ;;  %204 = vst [vmem:[%s170_s30 + $0x38] sm:$0xff] %v203_v7  ;;  %v207_v9 = vld [vmem:[%s176_s29 + $0xd8] sm:$0xff]  ;;  %v209_v10 = vld [vmem:[%s176_s29 + $0xe0] sm:$0xff] }
  0x15   : > { %206 = vst [vmem:[%s170_s30 + $0x40] sm:$0xff] %v205_v8  ;;  %v211_v11 = vld [vmem:[%s176_s29 + $0xe8] sm:$0xff]  ;;  %208 = vst [vmem:[%s170_s30 + $0x48] sm:$0xff] %v207_v9 }
  0x16   : > { %210 = vst [vmem:[%s170_s30 + $0x50] sm:$0xff] %v209_v10  ;;  %212 = vst [vmem:[%s170_s30 + $0x58] sm:$0xff] %v211_v11 }
  0x17 PF: > { %p2154_p6 = scmp.ge.s32.totalorder %s2759_s19, 1  ;;  %p227_p7 = scmp.lt.s32.totalorder %s2759_s19, 4 }
  0x19   : > { %p228_p8 = pnand %p2154_p6, %p227_p7 }
  0x1a   : > { %s234_s5 = sand.u32 (!%p228_p8), 1, %s2743_s15   ;;  %s268_s6 = smul.u32 (!%p228_p8), 96, %s2751_s17 }
  0x1b   : > { %231 = sbr.rel (%p228_p8) target bundleno = 492 (0x1ec), region = 47  ;;  %p283_p9 = scmp.eq.s32.totalorder (!%p228_p8), %s2751_s17, 0 }
  0x1c   : > { %s2372_s7 = smul.u32 (!%p228_p8), 96, %s234_s5  ;;  %p269_p10 = scmp.lt.s32.totalorder (!%p228_p8), %s268_s6, 287 }
  0x1e   : > { %s2841_s12 = scalar_lea.vmem (!%p228_p8), [#allocation3], %s2372_s7 }
  0x20   : > { %s3244_s6 = smov (!%p269_p10, %s268_s6), 287  ;;  %287 = sbr.rel (!%p283_p9) target bundleno = 37 (0x25), region = 55  ;;  %v2761_v12 = vmov (%p283_p9), 0.0  }
  0x21   : > { %s2369_s8 = sshll.u32 %s3244_s6, 4  ;;  %288 = vst [vmem:[%s3235_s3] sm:$0xff] (%p283_p9), %v2761_v12  ;;  %289 = vst [vmem:[%s3235_s3 + $0x8] sm:$0xff] (%p283_p9), %v2761_v12 }
  0x22   : > { %s2839_s11 = scalar_lea.vmem %s3233_s1, %s2369_s8  ;;  %290 = vst [vmem:[%s3235_s3 + $0x10] sm:$0xff] (%p283_p9), %v2761_v12  ;;  %291 = vst [vmem:[%s3235_s3 + $0x18] sm:$0xff] (%p283_p9), %v2761_v12 }
  0x23   : > { %292 = vst [vmem:[%s3236_s4] sm:$0xff] (%p283_p9), %v2761_v12  ;;  %293 = vst [vmem:[%s3236_s4 + $0x8] sm:$0xff] (%p283_p9), %v2761_v12 }
  0x24   : > { %294 = vst [vmem:[%s3236_s4 + $0x10] sm:$0xff] (%p283_p9), %v2761_v12  ;;  %295 = vst [vmem:[%s3236_s4 + $0x18] sm:$0xff] (%p283_p9), %v2761_v12 }
  0x25 PF: > { %p2158_p11 = scmp.ne.s32.totalorder %s2751_s17, 0 }
  0x27   : > { %298 = sbr.rel (%p2158_p11) target bundleno = 53 (0x35), region = 59 }
  0x2c   : > { %v2762_v13 = vmov 0.0  }
  0x2d   : > { %299 = vst [vmem:[#allocation2 + $0x30] sm:$0xff] %v2762_v13  ;;  %300 = vst [vmem:[#allocation2] sm:$0xff] %v2762_v13 }
  0x2e   : > { %301 = vst [vmem:[#allocation2 + $0x58] sm:$0xff] %v2762_v13  ;;  %302 = vst [vmem:[#allocation2 + $0x18] sm:$0xff] %v2762_v13 }
  0x2f   : > { %303 = vst [vmem:[#allocation2 + $0x50] sm:$0xff] %v2762_v13  ;;  %304 = vst [vmem:[#allocation2 + $0x68] sm:$0xff] %v2762_v13 }
  0x30   : > { %305 = vst [vmem:[#allocation2 + $0x8] sm:$0xff] %v2762_v13  ;;  %306 = vst [vmem:[#allocation2 + $0x48] sm:$0xff] %v2762_v13 }
  0x31   : > { %307 = vst [vmem:[#allocation2 + $0x40] sm:$0xff] %v2762_v13  ;;  %308 = vst [vmem:[#allocation2 + $0x20] sm:$0xff] %v2762_v13 }
  0x32   : > { %309 = vst [vmem:[#allocation2 + $0x10] sm:$0xff] %v2762_v13  ;;  %310 = vst [vmem:[#allocation2 + $0x38] sm:$0xff] %v2762_v13 }
  0x33   : > { %311 = vst [vmem:[#allocation2 + $0x60] sm:$0xff] %v2762_v13  ;;  %312 = vst [vmem:[#allocation2 + $0x70] sm:$0xff] %v2762_v13 }
  0x34   : > { %313 = vst [vmem:[#allocation2 + $0x78] sm:$0xff] %v2762_v13  ;;  %314 = vst [vmem:[#allocation2 + $0x28] sm:$0xff] %v2762_v13 }
  0x35 PF: > { %v2415_v14 = vld [vmem:[%s2839_s11 + $0xe4] ss:$16 sps:$4 sm:$0xff]   ;;  %v2419_v16 = vld [vmem:[%s2839_s11 + $0xe0] ss:$16 sps:$4 sm:$0xff]   ;;  %p2363_p12 = scmp.ne.s32.totalorder %s2751_s17, 2 }
  0x36   : > { %v2417_v15 = vld [vmem:[%s2839_s11 + $0x2e4] ss:$16 sps:$4 sm:$0xff]   ;;  %1555 = vmatprep.subr.bf16.mxu0 %v2415_v14  ;;  %v2420_v17 = vld [vmem:[%s2839_s11 + $0x2e0] ss:$16 sps:$4 sm:$0xff]  }
  0x37   : > { %1608 = vmatprep.subr.bf16.mxu1 %v2417_v15  ;;  %v2421_v18 = vld [vmem:[%s2839_s11 + $0xc4] ss:$16 sps:$4 sm:$0xff]   ;;  %1556 = vmatpush1.bf16.msra.mxu0 %v2419_v16  ;;  %v2425_v20 = vld [vmem:[%s2839_s11 + $0xc0] ss:$16 sps:$4 sm:$0xff]  }
  0x38   : > { %1609 = vmatpush1.bf16.msra.mxu1 %v2420_v17  ;;  %v2423_v19 = vld [vmem:[%s2839_s11 + $0x2c4] ss:$16 sps:$4 sm:$0xff]   ;;  %1557 = vmatprep.subr.bf16.mxu0 %v2421_v18  ;;  %v2426_v21 = vld [vmem:[%s2839_s11 + $0x2c0] ss:$16 sps:$4 sm:$0xff]   ;;  %v2522_v17 = vld [vmem:[%s2839_s11 + $0xec] ss:$16 sps:$4 sm:$0xff]  }
  0x39   : > { %1610 = vmatprep.subr.bf16.mxu1 %v2423_v19  ;;  %v2427_v22 = vld [vmem:[%s2839_s11 + $0xa4] ss:$16 sps:$4 sm:$0xff]   ;;  %v2431_v24 = vld [vmem:[%s2839_s11 + $0xa0] ss:$16 sps:$4 sm:$0xff]  }
  0x3a   : > { %v2429_v23 = vld [vmem:[%s2839_s11 + $0x2a4] ss:$16 sps:$4 sm:$0xff]   ;;  %v2432_v25 = vld [vmem:[%s2839_s11 + $0x2a0] ss:$16 sps:$4 sm:$0xff]  }
  0x3b   : > { %1558 = vmatpush1.bf16.msra.mxu0 %v2425_v20  ;;  %v2433_v26 = vld [vmem:[%s2839_s11 + $0x84] ss:$16 sps:$4 sm:$0xff]   ;;  %v2437_v28 = vld [vmem:[%s2839_s11 + $0x80] ss:$16 sps:$4 sm:$0xff]  }
  0x3c   : > { %1611 = vmatpush1.bf16.msra.mxu1 %v2426_v21  ;;  %1559 = vmatprep.subr.bf16.mxu0 %v2427_v22  ;;  %v2435_v27 = vld [vmem:[%s2839_s11 + $0x284] ss:$16 sps:$4 sm:$0xff]   ;;  %v2438_v29 = vld [vmem:[%s2839_s11 + $0x280] ss:$16 sps:$4 sm:$0xff]   ;;  %v2520_v21 = vld [vmem:[%s2839_s11 + $0xe8] ss:$16 sps:$4 sm:$0xff]  }
  0x3d   : > { %1612 = vmatprep.subr.bf16.mxu1 %v2429_v23  ;;  %v2439_v30 = vld [vmem:[%s2839_s11 + $0x64] ss:$16 sps:$4 sm:$0xff]   ;;  %v2443_v32 = vld [vmem:[%s2839_s11 + $0x60] ss:$16 sps:$4 sm:$0xff]   ;;  %v2528_v23 = vld [vmem:[%s2839_s11 + $0xcc] ss:$16 sps:$4 sm:$0xff]  }
  0x3e   : > { %v2441_v31 = vld [vmem:[%s2839_s11 + $0x264] ss:$16 sps:$4 sm:$0xff]   ;;  %v2444_v33 = vld [vmem:[%s2839_s11 + $0x260] ss:$16 sps:$4 sm:$0xff]  }
  0x3f   : > { %1560 = vmatpush1.bf16.msra.mxu0 %v2431_v24  ;;  %v2445_v34 = vld [vmem:[%s2839_s11 + $0x44] ss:$16 sps:$4 sm:$0xff]   ;;  %v2449_v36 = vld [vmem:[%s2839_s11 + $0x40] ss:$16 sps:$4 sm:$0xff]  }
  0x40   : > { %1613 = vmatpush1.bf16.msra.mxu1 %v2432_v25  ;;  %1561 = vmatprep.subr.bf16.mxu0 %v2433_v26  ;;  %v2447_v35 = vld [vmem:[%s2839_s11 + $0x244] ss:$16 sps:$4 sm:$0xff]   ;;  %v2450_v37 = vld [vmem:[%s2839_s11 + $0x240] ss:$16 sps:$4 sm:$0xff]   ;;  %v2526_v25 = vld [vmem:[%s2839_s11 + $0xc8] ss:$16 sps:$4 sm:$0xff]  }
  0x41   : > { %1614 = vmatprep.subr.bf16.mxu1 %v2435_v27  ;;  %v2451_v38 = vld [vmem:[%s2839_s11 + $0x24] ss:$16 sps:$4 sm:$0xff]   ;;  %v2455_v40 = vld [vmem:[%s2839_s11 + $0x20] ss:$16 sps:$4 sm:$0xff]   ;;  %v2534_v27 = vld [vmem:[%s2839_s11 + $0xac] ss:$16 sps:$4 sm:$0xff]  }
  0x42   : > { %v2453_v39 = vld [vmem:[%s2839_s11 + $0x224] ss:$16 sps:$4 sm:$0xff]   ;;  %v2456_v41 = vld [vmem:[%s2839_s11 + $0x220] ss:$16 sps:$4 sm:$0xff]  }
  0x43   : > { %1562 = vmatpush1.bf16.msra.mxu0 %v2437_v28  ;;  %v2457_v42 = vld [vmem:[%s2839_s11 + $0x4] ss:$16 sps:$4 sm:$0xff]   ;;  %v2461_v44 = vld [vmem:[%s2839_s11] ss:$16 sps:$4 sm:$0xff]  }
  0x44   : > { %1615 = vmatpush1.bf16.msra.mxu1 %v2438_v29  ;;  %1563 = vmatprep.subr.bf16.mxu0 %v2439_v30  ;;  %v2459_v43 = vld [vmem:[%s2839_s11 + $0x204] ss:$16 sps:$4 sm:$0xff]   ;;  %v2462_v45 = vld [vmem:[%s2839_s11 + $0x200] ss:$16 sps:$4 sm:$0xff]   ;;  %v2532_v29 = vld [vmem:[%s2839_s11 + $0xa8] ss:$16 sps:$4 sm:$0xff]  }
  0x45   : > { %1616 = vmatprep.subr.bf16.mxu1 %v2441_v31  ;;  %v2463_v46 = vld [vmem:[%s2839_s11 + $0x1e4] ss:$16 sps:$4 sm:$0xff]   ;;  %v2467_v48 = vld [vmem:[%s2839_s11 + $0x1e0] ss:$16 sps:$4 sm:$0xff]   ;;  %v2540_v31 = vld [vmem:[%s2839_s11 + $0x8c] ss:$16 sps:$4 sm:$0xff]  }
  0x46   : > { %v2465_v47 = vld [vmem:[%s2839_s11 + $0x3e4] ss:$16 sps:$4 sm:$0xff]   ;;  %v2468_v49 = vld [vmem:[%s2839_s11 + $0x3e0] ss:$16 sps:$4 sm:$0xff]  }
  0x47   : > { %1564 = vmatpush1.bf16.msra.mxu0 %v2443_v32  ;;  %v2469_v50 = vld [vmem:[%s2839_s11 + $0x1c4] ss:$16 sps:$4 sm:$0xff]   ;;  %v2473_v52 = vld [vmem:[%s2839_s11 + $0x1c0] ss:$16 sps:$4 sm:$0xff]  }
  0x48   : > { %1617 = vmatpush1.bf16.msra.mxu1 %v2444_v33  ;;  %1565 = vmatprep.subr.bf16.mxu0 %v2445_v34  ;;  %v2471_v51 = vld [vmem:[%s2839_s11 + $0x3c4] ss:$16 sps:$4 sm:$0xff]   ;;  %v2474_v53 = vld [vmem:[%s2839_s11 + $0x3c0] ss:$16 sps:$4 sm:$0xff]   ;;  %v2538_v33 = vld [vmem:[%s2839_s11 + $0x88] ss:$16 sps:$4 sm:$0xff]  }
  0x49   : > { %1618 = vmatprep.subr.bf16.mxu1 %v2447_v35  ;;  %v2475_v54 = vld [vmem:[%s2839_s11 + $0x1a4] ss:$16 sps:$4 sm:$0xff]   ;;  %v2479_v56 = vld [vmem:[%s2839_s11 + $0x1a0] ss:$16 sps:$4 sm:$0xff]   ;;  %v2546_v35 = vld [vmem:[%s2839_s11 + $0x6c] ss:$16 sps:$4 sm:$0xff]  }
  0x4a   : > { %v2477_v55 = vld [vmem:[%s2839_s11 + $0x3a4] ss:$16 sps:$4 sm:$0xff]   ;;  %v2480_v57 = vld [vmem:[%s2839_s11 + $0x3a0] ss:$16 sps:$4 sm:$0xff]  }
  0x4b   : > { %1566 = vmatpush1.bf16.msra.mxu0 %v2449_v36  ;;  %v2481_v58 = vld [vmem:[%s2839_s11 + $0x184] ss:$16 sps:$4 sm:$0xff]   ;;  %v2485_v60 = vld [vmem:[%s2839_s11 + $0x180] ss:$16 sps:$4 sm:$0xff]  }
  0x4c   : > { %1619 = vmatpush1.bf16.msra.mxu1 %v2450_v37  ;;  %1567 = vmatprep.subr.bf16.mxu0 %v2451_v38  ;;  %v2483_v59 = vld [vmem:[%s2839_s11 + $0x384] ss:$16 sps:$4 sm:$0xff]   ;;  %v2486_v61 = vld [vmem:[%s2839_s11 + $0x380] ss:$16 sps:$4 sm:$0xff]   ;;  %v2544_v37 = vld [vmem:[%s2839_s11 + $0x68] ss:$16 sps:$4 sm:$0xff]  }
  0x4d   : > { %1620 = vmatprep.subr.bf16.mxu1 %v2453_v39  ;;  %v2487_v62 = vld [vmem:[%s2839_s11 + $0x164] ss:$16 sps:$4 sm:$0xff]   ;;  %v2491_v2 = vld [vmem:[%s2839_s11 + $0x160] ss:$16 sps:$4 sm:$0xff]   ;;  %v2552_v39 = vld [vmem:[%s2839_s11 + $0x4c] ss:$16 sps:$4 sm:$0xff]  }
  0x4e   : > { %v2918_v63 = vld [vmem:[%s2841_s12 + $0x4] ss:$24 sps:$4 sm:$0xff]   ;;  %v2492_v3 = vld [vmem:[%s2839_s11 + $0x360] ss:$16 sps:$4 sm:$0xff]  }
  0x4f   : > { %1568 = vmatpush1.bf16.msra.mxu0 %v2455_v40  ;;  %v2489_v0 = vld [vmem:[%s2839_s11 + $0x364] ss:$16 sps:$4 sm:$0xff]   ;;  %1587 = vmatprep.mubr.bf16.mxu0 %v2918_v63  ;;  %v2497_v6 = vld [vmem:[%s2839_s11 + $0x140] ss:$16 sps:$4 sm:$0xff]  }
  0x50   : > { %1621 = vmatpush1.bf16.msra.mxu1 %v2456_v41  ;;  %1569 = vmatprep.subr.bf16.mxu0 %v2457_v42  ;;  %v2922_v1 = vld [vmem:[%s2841_s12 + $0xc] ss:$24 sps:$4 sm:$0xff]   ;;  %v2498_v7 = vld [vmem:[%s2839_s11 + $0x340] ss:$16 sps:$4 sm:$0xff]   ;;  %v2974_v41 = vld [vmem:[%s2841_s12 + $0x3c] ss:$24 sps:$4 sm:$0xff]  }
  0x51   : > { %1622 = vmatprep.subr.bf16.mxu1 %v2459_v43  ;;  %1640 = vmatprep.mubr.bf16.mxu1 %v2922_v1  ;;  %v2493_v4 = vld [vmem:[%s2839_s11 + $0x144] ss:$16 sps:$4 sm:$0xff]   ;;  %v2503_v10 = vld [vmem:[%s2839_s11 + $0x120] ss:$16 sps:$4 sm:$0xff]  }
  0x52   : > { %v2495_v5 = vld [vmem:[%s2839_s11 + $0x344] ss:$16 sps:$4 sm:$0xff]   ;;  %v2504_v11 = vld [vmem:[%s2839_s11 + $0x320] ss:$16 sps:$4 sm:$0xff]  }
  0x53   : > { %1570 = vmatpush1.bf16.msra.mxu0 %v2461_v44  ;;  %v2499_v8 = vld [vmem:[%s2839_s11 + $0x124] ss:$16 sps:$4 sm:$0xff]   ;;  %v2509_v14 = vld [vmem:[%s2839_s11 + $0x100] ss:$16 sps:$4 sm:$0xff]  }
  0x54   : > { %1623 = vmatpush1.bf16.msra.mxu1 %v2462_v45  ;;  %1571 = vmatprep.subr.bf16.mxu0 %v2463_v46  ;;  %v2501_v9 = vld [vmem:[%s2839_s11 + $0x324] ss:$16 sps:$4 sm:$0xff]   ;;  %v2510_v15 = vld [vmem:[%s2839_s11 + $0x300] ss:$16 sps:$4 sm:$0xff]   ;;  %v2550_v45 = vld [vmem:[%s2839_s11 + $0x48] ss:$16 sps:$4 sm:$0xff]  }
  0x55   : > { %1624 = vmatprep.subr.bf16.mxu1 %v2465_v47  ;;  %v2505_v12 = vld [vmem:[%s2839_s11 + $0x104] ss:$16 sps:$4 sm:$0xff]   ;;  %v2943_v18 = vld [vmem:[%s2841_s12] ss:$24 sps:$4 sm:$0xff]   ;;  %v2978_v42 = vld [vmem:[%s2841_s12 + $0x30] ss:$24 sps:$4 sm:$0xff]  }
  0x56   : > { %v2507_v13 = vld [vmem:[%s2839_s11 + $0x304] ss:$16 sps:$4 sm:$0xff]   ;;  %v2946_v19 = vld [vmem:[%s2841_s12 + $0x8] ss:$24 sps:$4 sm:$0xff]   ;;  %v2981_v43 = vld [vmem:[%s2841_s12 + $0x38] ss:$24 sps:$4 sm:$0xff]  }
  0x57   : > { %1572 = vmatpush2.bf16.msra.mxu0 %v2467_v48  ;;  %v2519_v16 = vld [vmem:[%s2839_s11 + $0x4e4] ss:$16 sps:$4 sm:$0xff]   ;;  %v2517_v20 = vld [vmem:[%s2839_s11 + $0x4e0] ss:$16 sps:$4 sm:$0xff]   ;;  %v2558_v47 = vld [vmem:[%s2839_s11 + $0x2c] ss:$16 sps:$4 sm:$0xff]  }
  0x58   : > { %1625 = vmatpush2.bf16.msra.mxu1 %v2468_v49  ;;  %1573 = vmatprep.subr.bf16.mxu0 %v2469_v50  ;;  %v2525_v22 = vld [vmem:[%s2839_s11 + $0x4c4] ss:$16 sps:$4 sm:$0xff]   ;;  %v2523_v24 = vld [vmem:[%s2839_s11 + $0x4c0] ss:$16 sps:$4 sm:$0xff]   ;;  %v2556_v49 = vld [vmem:[%s2839_s11 + $0x28] ss:$16 sps:$4 sm:$0xff]  }
  0x59   : > { %1626 = vmatprep.subr.bf16.mxu1 %v2471_v51  ;;  %v2531_v26 = vld [vmem:[%s2839_s11 + $0x4a4] ss:$16 sps:$4 sm:$0xff]   ;;  %v2529_v28 = vld [vmem:[%s2839_s11 + $0x4a0] ss:$16 sps:$4 sm:$0xff]   ;;  %v2564_v51 = vld [vmem:[%s2839_s11 + $0xc] ss:$16 sps:$4 sm:$0xff]  }
  0x5a   : > { %v2537_v30 = vld [vmem:[%s2839_s11 + $0x484] ss:$16 sps:$4 sm:$0xff]   ;;  %v2535_v32 = vld [vmem:[%s2839_s11 + $0x480] ss:$16 sps:$4 sm:$0xff]  }
  0x5b   : > { %1574 = vmatpush2.bf16.msra.mxu0 %v2473_v52  ;;  %v2543_v34 = vld [vmem:[%s2839_s11 + $0x464] ss:$16 sps:$4 sm:$0xff]   ;;  %v2541_v36 = vld [vmem:[%s2839_s11 + $0x460] ss:$16 sps:$4 sm:$0xff]  }
  0x5c   : > { %1627 = vmatpush2.bf16.msra.mxu1 %v2474_v53  ;;  %1575 = vmatprep.subr.bf16.mxu0 %v2475_v54  ;;  %v2549_v38 = vld [vmem:[%s2839_s11 + $0x444] ss:$16 sps:$4 sm:$0xff]   ;;  %v2547_v44 = vld [vmem:[%s2839_s11 + $0x440] ss:$16 sps:$4 sm:$0xff]   ;;  %v2562_v53 = vld [vmem:[%s2839_s11 + $0x8] ss:$16 sps:$4 sm:$0xff]  }
  0x5d   : > { %1628 = vmatprep.subr.bf16.mxu1 %v2477_v55  ;;  %v2971_v40 = vld [vmem:[%s2841_s12 + $0x34] ss:$24 sps:$4 sm:$0xff]   ;;  %v2553_v48 = vld [vmem:[%s2839_s11 + $0x420] ss:$16 sps:$4 sm:$0xff]  }
  0x5e   : > { %v2555_v46 = vld [vmem:[%s2839_s11 + $0x424] ss:$16 sps:$4 sm:$0xff]   ;;  %v2559_v52 = vld [vmem:[%s2839_s11 + $0x400] ss:$16 sps:$4 sm:$0xff]  }
  0x5f   : > { %1576 = vmatpush2.bf16.msra.mxu0 %v2479_v56  ;;  %v2561_v50 = vld [vmem:[%s2839_s11 + $0x404] ss:$16 sps:$4 sm:$0xff]   ;;  %v2570_v56 = vld [vmem:[%s2839_s11 + $0x1ec] ss:$16 sps:$4 sm:$0xff]  }
  0x60   : > { %1629 = vmatpush2.bf16.msra.mxu1 %v2480_v57  ;;  %1577 = vmatprep.subr.bf16.mxu0 %v2481_v58  ;;  %v2998_v54 = vld [vmem:[%s2841_s12 + $0x14] ss:$24 sps:$4 sm:$0xff]   ;;  %v2565_v57 = vld [vmem:[%s2839_s11 + $0x5e0] ss:$16 sps:$4 sm:$0xff]   ;;  %v2568_v58 = vld [vmem:[%s2839_s11 + $0x1e8] ss:$16 sps:$4 sm:$0xff]  }
  0x61   : > { %1630 = vmatprep.subr.bf16.mxu1 %v2483_v59  ;;  %v2567_v55 = vld [vmem:[%s2839_s11 + $0x5e4] ss:$16 sps:$4 sm:$0xff]  }
  0x62   : > { %v2573_v59 = vld [vmem:[%s2839_s11 + $0x5c4] ss:$16 sps:$4 sm:$0xff]  }
  0x63   : > { %1578 = vmatpush2.bf16.msra.mxu0 %v2485_v60  ;;  %v2576_v60 = vld [vmem:[%s2839_s11 + $0x1cc] ss:$16 sps:$4 sm:$0xff]  }
  0x64   : > { %1631 = vmatpush2.bf16.msra.mxu1 %v2486_v61  ;;  %1579 = vmatprep.subr.bf16.mxu0 %v2487_v62  ;;  %v2571_v61 = vld [vmem:[%s2839_s11 + $0x5c0] ss:$16 sps:$4 sm:$0xff]   ;;  %v2574_v62 = vld [vmem:[%s2839_s11 + $0x1c8] ss:$16 sps:$4 sm:$0xff]  }
  0x65   : > { %1632 = vmatprep.subr.bf16.mxu1 %v2489_v0  ;;  %v2582_v0 = vld [vmem:[%s2839_s11 + $0x1ac] ss:$16 sps:$4 sm:$0xff]  }
  0x67   : > { %1580 = vmatpush2.bf16.msra.mxu0 %v2491_v2  ;;  %v2577_v2 = vld [vmem:[%s2839_s11 + $0x5a0] ss:$16 sps:$4 sm:$0xff]  }
  0x68   : > { %1633 = vmatpush2.bf16.msra.mxu1 %v2492_v3  ;;  %1581 = vmatprep.subr.bf16.mxu0 %v2493_v4  ;;  %v2580_v3 = vld [vmem:[%s2839_s11 + $0x1a8] ss:$16 sps:$4 sm:$0xff]   ;;  %v2585_v4 = vld [vmem:[%s2839_s11 + $0x584] ss:$16 sps:$4 sm:$0xff]  }
  0x69   : > { %1634 = vmatprep.subr.bf16.mxu1 %v2495_v5  ;;  %v2588_v5 = vld [vmem:[%s2839_s11 + $0x18c] ss:$16 sps:$4 sm:$0xff]  }
  0x6b   : > { %1582 = vmatpush2.bf16.msra.mxu0 %v2497_v6  ;;  %v2583_v6 = vld [vmem:[%s2839_s11 + $0x580] ss:$16 sps:$4 sm:$0xff]  }
  0x6c   : > { %1635 = vmatpush2.bf16.msra.mxu1 %v2498_v7  ;;  %1583 = vmatprep.subr.bf16.mxu0 %v2499_v8  ;;  %v2586_v7 = vld [vmem:[%s2839_s11 + $0x188] ss:$16 sps:$4 sm:$0xff]   ;;  %v2591_v8 = vld [vmem:[%s2839_s11 + $0x564] ss:$16 sps:$4 sm:$0xff]  }
  0x6d   : > { %1636 = vmatprep.subr.bf16.mxu1 %v2501_v9  ;;  %v2594_v9 = vld [vmem:[%s2839_s11 + $0x16c] ss:$16 sps:$4 sm:$0xff]  }
  0x6f   : > { %1584 = vmatpush2.bf16.msra.mxu0 %v2503_v10  ;;  %v2589_v10 = vld [vmem:[%s2839_s11 + $0x560] ss:$16 sps:$4 sm:$0xff]  }
  0x70   : > { %1637 = vmatpush2.bf16.msra.mxu1 %v2504_v11  ;;  %1585 = vmatprep.subr.bf16.mxu0 %v2505_v12  ;;  %v2592_v11 = vld [vmem:[%s2839_s11 + $0x168] ss:$16 sps:$4 sm:$0xff]   ;;  %v2603_v12 = vld [vmem:[%s2839_s11 + $0x544] ss:$16 sps:$4 sm:$0xff]  }
  0x71   : > { %1638 = vmatprep.subr.bf16.mxu1 %v2507_v13  ;;  %v2606_v13 = vld [vmem:[%s2839_s11 + $0x14c] ss:$16 sps:$4 sm:$0xff]  }
  0x73   : > { %1586 = vmatpush2.bf16.msra.mxu0 %v2509_v14  ;;  %v2601_v14 = vld [vmem:[%s2839_s11 + $0x540] ss:$16 sps:$4 sm:$0xff]  }
  0x74   : > { %1639 = vmatpush2.bf16.msra.mxu1 %v2510_v15  ;;  %1661 = vmatprep.subr.bf16.mxu0 %v2519_v16  ;;  %v2604_v15 = vld [vmem:[%s2839_s11 + $0x148] ss:$16 sps:$4 sm:$0xff]   ;;  %v2609_v16 = vld [vmem:[%s2839_s11 + $0x524] ss:$16 sps:$4 sm:$0xff]  }
  0x75   : > { %1714 = vmatprep.subr.bf16.mxu1 %v2522_v17  ;;  %v2612_v17 = vld [vmem:[%s2839_s11 + $0x12c] ss:$16 sps:$4 sm:$0xff]  }
  0x76   : > { %1588 = vmatmul.mubr.bf16.vlgmr.msra.gmra.mxu0 %v2943_v18 }
  0x77   : > { %1641 = vmatmul.mubr.bf16.vlgmr.msra.gmra.mxu1 %v2946_v19  ;;  %1662 = vmatpush1.bf16.msra.mxu0 %v2517_v20  ;;  %v2607_v20 = vld [vmem:[%s2839_s11 + $0x520] ss:$16 sps:$4 sm:$0xff]  }
  0x78   : > { %1715 = vmatpush1.bf16.msra.mxu1 %v2520_v21  ;;  %1663 = vmatprep.subr.bf16.mxu0 %v2525_v22  ;;  %v2610_v21 = vld [vmem:[%s2839_s11 + $0x128] ss:$16 sps:$4 sm:$0xff]   ;;  %v2615_v22 = vld [vmem:[%s2839_s11 + $0x504] ss:$16 sps:$4 sm:$0xff]  }
  0x79   : > { %1716 = vmatprep.subr.bf16.mxu1 %v2528_v23  ;;  %1597 = vmatprep.mubr.bf16.mxu0 %v2971_v40  ;;  %v2618_v23 = vld [vmem:[%s2839_s11 + $0x10c] ss:$16 sps:$4 sm:$0xff]  }
  0x7a   : > { %1650 = vmatprep.mubr.bf16.mxu1 %v2974_v41 }
  0x7b   : > { %1664 = vmatpush1.bf16.msra.mxu0 %v2523_v24  ;;  %v2613_v24 = vld [vmem:[%s2839_s11 + $0x500] ss:$16 sps:$4 sm:$0xff]  }
  0x7c   : > { %1717 = vmatpush1.bf16.msra.mxu1 %v2526_v25  ;;  %1665 = vmatprep.subr.bf16.mxu0 %v2531_v26  ;;  %v2616_v25 = vld [vmem:[%s2839_s11 + $0x108] ss:$16 sps:$4 sm:$0xff]   ;;  %v2624_v26 = vld [vmem:[%s2839_s11 + $0x2ec] ss:$16 sps:$4 sm:$0xff]  }
  0x7d   : > { %1718 = vmatprep.subr.bf16.mxu1 %v2534_v27  ;;  %v2627_v27 = vld [vmem:[%s2839_s11 + $0x4ec] ss:$16 sps:$4 sm:$0xff]  }
  0x7e   : > { %1598 = vmatmul.mubr.bf16.gmra.mxu0 %v2978_v42 }
  0x7f   : > { %1666 = vmatpush1.bf16.msra.mxu0 %v2529_v28  ;;  %1651 = vmatmul.mubr.bf16.gmra.mxu1 %v2981_v43  ;;  %v3036_v28 = vld [vmem:[%s2841_s12 + $0x10] ss:$24 sps:$4 sm:$0xff]  }
  0x80   : > { %1719 = vmatpush1.bf16.msra.mxu1 %v2532_v29  ;;  %1667 = vmatprep.subr.bf16.mxu0 %v2537_v30  ;;  %v2622_v29 = vld [vmem:[%s2839_s11 + $0x2e8] ss:$16 sps:$4 sm:$0xff]  }
  0x81   : > { %1720 = vmatprep.subr.bf16.mxu1 %v2540_v31  ;;  %1746 = vmatprep.mubr.bf16.mxu1 %v2918_v63  ;;  %v2579_v63 = vld [vmem:[%s2839_s11 + $0x5a4] ss:$16 sps:$4 sm:$0xff]   ;;  %v2625_v30 = vld [vmem:[%s2839_s11 + $0x4e8] ss:$16 sps:$4 sm:$0xff]   ;;  %v2630_v31 = vld [vmem:[%s2839_s11 + $0x2cc] ss:$16 sps:$4 sm:$0xff]  }
  0x82   : > { %1693 = vmatprep.mubr.bf16.mxu0 %v2998_v54 }
  0x83   : > { %1668 = vmatpush1.bf16.msra.mxu0 %v2535_v32  ;;  %v2633_v32 = vld [vmem:[%s2839_s11 + $0x4cc] ss:$16 sps:$4 sm:$0xff]  }
  0x84   : > { %1721 = vmatpush1.bf16.msra.mxu1 %v2538_v33  ;;  %1669 = vmatprep.subr.bf16.mxu0 %v2543_v34  ;;  %v3043_v33 = vld [vmem:[%s2841_s12 + $0x44] ss:$24 sps:$4 sm:$0xff]   ;;  %v2628_v34 = vld [vmem:[%s2839_s11 + $0x2c8] ss:$16 sps:$4 sm:$0xff]  }
  0x85   : > { %1722 = vmatprep.subr.bf16.mxu1 %v2546_v35  ;;  %v2631_v35 = vld [vmem:[%s2839_s11 + $0x4c8] ss:$16 sps:$4 sm:$0xff]  }
  0x87   : > { %1670 = vmatpush1.bf16.msra.mxu0 %v2541_v36  ;;  %v2639_v36 = vld [vmem:[%s2839_s11 + $0x2ac] ss:$16 sps:$4 sm:$0xff]  }
  0x88   : > { %1723 = vmatpush1.bf16.msra.mxu1 %v2544_v37  ;;  %1671 = vmatprep.subr.bf16.mxu0 %v2549_v38  ;;  %v2642_v37 = vld [vmem:[%s2839_s11 + $0x4ac] ss:$16 sps:$4 sm:$0xff]   ;;  %v3054_v38 = vld [vmem:[%s2841_s12 + $0x40] ss:$24 sps:$4 sm:$0xff]  }
  0x89   : > { %1724 = vmatprep.subr.bf16.mxu1 %v2552_v39  ;;  %v2640_v39 = vld [vmem:[%s2839_s11 + $0x4a8] ss:$16 sps:$4 sm:$0xff]  }
  0x8b   : > { %1672 = vmatpush1.bf16.msra.mxu0 %v2547_v44  ;;  %v2645_v44 = vld [vmem:[%s2839_s11 + $0x28c] ss:$16 sps:$4 sm:$0xff]  }
  0x8c   : > { %1725 = vmatpush1.bf16.msra.mxu1 %v2550_v45  ;;  %1673 = vmatprep.subr.bf16.mxu0 %v2555_v46  ;;  %v2648_v45 = vld [vmem:[%s2839_s11 + $0x48c] ss:$16 sps:$4 sm:$0xff]   ;;  %v2646_v46 = vld [vmem:[%s2839_s11 + $0x488] ss:$16 sps:$4 sm:$0xff]  }
  0x8d   : > { %1726 = vmatprep.subr.bf16.mxu1 %v2558_v47  ;;  %v2651_v47 = vld [vmem:[%s2839_s11 + $0x26c] ss:$16 sps:$4 sm:$0xff]  }
  0x8f   : > { %1674 = vmatpush1.bf16.msra.mxu0 %v2553_v48  ;;  %v2654_v48 = vld [vmem:[%s2839_s11 + $0x46c] ss:$16 sps:$4 sm:$0xff]  }
  0x90   : > { %1727 = vmatpush1.bf16.msra.mxu1 %v2556_v49  ;;  %1675 = vmatprep.subr.bf16.mxu0 %v2561_v50  ;;  %v2652_v49 = vld [vmem:[%s2839_s11 + $0x468] ss:$16 sps:$4 sm:$0xff]   ;;  %v2657_v50 = vld [vmem:[%s2839_s11 + $0x24c] ss:$16 sps:$4 sm:$0xff]  }
  0x91   : > { %1728 = vmatprep.subr.bf16.mxu1 %v2564_v51  ;;  %v2660_v51 = vld [vmem:[%s2839_s11 + $0x44c] ss:$16 sps:$4 sm:$0xff]  }
  0x93   : > { %1676 = vmatpush1.bf16.msra.mxu0 %v2559_v52  ;;  %v2655_v52 = vld [vmem:[%s2839_s11 + $0x248] ss:$16 sps:$4 sm:$0xff]  }
  0x94   : > { %1729 = vmatpush1.bf16.msra.mxu1 %v2562_v53  ;;  %1677 = vmatprep.subr.bf16.mxu0 %v2567_v55  ;;  %v2663_v53 = vld [vmem:[%s2839_s11 + $0x22c] ss:$16 sps:$4 sm:$0xff]   ;;  %v2661_v55 = vld [vmem:[%s2839_s11 + $0x228] ss:$16 sps:$4 sm:$0xff]  }
  0x95   : > { %1730 = vmatprep.subr.bf16.mxu1 %v2570_v56  ;;  %v2664_v56 = vld [vmem:[%s2839_s11 + $0x428] ss:$16 sps:$4 sm:$0xff]  }
  0x97   : > { %1678 = vmatpush2.bf16.msra.mxu0 %v2565_v57  ;;  %v2669_v57 = vld [vmem:[%s2839_s11 + $0x20c] ss:$16 sps:$4 sm:$0xff]  }
  0x98   : > { %1731 = vmatpush2.bf16.msra.mxu1 %v2568_v58  ;;  %1679 = vmatprep.subr.bf16.mxu0 %v2573_v59  ;;  %v2672_v58 = vld [vmem:[%s2839_s11 + $0x40c] ss:$16 sps:$4 sm:$0xff]   ;;  %v2667_v59 = vld [vmem:[%s2839_s11 + $0x208] ss:$16 sps:$4 sm:$0xff]  }
  0x99   : > { %1732 = vmatprep.subr.bf16.mxu1 %v2576_v60  ;;  %v2670_v60 = vld [vmem:[%s2839_s11 + $0x408] ss:$16 sps:$4 sm:$0xff]  }
  0x9b   : > { %1680 = vmatpush2.bf16.msra.mxu0 %v2571_v61  ;;  %v2675_v61 = vld [vmem:[%s2839_s11 + $0x3ec] ss:$16 sps:$4 sm:$0xff]  }
  0x9c   : > { %1733 = vmatpush2.bf16.msra.mxu1 %v2574_v62  ;;  %1681 = vmatprep.subr.bf16.mxu0 %v2579_v63  ;;  %v2678_v62 = vld [vmem:[%s2839_s11 + $0x5ec] ss:$16 sps:$4 sm:$0xff]   ;;  %v2673_v63 = vld [vmem:[%s2839_s11 + $0x3e8] ss:$16 sps:$4 sm:$0xff]  }
  0x9d   : > { %1734 = vmatprep.subr.bf16.mxu1 %v2582_v0  ;;  %v2676_v0 = vld [vmem:[%s2839_s11 + $0x5e8] ss:$16 sps:$4 sm:$0xff]  }
  0x9f   : > { %1682 = vmatpush2.bf16.msra.mxu0 %v2577_v2  ;;  %v2681_v2 = vld [vmem:[%s2839_s11 + $0x3cc] ss:$16 sps:$4 sm:$0xff]  }
  0xa0   : > { %1735 = vmatpush2.bf16.msra.mxu1 %v2580_v3  ;;  %1683 = vmatprep.subr.bf16.mxu0 %v2585_v4  ;;  %v2684_v3 = vld [vmem:[%s2839_s11 + $0x5cc] ss:$16 sps:$4 sm:$0xff]   ;;  %v2679_v4 = vld [vmem:[%s2839_s11 + $0x3c8] ss:$16 sps:$4 sm:$0xff]  }
  0xa1   : > { %1736 = vmatprep.subr.bf16.mxu1 %v2588_v5  ;;  %v2682_v5 = vld [vmem:[%s2839_s11 + $0x5c8] ss:$16 sps:$4 sm:$0xff]  }
  0xa3   : > { %1684 = vmatpush2.bf16.msra.mxu0 %v2583_v6  ;;  %v2687_v6 = vld [vmem:[%s2839_s11 + $0x3ac] ss:$16 sps:$4 sm:$0xff]  }
  0xa4   : > { %1737 = vmatpush2.bf16.msra.mxu1 %v2586_v7  ;;  %1685 = vmatprep.subr.bf16.mxu0 %v2591_v8  ;;  %v2690_v7 = vld [vmem:[%s2839_s11 + $0x5ac] ss:$16 sps:$4 sm:$0xff]   ;;  %v2685_v8 = vld [vmem:[%s2839_s11 + $0x3a8] ss:$16 sps:$4 sm:$0xff]  }
  0xa5   : > { %1738 = vmatprep.subr.bf16.mxu1 %v2594_v9  ;;  %v2688_v9 = vld [vmem:[%s2839_s11 + $0x5a8] ss:$16 sps:$4 sm:$0xff]  }
  0xa7   : > { %1686 = vmatpush2.bf16.msra.mxu0 %v2589_v10  ;;  %v2693_v10 = vld [vmem:[%s2839_s11 + $0x38c] ss:$16 sps:$4 sm:$0xff]  }
  0xa8   : > { %1739 = vmatpush2.bf16.msra.mxu1 %v2592_v11  ;;  %1687 = vmatprep.subr.bf16.mxu0 %v2603_v12  ;;  %v2696_v11 = vld [vmem:[%s2839_s11 + $0x58c] ss:$16 sps:$4 sm:$0xff]   ;;  %v2691_v12 = vld [vmem:[%s2839_s11 + $0x388] ss:$16 sps:$4 sm:$0xff]  }
  0xa9   : > { %1740 = vmatprep.subr.bf16.mxu1 %v2606_v13  ;;  %v2694_v13 = vld [vmem:[%s2839_s11 + $0x588] ss:$16 sps:$4 sm:$0xff]  }
  0xab   : > { %1688 = vmatpush2.bf16.msra.mxu0 %v2601_v14  ;;  %v2699_v14 = vld [vmem:[%s2839_s11 + $0x36c] ss:$16 sps:$4 sm:$0xff]  }
  0xac   : > { %1741 = vmatpush2.bf16.msra.mxu1 %v2604_v15  ;;  %1689 = vmatprep.subr.bf16.mxu0 %v2609_v16  ;;  %v2702_v15 = vld [vmem:[%s2839_s11 + $0x56c] ss:$16 sps:$4 sm:$0xff]   ;;  %v2697_v16 = vld [vmem:[%s2839_s11 + $0x368] ss:$16 sps:$4 sm:$0xff]  }
  0xad   : > { %1742 = vmatprep.subr.bf16.mxu1 %v2612_v17  ;;  %v2700_v17 = vld [vmem:[%s2839_s11 + $0x568] ss:$16 sps:$4 sm:$0xff]  }
  0xaf   : > { %1690 = vmatpush2.bf16.msra.mxu0 %v2607_v20  ;;  %v2705_v20 = vld [vmem:[%s2839_s11 + $0x34c] ss:$16 sps:$4 sm:$0xff]  }
  0xb0   : > { %1743 = vmatpush2.bf16.msra.mxu1 %v2610_v21  ;;  %1691 = vmatprep.subr.bf16.mxu0 %v2615_v22  ;;  %v2708_v21 = vld [vmem:[%s2839_s11 + $0x54c] ss:$16 sps:$4 sm:$0xff]   ;;  %v2703_v22 = vld [vmem:[%s2839_s11 + $0x348] ss:$16 sps:$4 sm:$0xff]  }
  0xb1   : > { %1744 = vmatprep.subr.bf16.mxu1 %v2618_v23  ;;  %v2706_v23 = vld [vmem:[%s2839_s11 + $0x548] ss:$16 sps:$4 sm:$0xff]  }
  0xb3   : > { %1692 = vmatpush2.bf16.msra.mxu0 %v2613_v24  ;;  %v2711_v24 = vld [vmem:[%s2839_s11 + $0x32c] ss:$16 sps:$4 sm:$0xff]  }
  0xb4   : > { %1745 = vmatpush2.bf16.msra.mxu1 %v2616_v25  ;;  %1767 = vmatprep.subr.bf16.mxu0 %v2624_v26  ;;  %v2714_v25 = vld [vmem:[%s2839_s11 + $0x52c] ss:$16 sps:$4 sm:$0xff]   ;;  %v2709_v26 = vld [vmem:[%s2839_s11 + $0x328] ss:$16 sps:$4 sm:$0xff]  }
  0xb5   : > { %1820 = vmatprep.subr.bf16.mxu1 %v2627_v27  ;;  %v2712_v27 = vld [vmem:[%s2839_s11 + $0x528] ss:$16 sps:$4 sm:$0xff]  }
  0xb6   : > { %1694 = vmatmul.mubr.bf16.vlgmr.msra.gmra.mxu0 %v3036_v28 }
  0xb7   : > { %1747 = vmatmul.mubr.bf16.vlgmr.msra.gmra.mxu1 %v2943_v18  ;;  %1768 = vmatpush1.bf16.msra.mxu0 %v2622_v29  ;;  %v2637_v18 = vld [vmem:[%s2839_s11 + $0x2a8] ss:$16 sps:$4 sm:$0xff]   ;;  %v2717_v29 = vld [vmem:[%s2839_s11 + $0x30c] ss:$16 sps:$4 sm:$0xff]  }
  0xb8   : > { %1821 = vmatpush1.bf16.msra.mxu1 %v2625_v30  ;;  %1769 = vmatprep.subr.bf16.mxu0 %v2630_v31  ;;  %v2720_v30 = vld [vmem:[%s2839_s11 + $0x50c] ss:$16 sps:$4 sm:$0xff]   ;;  %v2715_v31 = vld [vmem:[%s2839_s11 + $0x308] ss:$16 sps:$4 sm:$0xff]  }
  0xb9   : > { %1822 = vmatprep.subr.bf16.mxu1 %v2633_v32  ;;  %1703 = vmatprep.mubr.bf16.mxu0 %v3043_v33  ;;  %v2718_v32 = vld [vmem:[%s2839_s11 + $0x508] ss:$16 sps:$4 sm:$0xff]  }
  0xba   : > { %1756 = vmatprep.mubr.bf16.mxu1 %v2971_v40  ;;  %v2643_v40 = vld [vmem:[%s2839_s11 + $0x288] ss:$16 sps:$4 sm:$0xff]  }
  0xbb   : > { %1770 = vmatpush1.bf16.msra.mxu0 %v2628_v34 }
  0xbc   : > { %1823 = vmatpush1.bf16.msra.mxu1 %v2631_v35  ;;  %1771 = vmatprep.subr.bf16.mxu0 %v2639_v36 }
  0xbd   : > { %1824 = vmatprep.subr.bf16.mxu1 %v2642_v37 }
  0xbe   : > { %1704 = vmatmul.mubr.bf16.gmra.mxu0 %v3054_v38 }
  0xbf   : > { %1757 = vmatmul.mubr.bf16.gmra.mxu1 %v2978_v42  ;;  %1772 = vmatpush1.bf16.msra.mxu0 %v2637_v18  ;;  %v2649_v42 = vld [vmem:[%s2839_s11 + $0x268] ss:$16 sps:$4 sm:$0xff]  }
  0xc0   : > { %1825 = vmatpush1.bf16.msra.mxu1 %v2640_v39  ;;  %1773 = vmatprep.subr.bf16.mxu0 %v2645_v44 }
  0xc1   : > { %1826 = vmatprep.subr.bf16.mxu1 %v2648_v45  ;;  %1799 = vmatprep.mubr.bf16.mxu0 %v2922_v1  ;;  %v2658_v1 = vld [vmem:[%s2839_s11 + $0x448] ss:$16 sps:$4 sm:$0xff]  }
  0xc2   : > { %1852 = vmatprep.mubr.bf16.mxu1 %v2998_v54  ;;  %v2666_v54 = vld [vmem:[%s2839_s11 + $0x42c] ss:$16 sps:$4 sm:$0xff]  }
  0xc3   : > { %1774 = vmatpush1.bf16.msra.mxu0 %v2643_v40 }
  0xc4   : > { %1827 = vmatpush1.bf16.msra.mxu1 %v2646_v46  ;;  %1775 = vmatprep.subr.bf16.mxu0 %v2651_v47 }
  0xc5   : > { %1828 = vmatprep.subr.bf16.mxu1 %v2654_v48  ;;  %v315_v48 = vld [vmem:[#allocation2 + $0x30] sm:$0xff] }
  0xc7   : > { %1776 = vmatpush1.bf16.msra.mxu0 %v2649_v42 }
  0xc8   : > { %1829 = vmatpush1.bf16.msra.mxu1 %v2652_v49  ;;  %1777 = vmatprep.subr.bf16.mxu0 %v2657_v50 }
  0xc9   : > { %1830 = vmatprep.subr.bf16.mxu1 %v2660_v51 }
  0xcb   : > { %1778 = vmatpush1.bf16.msra.mxu0 %v2655_v52 }
  0xcc   : > { %1831 = vmatpush1.bf16.msra.mxu1 %v2658_v1  ;;  %1779 = vmatprep.subr.bf16.mxu0 %v2663_v53  ;;  %v319_v53 = vld [vmem:[#allocation2 + $0x50] sm:$0xff] }
  0xcd   : > { %1832 = vmatprep.subr.bf16.mxu1 %v2666_v54 }
  0xcf   : > { %1780 = vmatpush1.bf16.msra.mxu0 %v2661_v55 }
  0xd0   : > { %1833 = vmatpush1.bf16.msra.mxu1 %v2664_v56  ;;  %1781 = vmatprep.subr.bf16.mxu0 %v2669_v57 }
  0xd1   : > { %1834 = vmatprep.subr.bf16.mxu1 %v2672_v58 }
  0xd3   : > { %1782 = vmatpush1.bf16.msra.mxu0 %v2667_v59  ;;  %v320_v59 = vld [vmem:[#allocation2 + $0x68] sm:$0xff] }
  0xd4   : > { %1835 = vmatpush1.bf16.msra.mxu1 %v2670_v60  ;;  %1783 = vmatprep.subr.bf16.mxu0 %v2675_v61 }
  0xd5   : > { %1836 = vmatprep.subr.bf16.mxu1 %v2678_v62 }
  0xd7   : > { %1784 = vmatpush2.bf16.msra.mxu0 %v2673_v63 }
  0xd8   : > { %1837 = vmatpush2.bf16.msra.mxu1 %v2676_v0  ;;  %1785 = vmatprep.subr.bf16.mxu0 %v2681_v2  ;;  %v323_v0 = vld [vmem:[#allocation2 + $0x40] sm:$0xff] }
  0xd9   : > { %1838 = vmatprep.subr.bf16.mxu1 %v2684_v3 }
  0xdb   : > { %1786 = vmatpush2.bf16.msra.mxu0 %v2679_v4 }
  0xdc   : > { %1839 = vmatpush2.bf16.msra.mxu1 %v2682_v5  ;;  %1787 = vmatprep.subr.bf16.mxu0 %v2687_v6 }
  0xdd   : > { %1840 = vmatprep.subr.bf16.mxu1 %v2690_v7  ;;  %v324_v7 = vld [vmem:[#allocation2 + $0x20] sm:$0xff] }
  0xdf   : > { %1788 = vmatpush2.bf16.msra.mxu0 %v2685_v8 }
  0xe0   : > { %1841 = vmatpush2.bf16.msra.mxu1 %v2688_v9  ;;  %1789 = vmatprep.subr.bf16.mxu0 %v2693_v10 }
  0xe1   : > { %1842 = vmatprep.subr.bf16.mxu1 %v2696_v11 }
  0xe3   : > { %1790 = vmatpush2.bf16.msra.mxu0 %v2691_v12  ;;  %v327_v12 = vld [vmem:[#allocation2 + $0x60] sm:$0xff] }
  0xe4   : > { %1843 = vmatpush2.bf16.msra.mxu1 %v2694_v13  ;;  %1791 = vmatprep.subr.bf16.mxu0 %v2699_v14 }
  0xe5   : > { %1844 = vmatprep.subr.bf16.mxu1 %v2702_v15 }
  0xe7   : > { %1792 = vmatpush2.bf16.msra.mxu0 %v2697_v16 }
  0xe8   : > { %1845 = vmatpush2.bf16.msra.mxu1 %v2700_v17  ;;  %1793 = vmatprep.subr.bf16.mxu0 %v2705_v20  ;;  %v328_v17 = vld [vmem:[#allocation2 + $0x70] sm:$0xff] }
  0xe9   : > { %1846 = vmatprep.subr.bf16.mxu1 %v2708_v21 }
  0xeb   : > { %1794 = vmatpush2.bf16.msra.mxu0 %v2703_v22 }
  0xec   : > { %1847 = vmatpush2.bf16.msra.mxu1 %v2706_v23  ;;  %1795 = vmatprep.subr.bf16.mxu0 %v2711_v24 }
  0xed   : > { %1848 = vmatprep.subr.bf16.mxu1 %v2714_v25 }
  0xef   : > { %1796 = vmatpush2.bf16.msra.mxu0 %v2709_v26 }
  0xf0   : > { %1849 = vmatpush2.bf16.msra.mxu1 %v2712_v27  ;;  %1797 = vmatprep.subr.bf16.mxu0 %v2717_v29 }
  0xf1   : > { %1850 = vmatprep.subr.bf16.mxu1 %v2720_v30 }
  0xf3   : > { %1798 = vmatpush2.bf16.msra.mxu0 %v2715_v31 }
  0xf4   : > { %1851 = vmatpush2.bf16.msra.mxu1 %v2718_v32 }
  0xf6   : > { %1800 = vmatmul.mubr.bf16.vlgmr.msra.gmra.mxu0 %v2946_v19 }
  0xf7   : > { %1853 = vmatmul.mubr.bf16.vlgmr.msra.gmra.mxu1 %v3036_v28  ;;  %1809 = vmatprep.mubr.bf16.mxu0 %v2974_v41 }
  0xf8   : > { %1862 = vmatprep.mubr.bf16.mxu1 %v3043_v33 }
  0xfe   : > { %1810 = vmatmul.mubr.bf16.gmra.mxu0 %v2981_v43 }
  0xff   : > { %1863 = vmatmul.mubr.bf16.gmra.mxu1 %v3054_v38  ;;  %v316_v38 = vld [vmem:[#allocation2] sm:$0xff] }
 0x136   : > { %v1589_v34 = vpop.f32.mrf.mxu0 }
 0x137   : > { %v1642_v37 = vpop.f32.mrf.mxu1 }
 0x138   : > { %v1591_v35 = vpop.f32.mrf.mxu0  ;;  %v1643_v41 = vadd.f32 %v1642_v37, %v1589_v34  ;;  %v317_v37 = vld [vmem:[#allocation2 + $0x58] sm:$0xff] }
 0x139   : > { %v1644_v44 = vpop.f32.mrf.mxu1 }
 0x13a   : > { %v1593_v36 = vpop.f32.mrf.mxu0  ;;  %v1645_v42 = vadd.f32 %v1644_v44, %v1591_v35 }
 0x13b   : > { %v1646_v40 = vpop.f32.mrf.mxu1 }
 0x13c   : > { %v1595_v18 = vpop.f32.mrf.mxu0  ;;  %v1647_v51 = vadd.f32 %v1646_v40, %v1593_v36  ;;  %v318_v40 = vld [vmem:[#allocation2 + $0x18] sm:$0xff] }
 0x13d   : > { %v1648_v46 = vpop.f32.mrf.mxu1 }
 0x13e   : > { %v1599_v39 = vpop.f32.mrf.mxu0  ;;  %v1649_v55 = vadd.f32 %v1648_v46, %v1595_v18 }
 0x13f   : > { %v1652_v28 = vpop.f32.mrf.mxu1 }
 0x140   : > { %v1601_v45 = vpop.f32.mrf.mxu0  ;;  %v1653_v61 = vadd.f32 %v1652_v28, %v1599_v39 }
 0x141   : > { %v1654_v49 = vpop.f32.mrf.mxu1 }
 0x142   : > { %v1603_v19 = vpop.f32.mrf.mxu0  ;;  %v1655_v3 = vadd.f32 %v1654_v49, %v1601_v45 }
 0x143   : > { %v1656_v58 = vpop.f32.mrf.mxu1 }
 0x144   : > { %v1605_v47 = vpop.f32.mrf.mxu0  ;;  %v1657_v9 = vadd.f32 %v1656_v58, %v1603_v19 }
 0x145   : > { %v1658_v6 = vpop.f32.mrf.mxu1 }
 0x146   : > { %v1659_v14 = vadd.f32 %v1658_v6, %v1605_v47 }
 0x176   : > { %v1695_v33 = vpop.f32.mrf.mxu0 }
 0x177   : > { %v1696_v43 = vadd.f32 %v1695_v33, %v1643_v41  ;;  %v1748_v24 = vpop.f32.mrf.mxu1 }
 0x178   : > { %v1697_v50 = vpop.f32.mrf.mxu0 }
 0x179   : > { %v1873_v52 = vadd.f32 %v1696_v43, %v315_v48  ;;  %v1698_v1 = vadd.f32 %v1697_v50, %v1645_v42  ;;  %v1750_v25 = vpop.f32.mrf.mxu1  ;;  %v321_v48 = vld [vmem:[#allocation2 + $0x8] sm:$0xff] }
 0x17a   : > { %v1699_v54 = vpop.f32.mrf.mxu0  ;;  %v322_v50 = vld [vmem:[#allocation2 + $0x48] sm:$0xff] }
 0x17b   : > { %1889 = vst [vmem:[#allocation2 + $0x30] sm:$0xff] %v1873_v52  ;;  %v1874_v56 = vadd.f32 %v1698_v1, %v316_v38  ;;  %v1700_v57 = vadd.f32 %v1699_v54, %v1647_v51  ;;  %v1752_v26 = vpop.f32.mrf.mxu1 }
 0x17c   : > { %v1701_v60 = vpop.f32.mrf.mxu0 }
 0x17d   : > { %1890 = vst [vmem:[#allocation2] sm:$0xff] %v1874_v56  ;;  %v1877_v62 = vadd.f32 %v1700_v57, %v319_v53  ;;  %v1702_v63 = vadd.f32 %v1701_v60, %v1649_v55  ;;  %v1754_v27 = vpop.f32.mrf.mxu1  ;;  %v325_v55 = vld [vmem:[#allocation2 + $0x10] sm:$0xff] }
 0x17e   : > { %v1705_v2 = vpop.f32.mrf.mxu0 }
 0x17f   : > { %1893 = vst [vmem:[#allocation2 + $0x50] sm:$0xff] %v1877_v62  ;;  %v1878_v4 = vadd.f32 %v1702_v63, %v320_v59  ;;  %v1706_v5 = vadd.f32 %v1705_v2, %v1653_v61  ;;  %v1758_v29 = vpop.f32.mrf.mxu1  ;;  %v326_v61 = vld [vmem:[#allocation2 + $0x38] sm:$0xff] }
 0x180   : > { %v1707_v8 = vpop.f32.mrf.mxu0 }
 0x181   : > { %1894 = vst [vmem:[#allocation2 + $0x68] sm:$0xff] %v1878_v4  ;;  %v1881_v10 = vadd.f32 %v1706_v5, %v323_v0  ;;  %v1708_v11 = vadd.f32 %v1707_v8, %v1655_v3  ;;  %v1760_v30 = vpop.f32.mrf.mxu1  ;;  %v329_v4 = vld [vmem:[#allocation2 + $0x78] sm:$0xff] }
 0x182   : > { %v1709_v13 = vpop.f32.mrf.mxu0 }
 0x183   : > { %1897 = vst [vmem:[#allocation2 + $0x40] sm:$0xff] %v1881_v10  ;;  %v1882_v15 = vadd.f32 %v1708_v11, %v324_v7  ;;  %v1710_v16 = vadd.f32 %v1709_v13, %v1657_v9  ;;  %v1762_v31 = vpop.f32.mrf.mxu1  ;;  %v330_v9 = vld [vmem:[#allocation2 + $0x28] sm:$0xff] }
 0x184   : > { %v1711_v20 = vpop.f32.mrf.mxu0 }
 0x185   : > { %1898 = vst [vmem:[#allocation2 + $0x20] sm:$0xff] %v1882_v15  ;;  %v1885_v21 = vadd.f32 %v1710_v16, %v327_v12  ;;  %v1712_v22 = vadd.f32 %v1711_v20, %v1659_v14  ;;  %v1764_v32 = vpop.f32.mrf.mxu1 }
 0x187   : > { %1901 = vst [vmem:[#allocation2 + $0x60] sm:$0xff] %v1885_v21  ;;  %v1886_v23 = vadd.f32 %v1712_v22, %v328_v17 }
 0x189   : > { %1902 = vst [vmem:[#allocation2 + $0x70] sm:$0xff] %v1886_v23 }
 0x1b6   : > { %v1801_v34 = vpop.f32.mrf.mxu0 }
 0x1b7   : > { %v1854_v35 = vpop.f32.mrf.mxu1  ;;  %v1802_v36 = vadd.f32 %v1801_v34, %v1748_v24 }
 0x1b8   : > { %v1803_v18 = vpop.f32.mrf.mxu0 }
 0x1b9   : > { %v1856_v39 = vpop.f32.mrf.mxu1  ;;  %v1855_v44 = vadd.f32 %v1854_v35, %v1802_v36  ;;  %v1804_v45 = vadd.f32 %v1803_v18, %v1750_v25 }
 0x1ba   : > { %v1805_v19 = vpop.f32.mrf.mxu0 }
 0x1bb   : > { %v1858_v46 = vpop.f32.mrf.mxu1  ;;  %v1875_v28 = vadd.f32 %v1855_v44, %v317_v37  ;;  %v1857_v47 = vadd.f32 %v1856_v39, %v1804_v45  ;;  %v1806_v41 = vadd.f32 %v1805_v19, %v1752_v26 }
 0x1bc   : > { %v1807_v33 = vpop.f32.mrf.mxu0 }
 0x1bd   : > { %v1860_v42 = vpop.f32.mrf.mxu1  ;;  %1891 = vst [vmem:[#allocation2 + $0x58] sm:$0xff] %v1875_v28  ;;  %v1876_v43 = vadd.f32 %v1857_v47, %v318_v40  ;;  %v1859_v49 = vadd.f32 %v1858_v46, %v1806_v41  ;;  %v1808_v38 = vadd.f32 %v1807_v33, %v1754_v27 }
 0x1be   : > { %v1811_v51 = vpop.f32.mrf.mxu0 }
 0x1bf   : > { %v1864_v52 = vpop.f32.mrf.mxu1  ;;  %1892 = vst [vmem:[#allocation2 + $0x18] sm:$0xff] %v1876_v43  ;;  %v1879_v1 = vadd.f32 %v1859_v49, %v321_v48  ;;  %v1861_v53 = vadd.f32 %v1860_v42, %v1808_v38  ;;  %v1812_v54 = vadd.f32 %v1811_v51, %v1758_v29 }
 0x1c0   : > { %v1813_v56 = vpop.f32.mrf.mxu0 }
 0x1c1   : > { %v1866_v57 = vpop.f32.mrf.mxu1  ;;  %1895 = vst [vmem:[#allocation2 + $0x8] sm:$0xff] %v1879_v1  ;;  %v1880_v58 = vadd.f32 %v1861_v53, %v322_v50  ;;  %v1865_v59 = vadd.f32 %v1864_v52, %v1812_v54  ;;  %v1814_v60 = vadd.f32 %v1813_v56, %v1760_v30 }
 0x1c2   : > { %v1815_v62 = vpop.f32.mrf.mxu0 }
 0x1c3   : > { %v1868_v63 = vpop.f32.mrf.mxu1  ;;  %1896 = vst [vmem:[#allocation2 + $0x48] sm:$0xff] %v1880_v58  ;;  %v1883_v0 = vadd.f32 %v1865_v59, %v325_v55  ;;  %v1867_v2 = vadd.f32 %v1866_v57, %v1814_v60  ;;  %v1816_v3 = vadd.f32 %v1815_v62, %v1762_v31 }
 0x1c4   : > { %v1817_v5 = vpop.f32.mrf.mxu0 }
 0x1c5   : > { %1899 = vst [vmem:[#allocation2 + $0x10] sm:$0xff] %v1883_v0  ;;  %v1884_v6 = vadd.f32 %v1867_v2, %v326_v61  ;;  %v1869_v7 = vadd.f32 %v1868_v63, %v1816_v3  ;;  %v1818_v8 = vadd.f32 %v1817_v5, %v1764_v32  ;;  %v1870_v10 = vpop.f32.mrf.mxu1 }
 0x1c7   : > { %1900 = vst [vmem:[#allocation2 + $0x38] sm:$0xff] %v1884_v6  ;;  %v1887_v11 = vadd.f32 %v1869_v7, %v329_v4  ;;  %v1871_v12 = vadd.f32 %v1870_v10, %v1818_v8  ;;  %1908 = sbr.rel (%p2363_p12) target bundleno = 492 (0x1ec), region = 63 }
 0x1c9   : > { %1903 = vst [vmem:[#allocation2 + $0x78] sm:$0xff] %v1887_v11  ;;  %v1888_v13 = vadd.f32 %v1871_v12, %v330_v9 }
 0x1cb   : > { %1904 = vst [vmem:[#allocation2 + $0x28] sm:$0xff] %v1888_v13 }
 0x1cc   : > { %v1909_v14 = vld [vmem:[#allocation2 + $0x30] sm:$0xff]  ;;  %v1910_v15 = vld [vmem:[#allocation2] sm:$0xff]  ;;  %v1911_v16 = vld [vmem:[#allocation2 + $0x58] sm:$0xff] }
 0x1cd   : > { %1925 = vst [vmem:[%s3234_s2] sm:$0xff] %v1909_v14  ;;  %v1977_v17 = vmul.f32 %v1909_v14, %v1909_v14  ;;  %1926 = vst [vmem:[%s3234_s2 + $0x8] sm:$0xff] %v1910_v15  ;;  %v1978_v20 = vmul.f32 %v1910_v15, %v1910_v15  ;;  %v1979_v21 = vmul.f32 %v1911_v16, %v1911_v16  ;;  %v1912_v22 = vld [vmem:[#allocation2 + $0x18] sm:$0xff]  ;;  %v1913_v23 = vld [vmem:[#allocation2 + $0x50] sm:$0xff] }
 0x1ce   : > { %1927 = vst [vmem:[%s3234_s2 + $0x10] sm:$0xff] %v1911_v16  ;;  %v1914_v24 = vld [vmem:[#allocation2 + $0x68] sm:$0xff]  ;;  %1928 = vst [vmem:[%s3234_s2 + $0x18] sm:$0xff] %v1912_v22  ;;  %v1980_v25 = vmul.f32 %v1912_v22, %v1912_v22  ;;  %v1941_v26 = vadd.f32 %v1913_v23, %v1909_v14  ;;  %v1981_v27 = vmul.f32 %v1913_v23, %v1913_v23  ;;  %v1917_v32 = vld [vmem:[#allocation2 + $0x40] sm:$0xff] }
 0x1cf   : > { %1929 = vst [vmem:[%s3234_s2 + $0x20] sm:$0xff] %v1913_v23  ;;  %1930 = vst [vmem:[%s3234_s2 + $0x28] sm:$0xff] %v1914_v24  ;;  %v1950_v29 = vadd.f32 %v1914_v24, %v1910_v15  ;;  %v1915_v30 = vld [vmem:[#allocation2 + $0x8] sm:$0xff]  ;;  %v1982_v34 = vmul.f32 %v1914_v24, %v1914_v24  ;;  %v1918_v18 = vld [vmem:[#allocation2 + $0x20] sm:$0xff]  ;;  %v1985_v46 = vmul.f32 %v1917_v32, %v1917_v32 }
 0x1d0   : > { %v1916_v31 = vld [vmem:[#allocation2 + $0x48] sm:$0xff]  ;;  %1931 = vst [vmem:[%s3234_s2 + $0x30] sm:$0xff] %v1915_v30  ;;  %v1959_v35 = vadd.f32 %v1915_v30, %v1911_v16  ;;  %v1983_v36 = vmul.f32 %v1915_v30, %v1915_v30  ;;  %1933 = vst [vmem:[%s3234_s2 + $0x40] sm:$0xff] %v1917_v32  ;;  %v1919_v39 = vld [vmem:[#allocation2 + $0x10] sm:$0xff]  ;;  %v1993_v45 = vadd.f32 %v1981_v27, %v1977_v17 }
 0x1d1   : > { %1932 = vst [vmem:[%s3234_s2 + $0x38] sm:$0xff] %v1916_v31  ;;  %v1968_v37 = vadd.f32 %v1916_v31, %v1912_v22  ;;  %v1920_v44 = vld [vmem:[#allocation2 + $0x38] sm:$0xff]  ;;  %v1984_v40 = vmul.f32 %v1916_v31, %v1916_v31  ;;  %v1942_v19 = vadd.f32 %v1941_v26, %v1917_v32  ;;  %1934 = vst [vmem:[%s3234_s2 + $0x48] sm:$0xff] %v1918_v18  ;;  %v1921_v28 = vld [vmem:[#allocation2 + $0x60] sm:$0xff] }
 0x1d2   : > { %1935 = vst [vmem:[%s3234_s2 + $0x50] sm:$0xff] %v1919_v39  ;;  %1936 = vst [vmem:[%s3234_s2 + $0x58] sm:$0xff] %v1920_v44  ;;  %v1922_v47 = vld [vmem:[#allocation2 + $0x70] sm:$0xff]  ;;  %v1923_v41 = vld [vmem:[#allocation2 + $0x78] sm:$0xff]  ;;  %v2002_v48 = vadd.f32 %v1982_v34, %v1978_v20  ;;  %v2011_v33 = vadd.f32 %v1983_v36, %v1979_v21  ;;  %v1951_v42 = vadd.f32 %v1950_v29, %v1918_v18 }
 0x1d3   : > { %v1986_v43 = vmul.f32 %v1918_v18, %v1918_v18  ;;  %1937 = vst [vmem:[%s3234_s2 + $0x60] sm:$0xff] %v1921_v28  ;;  %1938 = vst [vmem:[%s3234_s2 + $0x68] sm:$0xff] %v1922_v47  ;;  %v1924_v49 = vld [vmem:[#allocation2 + $0x28] sm:$0xff]  ;;  %v2020_v38 = vadd.f32 %v1984_v40, %v1980_v25  ;;  %v1994_v50 = vadd.f32 %v1993_v45, %v1985_v46 }
 0x1d4   : > { %1939 = vst [vmem:[%s3234_s2 + $0x70] sm:$0xff] %v1923_v41  ;;  %v1960_v51 = vadd.f32 %v1959_v35, %v1919_v39  ;;  %v1987_v52 = vmul.f32 %v1919_v39, %v1919_v39  ;;  %1940 = vst [vmem:[%s3234_s2 + $0x78] sm:$0xff] %v1924_v49  ;;  %v1969_v53 = vadd.f32 %v1968_v37, %v1920_v44  ;;  %v2029_v37 = vld [vmem:[%s3235_s3] sm:$0xff] }
 0x1d5   : > { %v2003_v1 = vadd.f32 %v2002_v48, %v1986_v43  ;;  %v1988_v54 = vmul.f32 %v1920_v44, %v1920_v44  ;;  %v1943_v55 = vadd.f32 %v1942_v19, %v1921_v28  ;;  %v1989_v57 = vmul.f32 %v1921_v28, %v1921_v28  ;;  %v2030_v19 = vld [vmem:[%s3235_s3 + $0x8] sm:$0xff]  ;;  %v2031_v48 = vld [vmem:[%s3235_s3 + $0x10] sm:$0xff] }
 0x1d6   : > { %v2012_v56 = vadd.f32 %v2011_v33, %v1987_v52  ;;  %v1952_v58 = vadd.f32 %v1951_v42, %v1922_v47  ;;  %v1990_v59 = vmul.f32 %v1922_v47, %v1922_v47  ;;  %v1961_v62 = vadd.f32 %v1960_v51, %v1923_v41  ;;  %v2041_v51 = vld [vmem:[%s3236_s4] sm:$0xff]  ;;  %v2042_v52 = vld [vmem:[%s3236_s4 + $0x8] sm:$0xff] }
 0x1d7   : > { %v2021_v60 = vadd.f32 %v2020_v38, %v1988_v54  ;;  %v1944_v61 = vrot.slane %v1943_v55, 4  ;;  %v1991_v63 = vmul.f32 %v1923_v41, %v1923_v41  ;;  %v1995_v0 = vadd.f32 %v1994_v50, %v1989_v57  ;;  %v2032_v50 = vld [vmem:[%s3235_s3 + $0x18] sm:$0xff] }
 0x1d8   : > { %v1953_v2 = vrot.slane %v1952_v58, 4  ;;  %v2004_v3 = vadd.f32 %v2003_v1, %v1990_v59  ;;  %v1970_v4 = vadd.f32 %v1969_v53, %v1924_v49  ;;  %v1962_v6 = vrot.slane %v1961_v62, 4 }
 0x1d9   : > { %v1945_v5 = vadd.f32 %v1944_v61, %v1943_v55  ;;  %v2013_v7 = vadd.f32 %v2012_v56, %v1991_v63  ;;  %v1992_v8 = vmul.f32 %v1924_v49, %v1924_v49  ;;  %v1996_v9 = vrot.slane %v1995_v0, 4 }
 0x1da   : > { %v1954_v10 = vadd.f32 %v1953_v2, %v1952_v58  ;;  %v2005_v11 = vrot.slane %v2004_v3, 4  ;;  %v1971_v12 = vrot.slane %v1970_v4, 4  ;;  %v1963_v13 = vadd.f32 %v1962_v6, %v1961_v62  ;;  %v2043_v58 = vld [vmem:[%s3236_s4 + $0x10] sm:$0xff]  ;;  %v2044_v2 = vld [vmem:[%s3236_s4 + $0x18] sm:$0xff] }
 0x1db   : > { %v2014_v14 = vrot.slane %v2013_v7, 4  ;;  %v2022_v15 = vadd.f32 %v2021_v60, %v1992_v8  ;;  %v1946_v16 = vrot.slane %v1945_v5, 2  ;;  %v1997_v21 = vadd.f32 %v1996_v9, %v1995_v0 }
 0x1dc   : > { %v1972_v17 = vadd.f32 %v1971_v12, %v1970_v4  ;;  %v1955_v20 = vrot.slane %v1954_v10, 2  ;;  %v2006_v22 = vadd.f32 %v2005_v11, %v2004_v3  ;;  %v1964_v25 = vrot.slane %v1963_v13, 2 }
 0x1dd   : > { %v2023_v23 = vrot.slane %v2022_v15, 4  ;;  %v1947_v24 = vadd.f32 %v1946_v16, %v1945_v5  ;;  %v2015_v26 = vadd.f32 %v2014_v14, %v2013_v7  ;;  %v1998_v30 = vrot.slane %v1997_v21, 2 }
 0x1de   : > { %v1956_v27 = vadd.f32 %v1955_v20, %v1954_v10  ;;  %v1973_v29 = vrot.slane %v1972_v17, 2  ;;  %v2007_v31 = vrot.slane %v2006_v22, 2  ;;  %v1965_v34 = vadd.f32 %v1964_v25, %v1963_v13 }
 0x1df   : > { %v1948_v32 = vrot.slane %v1947_v24, 1  ;;  %v2016_v35 = vrot.slane %v2015_v26, 2  ;;  %v2024_v36 = vadd.f32 %v2023_v23, %v2022_v15  ;;  %v1999_v44 = vadd.f32 %v1998_v30, %v1997_v21 }
 0x1e0   : > { %v1957_v18 = vrot.slane %v1956_v27, 1  ;;  %v1974_v39 = vadd.f32 %v1973_v29, %v1972_v17  ;;  %v2008_v45 = vadd.f32 %v2007_v31, %v2006_v22  ;;  %v1966_v46 = vrot.slane %v1965_v34, 1 }
 0x1e1   : > { %v1949_v40 = vadd.f32 %v1948_v32, %v1947_v24  ;;  %v2017_v28 = vadd.f32 %v2016_v35, %v2015_v26  ;;  %v2025_v47 = vrot.slane %v2024_v36, 2  ;;  %v2000_v42 = vrot.slane %v1999_v44, 1 }
 0x1e2   : > { %v1958_v41 = vadd.f32 %v1957_v18, %v1956_v27  ;;  %v1975_v33 = vrot.slane %v1974_v39, 1  ;;  %v2009_v43 = vrot.slane %v2008_v45, 1  ;;  %v1967_v38 = vadd.f32 %v1966_v46, %v1965_v34 }
 0x1e3   : > { %v2033_v49 = vadd.f32 %v2029_v37, %v1949_v40  ;;  %v2018_v1 = vrot.slane %v2017_v28, 1  ;;  %v2026_v53 = vadd.f32 %v2025_v47, %v2024_v36  ;;  %v2001_v56 = vadd.f32 %v2000_v42, %v1999_v44 }
 0x1e4   : > { %v2034_v54 = vadd.f32 %v2030_v19, %v1958_v41  ;;  %v1976_v55 = vadd.f32 %v1975_v33, %v1974_v39  ;;  %v2010_v57 = vadd.f32 %v2009_v43, %v2008_v45  ;;  %v2035_v59 = vadd.f32 %v2031_v48, %v1967_v38 }
 0x1e5   : > { %2037 = vst [vmem:[%s3235_s3] sm:$0xff] %v2033_v49  ;;  %v2019_v60 = vadd.f32 %v2018_v1, %v2017_v28  ;;  %v2027_v61 = vrot.slane %v2026_v53, 1  ;;  %v2045_v63 = vadd.f32 %v2041_v51, %v2001_v56 }
 0x1e6   : > { %2038 = vst [vmem:[%s3235_s3 + $0x8] sm:$0xff] %v2034_v54  ;;  %v2036_v62 = vadd.f32 %v2032_v50, %v1976_v55  ;;  %v2046_v0 = vadd.f32 %v2042_v52, %v2010_v57  ;;  %2039 = vst [vmem:[%s3235_s3 + $0x10] sm:$0xff] %v2035_v59 }
 0x1e7   : > { %v2047_v3 = vadd.f32 %v2043_v58, %v2019_v60  ;;  %v2028_v4 = vadd.f32 %v2027_v61, %v2026_v53  ;;  %2049 = vst [vmem:[%s3236_s4] sm:$0xff] %v2045_v63 }
 0x1e8   : > { %2040 = vst [vmem:[%s3235_s3 + $0x18] sm:$0xff] %v2036_v62  ;;  %2050 = vst [vmem:[%s3236_s4 + $0x8] sm:$0xff] %v2046_v0 }
 0x1e9   : > { %2051 = vst [vmem:[%s3236_s4 + $0x10] sm:$0xff] %v2047_v3  ;;  %v2048_v5 = vadd.f32 %v2044_v2, %v2028_v4 }
 0x1eb   : > { %2052 = vst [vmem:[%s3236_s4 + $0x18] sm:$0xff] %v2048_v5 }
 0x1ec PF: > { %s15_s19 = sadd.s32 1, %s2759_s19   ;;  %s3237_s15 = smov %s2747_s16 }
 0x1ed   : > { %p12_p13 = scmp.ge.s32.totalorder %s15_s19, 5   ;;  %s3238_s16 = smov %s2823_s23 }
 0x1ee   : > { %s3239_s17 = smov %s2755_s18  ;;  %s3240_s18 = smov %s3242_s20 }
 0x1ef   :  { %14 = sbr.rel (!%p12_p13) target bundleno = 3 (0x3), region = 117 }

// kernel: discriminator_cnn.11
= control target key start
LH: loop header
LB: loop body
LE: loop exit
PB: predicated region body
PF: predicated region fallthrough
CT: control target
= control target key end

     0   :  { %s1308_s9 = smov 0   ;;  %s1310_s10 = smov 0   ;;  %s1422_s0 = inlined_call_operand.vmem [shape: bf16[8,8192], index: 0, kind: input, shape index: {}]   ;;  %s1423_s1 = inlined_call_operand.vmem [shape: bf16[8192,128], index: 1, kind: input, shape index: {}]   ;;  %s1424_s2 = inlined_call_operand.vmem [shape: f32[8,128], index: 2, kind: output, shape index: {}]  }
   0x1   :  { %s1312_s11 = smov 0  }
   0x2 LB: > { %s21_s12 = sadd.s32 1, %s1286_s10  ;;  %p997_p0 = scmp.ge.s32.totalorder %s1290_s11, 1  ;;  %s1290_s11 = sphi %s1312_s11, %s12_s11   ;;  %s1286_s10 = sphi %s1310_s10, %s1426_s10   ;;  %s1282_s9 = sphi %s1308_s9, %s1425_s9  }
   0x3   : > { %p22_p1 = scmp.ge.s32.totalorder %s21_s12, 8  ;;  %p142_p2 = scmp.lt.s32.totalorder %s1290_s11, 9 }
   0x5   : > { %s1428_s12 = smov (%p22_p1, %s21_s12), 0  ;;  %p143_p3 = pnand %p997_p0, %p142_p2 }
   0x6   : > { %s998_s13 = sshll.u32 (!%p143_p3), %s1282_s9, 3  ;;  %s1000_s14 = sshll.u32 (!%p143_p3), %s1282_s9, 7 }
   0x7   : > { %146 = sbr.rel (%p143_p3) target bundleno = 334 (0x14e), region = 28  ;;  %p175_p4 = scmp.lt.s32.totalorder (!%p143_p3), %s998_s13, 63 }
   0x8   : > { %p183_p5 = scmp.lt.s32.totalorder (!%p143_p3), %s1000_s14, 1023  ;;  %p1002_p6 = scmp.ne.s32.totalorder (!%p143_p3), %s1282_s9, 0 }
   0xc   : > { %s1430_s13 = smov (!%p175_p4, %s998_s13), 63  ;;  %s1432_s14 = smov (!%p183_p5, %s1000_s14), 1023 }
   0xd   : > { %s999_s15 = sshll.u32 %s1430_s13, 2  ;;  %s1001_s19 = sshll.u32 %s1432_s14, 2 }
   0xe   : > { %s1333_s18 = scalar_lea.vmem %s1422_s0, %s999_s15  ;;  %s1338_s22 = scalar_lea.vmem %s1423_s1, %s1001_s19 }
   0xf   : > { %196 = sbr.rel (%p1002_p6) target bundleno = 22 (0x16), region = 32 }
  0x14   : > { %v1292_v0 = vmov 0.0  }
  0x15   : > { %197 = vst [vmem:[#allocation2] sm:$0xff] %v1292_v0 }
  0x16 PF: > { %v1192_v1 = vld [vmem:[%s1338_s22 + $0x78] sm:$0xff]   ;;  %v1196_v5 = vld [vmem:[%s1338_s22 + $0x70] sm:$0xff]   ;;  %v1200_v9 = vld [vmem:[%s1338_s22 + $0x68] sm:$0xff]   ;;  %p1075_p7 = scmp.ne.s32.totalorder %s1282_s9, 7 }
  0x17   : > { %v1193_v2 = vld [vmem:[%s1338_s22 + $0xf8] sm:$0xff]   ;;  %1079 = vmatprep.subr.bf16.mxu0 %v1192_v1  ;;  %v1197_v6 = vld [vmem:[%s1338_s22 + $0xf0] sm:$0xff]   ;;  %v1201_v10 = vld [vmem:[%s1338_s22 + $0xe8] sm:$0xff]  }
  0x18   : > { %v1194_v3 = vld [vmem:[%s1338_s22 + $0x38] sm:$0xff]   ;;  %1101 = vmatprep.subr.bf16.mxu1 %v1193_v2  ;;  %v1198_v7 = vld [vmem:[%s1338_s22 + $0x30] sm:$0xff]   ;;  %v1202_v11 = vld [vmem:[%s1338_s22 + $0x28] sm:$0xff]  }
  0x19   : > { %v1195_v4 = vld [vmem:[%s1338_s22 + $0xb8] sm:$0xff]   ;;  %1080 = vmatpush3.bf16.msra.mxu0 %v1194_v3  ;;  %v1199_v8 = vld [vmem:[%s1338_s22 + $0xb0] sm:$0xff]   ;;  %v1203_v12 = vld [vmem:[%s1338_s22 + $0xa8] sm:$0xff]  }
  0x1a   : > { %1102 = vmatpush3.bf16.msra.mxu1 %v1195_v4  ;;  %1081 = vmatprep.subr.bf16.mxu0 %v1196_v5  ;;  %v1204_v13 = vld [vmem:[%s1338_s22 + $0x60] sm:$0xff]   ;;  %v1208_v17 = vld [vmem:[%s1338_s22 + $0x58] sm:$0xff]   ;;  %v1212_v21 = vld [vmem:[%s1338_s22 + $0x50] sm:$0xff]  }
  0x1b   : > { %1103 = vmatprep.subr.bf16.mxu1 %v1197_v6  ;;  %v1205_v14 = vld [vmem:[%s1338_s22 + $0xe0] sm:$0xff]   ;;  %v1209_v18 = vld [vmem:[%s1338_s22 + $0xd8] sm:$0xff]   ;;  %v1213_v22 = vld [vmem:[%s1338_s22 + $0xd0] sm:$0xff]  }
  0x1c   : > { %v1206_v15 = vld [vmem:[%s1338_s22 + $0x20] sm:$0xff]   ;;  %v1210_v19 = vld [vmem:[%s1338_s22 + $0x18] sm:$0xff]   ;;  %v1214_v23 = vld [vmem:[%s1338_s22 + $0x10] sm:$0xff]  }
  0x1d   : > { %1082 = vmatpush3.bf16.msra.mxu0 %v1198_v7  ;;  %v1207_v16 = vld [vmem:[%s1338_s22 + $0xa0] sm:$0xff]   ;;  %v1211_v20 = vld [vmem:[%s1338_s22 + $0x98] sm:$0xff]   ;;  %v1215_v24 = vld [vmem:[%s1338_s22 + $0x90] sm:$0xff]  }
  0x1e   : > { %1104 = vmatpush3.bf16.msra.mxu1 %v1199_v8  ;;  %1083 = vmatprep.subr.bf16.mxu0 %v1200_v9  ;;  %v1216_v25 = vld [vmem:[%s1338_s22 + $0x48] sm:$0xff]   ;;  %v1220_v29 = vld [vmem:[%s1338_s22 + $0x40] sm:$0xff]   ;;  %v1228_v39 = vld [vmem:[%s1338_s22 + $0x178] sm:$0xff]  }
  0x1f   : > { %1105 = vmatprep.subr.bf16.mxu1 %v1201_v10  ;;  %v1217_v26 = vld [vmem:[%s1338_s22 + $0xc8] sm:$0xff]   ;;  %v1221_v30 = vld [vmem:[%s1338_s22 + $0xc0] sm:$0xff]   ;;  %v1229_v40 = vld [vmem:[%s1338_s22 + $0x1f8] sm:$0xff]  }
  0x20   : > { %v1218_v27 = vld [vmem:[%s1338_s22 + $0x8] sm:$0xff]   ;;  %v1222_v31 = vld [vmem:[%s1338_s22] sm:$0xff]   ;;  %v1230_v41 = vld [vmem:[%s1338_s22 + $0x138] sm:$0xff]  }
  0x21   : > { %1084 = vmatpush3.bf16.msra.mxu0 %v1202_v11  ;;  %v1219_v28 = vld [vmem:[%s1338_s22 + $0x88] sm:$0xff]   ;;  %v1223_v32 = vld [vmem:[%s1338_s22 + $0x80] sm:$0xff]   ;;  %v1231_v42 = vld [vmem:[%s1338_s22 + $0x1b8] sm:$0xff]  }
  0x22   : > { %1106 = vmatpush3.bf16.msra.mxu1 %v1203_v12  ;;  %1085 = vmatprep.subr.bf16.mxu0 %v1204_v13  ;;  %v199_v33 = vld [vmem:[%s1333_s18] sm:$0xff]  ;;  %v200_v34 = vld [vmem:[%s1333_s18 + $0x8] sm:$0xff]  ;;  %v1232_v43 = vld [vmem:[%s1338_s22 + $0x170] sm:$0xff]  }
  0x23   : > { %1107 = vmatprep.subr.bf16.mxu1 %v1205_v14  ;;  %v1003_v35 = vcombine.low %v199_v33, %v199_v33  ;;  %v1004_v36 = vcombine.high %v199_v33, %v199_v33  ;;  %v1005_v37 = vcombine.low %v200_v34, %v200_v34  ;;  %v1006_v38 = vcombine.high %v200_v34, %v200_v34  ;;  %v1233_v44 = vld [vmem:[%s1338_s22 + $0x1f0] sm:$0xff]   ;;  %v1236_v47 = vld [vmem:[%s1338_s22 + $0x168] sm:$0xff]   ;;  %v1240_v51 = vld [vmem:[%s1338_s22 + $0x160] sm:$0xff]  }
  0x24   : > { %v1234_v45 = vld [vmem:[%s1338_s22 + $0x130] sm:$0xff]   ;;  %v1237_v48 = vld [vmem:[%s1338_s22 + $0x1e8] sm:$0xff]   ;;  %v1241_v52 = vld [vmem:[%s1338_s22 + $0x1e0] sm:$0xff]  }
  0x25   : > { %1086 = vmatpush3.bf16.msra.mxu0 %v1206_v15  ;;  %775 = vmatprep.mubr.bf16.mxu0 %v1004_v36  ;;  %v1235_v46 = vld [vmem:[%s1338_s22 + $0x1b0] sm:$0xff]   ;;  %v1238_v49 = vld [vmem:[%s1338_s22 + $0x128] sm:$0xff]   ;;  %v1242_v53 = vld [vmem:[%s1338_s22 + $0x120] sm:$0xff]  }
  0x26   : > { %1108 = vmatpush3.bf16.msra.mxu1 %v1207_v16  ;;  %1087 = vmatprep.subr.bf16.mxu0 %v1208_v17  ;;  %v1239_v50 = vld [vmem:[%s1338_s22 + $0x1a8] sm:$0xff]   ;;  %v1243_v54 = vld [vmem:[%s1338_s22 + $0x1a0] sm:$0xff]   ;;  %v1244_v55 = vld [vmem:[%s1338_s22 + $0x158] sm:$0xff]  }
  0x27   : > { %1109 = vmatprep.subr.bf16.mxu1 %v1209_v18  ;;  %815 = vmatprep.mubr.bf16.mxu1 %v1006_v38  ;;  %v1245_v56 = vld [vmem:[%s1338_s22 + $0x1d8] sm:$0xff]   ;;  %v1248_v59 = vld [vmem:[%s1338_s22 + $0x150] sm:$0xff]   ;;  %v1252_v63 = vld [vmem:[%s1338_s22 + $0x148] sm:$0xff]  }
  0x28   : > { %v1246_v57 = vld [vmem:[%s1338_s22 + $0x118] sm:$0xff]   ;;  %v1249_v60 = vld [vmem:[%s1338_s22 + $0x1d0] sm:$0xff]   ;;  %v1253_v0 = vld [vmem:[%s1338_s22 + $0x1c8] sm:$0xff]  }
  0x29   : > { %1088 = vmatpush3.bf16.msra.mxu0 %v1210_v19  ;;  %v1247_v58 = vld [vmem:[%s1338_s22 + $0x198] sm:$0xff]   ;;  %v1250_v61 = vld [vmem:[%s1338_s22 + $0x110] sm:$0xff]   ;;  %v1254_v1 = vld [vmem:[%s1338_s22 + $0x108] sm:$0xff]  }
  0x2a   : > { %1110 = vmatpush3.bf16.msra.mxu1 %v1211_v20  ;;  %1089 = vmatprep.subr.bf16.mxu0 %v1212_v21  ;;  %v1251_v62 = vld [vmem:[%s1338_s22 + $0x190] sm:$0xff]   ;;  %v1255_v2 = vld [vmem:[%s1338_s22 + $0x188] sm:$0xff]   ;;  %v1256_v3 = vld [vmem:[%s1338_s22 + $0x140] sm:$0xff]  }
  0x2b   : > { %1111 = vmatprep.subr.bf16.mxu1 %v1213_v22  ;;  %v1257_v4 = vld [vmem:[%s1338_s22 + $0x1c0] sm:$0xff]   ;;  %v201_v7 = vld [vmem:[%s1333_s18 + $0x10] sm:$0xff]  ;;  %v202_v10 = vld [vmem:[%s1333_s18 + $0x18] sm:$0xff] }
  0x2c   : > { %v1258_v5 = vld [vmem:[%s1338_s22 + $0x100] sm:$0xff]   ;;  %v1007_v8 = vcombine.low %v201_v7, %v201_v7  ;;  %v1008_v9 = vcombine.high %v201_v7, %v201_v7  ;;  %v1009_v11 = vcombine.low %v202_v10, %v202_v10  ;;  %v1010_v12 = vcombine.high %v202_v10, %v202_v10 }
  0x2d   : > { %1090 = vmatpush3.bf16.msra.mxu0 %v1214_v23  ;;  %v1259_v6 = vld [vmem:[%s1338_s22 + $0x180] sm:$0xff]  }
  0x2e   : > { %1112 = vmatpush3.bf16.msra.mxu1 %v1215_v24  ;;  %1091 = vmatprep.subr.bf16.mxu0 %v1216_v25  ;;  %v198_v33 = vld [vmem:[#allocation2] sm:$0xff] }
  0x2f   : > { %1113 = vmatprep.subr.bf16.mxu1 %v1217_v26 }
  0x31   : > { %1092 = vmatpush3.bf16.msra.mxu0 %v1218_v27 }
  0x32   : > { %1114 = vmatpush3.bf16.msra.mxu1 %v1219_v28  ;;  %1093 = vmatprep.subr.bf16.mxu0 %v1220_v29 }
  0x33   : > { %1115 = vmatprep.subr.bf16.mxu1 %v1221_v30 }
  0x35   : > { %1094 = vmatpush3.bf16.msra.mxu0 %v1222_v31 }
  0x36   : > { %1116 = vmatpush3.bf16.msra.mxu1 %v1223_v32  ;;  %1123 = vmatprep.subr.bf16.mxu0 %v1228_v39 }
  0x37   : > { %1145 = vmatprep.subr.bf16.mxu1 %v1229_v40 }
  0x38   : > { %776 = vmatmul.mubr.bf16.vlgmr.msra.gmra.mxu0 %v1003_v35 }
  0x39   : > { %816 = vmatmul.mubr.bf16.vlgmr.msra.gmra.mxu1 %v1005_v37  ;;  %1124 = vmatpush3.bf16.msra.mxu0 %v1230_v41 }
  0x3a   : > { %1146 = vmatpush3.bf16.msra.mxu1 %v1231_v42  ;;  %1125 = vmatprep.subr.bf16.mxu0 %v1232_v43 }
  0x3b   : > { %1147 = vmatprep.subr.bf16.mxu1 %v1233_v44  ;;  %855 = vmatprep.mubr.bf16.mxu0 %v1008_v9 }
  0x3c   : > { %895 = vmatprep.mubr.bf16.mxu1 %v1010_v12 }
  0x3d   : > { %1126 = vmatpush3.bf16.msra.mxu0 %v1234_v45 }
  0x3e   : > { %1148 = vmatpush3.bf16.msra.mxu1 %v1235_v46  ;;  %1127 = vmatprep.subr.bf16.mxu0 %v1236_v47 }
  0x3f   : > { %1149 = vmatprep.subr.bf16.mxu1 %v1237_v48 }
  0x41   : > { %1128 = vmatpush3.bf16.msra.mxu0 %v1238_v49 }
  0x42   : > { %1150 = vmatpush3.bf16.msra.mxu1 %v1239_v50  ;;  %1129 = vmatprep.subr.bf16.mxu0 %v1240_v51 }
  0x43   : > { %1151 = vmatprep.subr.bf16.mxu1 %v1241_v52 }
  0x45   : > { %1130 = vmatpush3.bf16.msra.mxu0 %v1242_v53 }
  0x46   : > { %1152 = vmatpush3.bf16.msra.mxu1 %v1243_v54  ;;  %1131 = vmatprep.subr.bf16.mxu0 %v1244_v55 }
  0x47   : > { %1153 = vmatprep.subr.bf16.mxu1 %v1245_v56 }
  0x49   : > { %1132 = vmatpush3.bf16.msra.mxu0 %v1246_v57 }
  0x4a   : > { %1154 = vmatpush3.bf16.msra.mxu1 %v1247_v58  ;;  %1133 = vmatprep.subr.bf16.mxu0 %v1248_v59 }
  0x4b   : > { %1155 = vmatprep.subr.bf16.mxu1 %v1249_v60 }
  0x4d   : > { %1134 = vmatpush3.bf16.msra.mxu0 %v1250_v61 }
  0x4e   : > { %1156 = vmatpush3.bf16.msra.mxu1 %v1251_v62  ;;  %1135 = vmatprep.subr.bf16.mxu0 %v1252_v63 }
  0x4f   : > { %1157 = vmatprep.subr.bf16.mxu1 %v1253_v0 }
  0x51   : > { %1136 = vmatpush3.bf16.msra.mxu0 %v1254_v1 }
  0x52   : > { %1158 = vmatpush3.bf16.msra.mxu1 %v1255_v2  ;;  %1137 = vmatprep.subr.bf16.mxu0 %v1256_v3 }
  0x53   : > { %1159 = vmatprep.subr.bf16.mxu1 %v1257_v4 }
  0x55   : > { %1138 = vmatpush3.bf16.msra.mxu0 %v1258_v5 }
  0x56   : > { %1160 = vmatpush3.bf16.msra.mxu1 %v1259_v6 }
  0x58   : > { %856 = vmatmul.mubr.bf16.vlgmr.msra.gmra.mxu0 %v1007_v8 }
  0x59   : > { %896 = vmatmul.mubr.bf16.vlgmr.msra.gmra.mxu1 %v1009_v11 }
  0xf8   : > { %v1095_v13 = vpop.f32.mrf.mxu0 }
  0xf9   : > { %v1117_v14 = vpop.f32.mrf.mxu1 }
  0xfa   : > { %v1096_v15 = vpop.f32.mrf.mxu0 }
  0xfb   : > { %v1118_v16 = vpop.f32.mrf.mxu1  ;;  %v1097_v21 = vadd.f32 %v1096_v15, %v1095_v13 }
  0xfc   : > { %v1098_v17 = vpop.f32.mrf.mxu0  ;;  %v1119_v22 = vadd.f32 %v1118_v16, %v1117_v14 }
  0xfd   : > { %v1120_v18 = vpop.f32.mrf.mxu1 }
  0xfe   : > { %v1099_v19 = vpop.f32.mrf.mxu0  ;;  %v818_v27 = vadd.f32 %v1119_v22, %v1097_v21 }
  0xff   : > { %v1121_v20 = vpop.f32.mrf.mxu1 }
 0x118   : > { %v1139_v23 = vpop.f32.mrf.mxu0 }
 0x119   : > { %v1161_v24 = vpop.f32.mrf.mxu1 }
 0x11a   : > { %v1140_v25 = vpop.f32.mrf.mxu0 }
 0x11b   : > { %v1162_v26 = vpop.f32.mrf.mxu1  ;;  %v1141_v28 = vadd.f32 %v1140_v25, %v1139_v23 }
 0x11c   : > { %v1142_v29 = vpop.f32.mrf.mxu0  ;;  %v1163_v32 = vadd.f32 %v1162_v26, %v1161_v24 }
 0x11d   : > { %v1164_v30 = vpop.f32.mrf.mxu1  ;;  %v858_v31 = vadd.f32 %v1141_v28, %v818_v27 }
 0x11e   : > { %v1143_v34 = vpop.f32.mrf.mxu0 }
 0x11f   : > { %v1165_v35 = vpop.f32.mrf.mxu1  ;;  %v898_v36 = vadd.f32 %v1163_v32, %v858_v31  ;;  %908 = sbr.rel (%p1075_p7) target bundleno = 334 (0x14e), region = 36 }
 0x121   : > { %v903_v37 = vadd.f32 %v898_v36, %v198_v33 }
 0x123   : > { %904 = vst [vmem:[#allocation2] sm:$0xff] %v903_v37 }
 0x12a   : > { %v909_v38 = vld [vmem:[#allocation2] sm:$0xff] }
 0x12b   : > { %v910_v39 = vsub.f32 0.0, %v909_v38 }
 0x12d   : > { %v911_v40 = vmul.f32 1.442695, %v910_v39 }
 0x12f   : > { %1264 = vpow2.f32 %v911_v40 }
 0x13c   : > { %v1265_v41 = vpop.eup %1264 }
 0x13d   : > { %v913_v42 = vadd.f32 1.0, %v1265_v41 }
 0x13f   : > { %1266 = vrcp.f32 %v913_v42 }
 0x14c   : > { %v1267_v43 = vpop.eup %1266 }
 0x14d   : > { %916 = vst [vmem:[%s1424_s2] sm:$0xff] %v1267_v43 }
 0x14e PF: > { %s12_s11 = sadd.s32 1, %s1290_s11   ;;  %s1425_s9 = smov %s1286_s10 }
 0x14f   : > { %p9_p8 = scmp.ge.s32.totalorder %s12_s11, 10   ;;  %s1426_s10 = smov %s1428_s12 }
 0x151   :  { %11 = sbr.rel (!%p9_p8) target bundleno = 2 (0x2), region = 69 }

</bundles_post_ra>
